<compile_context>
chip_gen: v7x
topology: tpu7x:2x2x1
jax: 0.10.0
libtpu: 0.0.40
codegen_flags: <defaults>
</compile_context>

<pallas_src>
import jax
import jax.numpy as jnp
from jax import lax
from jax.experimental import pallas as pl
from jax.experimental.pallas import tpu as pltpu

EPS = 1e-5
K_IN = 2570          # torch Linear(2570, 512) input features
HIDDEN = 512
CHUNK = 896          # 7 * 128: lane-aligned K chunk (x slices stay 128-aligned)
N_CHUNKS = 3
K_PAD = CHUNK * N_CHUNKS   # 2688 rows of w1 in HBM (last 118 rows are zeros)


def gate_kernel(x_ref, w1_hbm, p_ref, o_ref, xb_ref, wbuf_ref, sem_ref):
    B = x_ref.shape[0]
    E = o_ref.shape[1]

    def w1_copy(c, slot):
        return pltpu.make_async_copy(
            w1_hbm.at[pl.ds(c * CHUNK, CHUNK), :],
            wbuf_ref.at[slot],
            sem_ref.at[slot],
        )

    # Kick off the first w1 chunk immediately; the x staging below hides under it.
    w1_copy(0, 0).start()

    # Stage x into a lane-padded bf16 scratch:
    #   zero the final 128-lane tile, then overwrite the first K_IN lanes
    #   (masked partial store on the last tile).  Hidden under the chunk-0 DMA.
    xb_ref[:, K_PAD - 128:] = jnp.zeros((B, 128), jnp.bfloat16)
    xb_ref[:, :K_IN] = x_ref[...].astype(jnp.bfloat16)

    # ---- fc1: Linear(2570 -> 512), K streamed in double-buffered chunks ----
    h = jnp.zeros((B, HIDDEN), jnp.float32)
    for c in range(N_CHUNKS):                 # static unroll (3 iterations)
        slot = c & 1
        w1_copy(c, slot).wait()
        if c + 1 < N_CHUNKS:                  # prefetch next chunk while we compute
            w1_copy(c + 1, 1 - slot).start()
        xc = xb_ref[:, c * CHUNK:(c + 1) * CHUNK]
        h = h + jnp.dot(xc, wbuf_ref[slot], preferred_element_type=jnp.float32)

    # packed params: rows 0..3 = g1 / be1 / g2(pad) / be2(pad); rows 4..4+E-1 = w2^T
    p = p_ref[...]
    g1, be1 = p[0:1, :], p[1:2, :]
    g2, be2 = p[2:3, :E], p[3:4, :E]
    w2t = p[4:4 + E, :]                       # (E, 512), lane-dense

    # ---- BatchNorm1d(512), training mode (batch stats, biased var) ----
    mu = jnp.mean(h, axis=0, keepdims=True)
    d = h - mu
    var = jnp.mean(d * d, axis=0, keepdims=True)
    h = d * (g1 * lax.rsqrt(var + EPS)) + be1   # gamma folded into rsqrt scale

    # ---- ReLU ----
    h = jnp.maximum(h, 0.0)

    # ---- fc2: Linear(512 -> E), transposed lane-dense weights ----
    z = lax.dot_general(h, w2t, (((1,), (1,)), ((), ())),
                        preferred_element_type=jnp.float32)

    # ---- BatchNorm1d(E), training mode ----
    mu2 = jnp.mean(z, axis=0, keepdims=True)
    d2 = z - mu2
    var2 = jnp.mean(d2 * d2, axis=0, keepdims=True)
    z = d2 * (g2 * lax.rsqrt(var2 + EPS)) + be2

    # ---- Softmax(dim=-1) ----
    z = z - jnp.max(z, axis=-1, keepdims=True)
    ez = jnp.exp(z)
    denom = jnp.sum(ez, axis=-1, keepdims=True)
    o_ref[...] = ez * pl.reciprocal(denom, approx=True)


def gate_forward(x, w1_bf16, packed):
    """x: (B, 2570) f32 (raw, un-padded, un-cast).
    w1_bf16: (K_PAD, 512) bf16 (zero rows beyond 2570).
    packed: (4+E, 512) f32 = [g1; be1; g2 pad; be2 pad; w2^T]."""
    assert x.shape[1] == K_IN and w1_bf16.shape[0] == K_PAD
    B = x.shape[0]
    E = packed.shape[0] - 4
    return pl.pallas_call(
        gate_kernel,
        out_shape=jax.ShapeDtypeStruct((B, E), jnp.float32),
        in_specs=[
            pl.BlockSpec(memory_space=pltpu.MemorySpace.VMEM),   # x, whole array
            pl.BlockSpec(memory_space=pl.ANY),                   # w1 stays in HBM
            pl.BlockSpec(memory_space=pltpu.MemorySpace.VMEM),   # packed params + w2^T
        ],
        out_specs=pl.BlockSpec(memory_space=pltpu.MemorySpace.VMEM),
        scratch_shapes=[
            pltpu.VMEM((B, K_PAD), jnp.bfloat16),                # staged / padded x
            pltpu.VMEM((2, CHUNK, HIDDEN), jnp.bfloat16),        # w1 double buffer
            pltpu.SemaphoreType.DMA((2,)),
        ],
    )(x, w1_bf16, packed)


def init_params(key, in_features=K_IN, hidden=HIDDEN, num_experts=4):
    k1, k2, k3, k4, k5, k6 = jax.random.split(key, 6)
    # Deterministic synthetic init (shapes follow the torch module __init__).
    # Linear biases intentionally omitted (training-mode BN cancels them exactly).
    w1 = (jax.random.normal(k1, (in_features, hidden), jnp.float32)
          * (1.0 / jnp.sqrt(in_features)))
    w2t = (jax.random.normal(k2, (num_experts, hidden), jnp.float32)
           * (1.0 / jnp.sqrt(hidden)))                       # stored transposed
    g1 = 1.0 + 0.1 * jax.random.normal(k3, (hidden,), jnp.float32)
    be1 = 0.1 * jax.random.normal(k4, (hidden,), jnp.float32)
    g2 = 1.0 + 0.1 * jax.random.normal(k5, (num_experts,), jnp.float32)
    be2 = 0.1 * jax.random.normal(k6, (num_experts,), jnp.float32)

    # --- pack / cast for the kernel (one-time weight prep, not per call) ---
    w1_bf16 = jnp.zeros((K_PAD, hidden), jnp.bfloat16).at[:in_features, :].set(
        w1.astype(jnp.bfloat16))
    packed = jnp.zeros((4 + num_experts, hidden), jnp.float32)
    packed = packed.at[0, :].set(g1)
    packed = packed.at[1, :].set(be1)
    packed = packed.at[2, :num_experts].set(g2)
    packed = packed.at[3, :num_experts].set(be2)
    packed = packed.at[4:, :].set(w2t)
    return w1_bf16, packed


def gate_ref(x, w1_bf16, packed):
    """Pure-JAX reference with identical (bf16-weight) precision."""
    E = packed.shape[0] - 4
    Kp = w1_bf16.shape[0]
    xp = jnp.pad(x, ((0, 0), (0, Kp - x.shape[1]))).astype(jnp.bfloat16)
    h = jnp.dot(xp, w1_bf16, preferred_element_type=jnp.float32)
    mu = jnp.mean(h, axis=0, keepdims=True)
    var = jnp.mean((h - mu) ** 2, axis=0, keepdims=True)
    h = (h - mu) * (packed[0:1, :] * lax.rsqrt(var + EPS)) + packed[1:2, :]
    h = jnp.maximum(h, 0.0)
    z = jnp.dot(h, packed[4:4 + E, :].T, preferred_element_type=jnp.float32)
    mu2 = jnp.mean(z, axis=0, keepdims=True)
    var2 = jnp.mean((z - mu2) ** 2, axis=0, keepdims=True)
    z = (z - mu2) * (packed[2:3, :E] * lax.rsqrt(var2 + EPS)) + packed[3:4, :E]
    return jax.nn.softmax(z, axis=-1)


if __name__ == "__main__":
    key = jax.random.PRNGKey(0)
    kx, kp = jax.random.split(key)

    B, E = 8, 4
    x = jax.random.normal(kx, (B, K_IN), jnp.float32)
    w1_bf16, packed = init_params(kp, K_IN, HIDDEN, E)

    out = gate_forward(x, w1_bf16, packed)
    out = jax.block_until_ready(out)

    # sanity: shape, softmax rows ~sum to 1 (approx reciprocal), matches
    # the same-precision JAX reference.
    assert out.shape == (B, E)
    assert bool(jnp.allclose(jnp.sum(out, axis=-1), 1.0, atol=5e-3))
    ref = gate_ref(x, w1_bf16, packed)
    assert bool(jnp.allclose(out, ref, atol=1e-2))
    print("KERNEL_OK")
</pallas_src>

<mosaic_0001>
module attributes {stable_mosaic.version = 11 : i64} {
  func.func @gate_kernel(%arg0: memref<8x2570xf32, #tpu.memory_space<vmem>>, %arg1: memref<2688x512xbf16, #tpu.memory_space<any>>, %arg2: memref<8x512xf32, #tpu.memory_space<vmem>>, %arg3: memref<8x4xf32, #tpu.memory_space<vmem>>, %arg4: memref<8x2688xbf16, #tpu.memory_space<vmem>>, %arg5: memref<2x896x512xbf16, #tpu.memory_space<vmem>>, %arg6: memref<2x!tpu.dma_semaphore, #tpu.memory_space<semaphore_mem>>) attributes {dimension_semantics = [], scalar_prefetch = 0 : i64, scratch_operands = 3 : i64, tpu.core_type = #tpu.core_type<tc>} {
    %c0_i32 = arith.constant 0 : i32
    %c0_i32_0 = arith.constant 0 : i32
    %c0_i32_1 = arith.constant 0 : i32
    %c0_i32_2 = arith.constant 0 : i32
    %0 = tpu.memref_slice %arg1[%c0_i32_1, %c0_i32_2] : memref<2688x512xbf16, #tpu.memory_space<any>> -> memref<896x512xbf16, #tpu.memory_space<any>>
    %c0_i32_3 = arith.constant 0 : i32
    %c0_i32_4 = arith.constant 0 : i32
    %1 = tpu.memref_slice %arg5[%c0_i32, %c0_i32_3, %c0_i32_4] : memref<2x896x512xbf16, #tpu.memory_space<vmem>> -> memref<1x896x512xbf16, #tpu.memory_space<vmem>>
    %2 = tpu.memref_squeeze %1 : memref<1x896x512xbf16, #tpu.memory_space<vmem>> -> memref<896x512xbf16, #tpu.memory_space<vmem>>
    %3 = tpu.memref_slice %arg6[%c0_i32_0] : memref<2x!tpu.dma_semaphore, #tpu.memory_space<semaphore_mem>> -> memref<1x!tpu.dma_semaphore, #tpu.memory_space<semaphore_mem>>
    %4 = tpu.memref_squeeze %3 : memref<1x!tpu.dma_semaphore, #tpu.memory_space<semaphore_mem>> -> memref<!tpu.dma_semaphore, #tpu.memory_space<semaphore_mem>>
    tpu.enqueue_dma source(%0 : memref<896x512xbf16, #tpu.memory_space<any>>) target(%2 : memref<896x512xbf16, #tpu.memory_space<vmem>>) target_semaphore(%4 : memref<!tpu.dma_semaphore, #tpu.memory_space<semaphore_mem>>)
    %cst = arith.constant 0.000000e+00 : bf16
    %5 = vector.broadcast %cst : bf16 to vector<8x128xbf16>
    %c0 = arith.constant 0 : index
    %c2560 = arith.constant 2560 : index
    %6 = vector.load %arg4[%c0, %c2560] : memref<8x2688xbf16, #tpu.memory_space<vmem>>, vector<8x128xbf16>
    tpu.vector_store %arg4[%c0, %c2560], %5 {strides = array<i32>} : memref<8x2688xbf16, #tpu.memory_space<vmem>>, vector<8x128xbf16>,
    %c0_5 = arith.constant 0 : index
    %c0_6 = arith.constant 0 : index
    %7 = vector.load %arg0[%c0_5, %c0_6] : memref<8x2570xf32, #tpu.memory_space<vmem>>, vector<8x2570xf32>
    %8 = arith.truncf %7 : vector<8x2570xf32> to vector<8x2570xbf16>
    %c0_7 = arith.constant 0 : index
    %c0_8 = arith.constant 0 : index
    %9 = vector.load %arg4[%c0_7, %c0_8] : memref<8x2688xbf16, #tpu.memory_space<vmem>>, vector<8x2570xbf16>
    tpu.vector_store %arg4[%c0_7, %c0_8], %8 {strides = array<i32>} : memref<8x2688xbf16, #tpu.memory_space<vmem>>, vector<8x2570xbf16>,
    %cst_9 = arith.constant 0.000000e+00 : f32
    %10 = vector.broadcast %cst_9 : f32 to vector<8x512xf32>
    %c0_i32_10 = arith.constant 0 : i32
    %c0_i32_11 = arith.constant 0 : i32
    %c0_i32_12 = arith.constant 0 : i32
    %c0_i32_13 = arith.constant 0 : i32
    %11 = tpu.memref_slice %arg1[%c0_i32_12, %c0_i32_13] : memref<2688x512xbf16, #tpu.memory_space<any>> -> memref<896x512xbf16, #tpu.memory_space<any>>
    %c0_i32_14 = arith.constant 0 : i32
    %c0_i32_15 = arith.constant 0 : i32
    %12 = tpu.memref_slice %arg5[%c0_i32_10, %c0_i32_14, %c0_i32_15] : memref<2x896x512xbf16, #tpu.memory_space<vmem>> -> memref<1x896x512xbf16, #tpu.memory_space<vmem>>
    %13 = tpu.memref_squeeze %12 : memref<1x896x512xbf16, #tpu.memory_space<vmem>> -> memref<896x512xbf16, #tpu.memory_space<vmem>>
    %14 = tpu.memref_slice %arg6[%c0_i32_11] : memref<2x!tpu.dma_semaphore, #tpu.memory_space<semaphore_mem>> -> memref<1x!tpu.dma_semaphore, #tpu.memory_space<semaphore_mem>>
    %15 = tpu.memref_squeeze %14 : memref<1x!tpu.dma_semaphore, #tpu.memory_space<semaphore_mem>> -> memref<!tpu.dma_semaphore, #tpu.memory_space<semaphore_mem>>
    tpu.wait_dma2 semaphore(%15 : memref<!tpu.dma_semaphore, #tpu.memory_space<semaphore_mem>>) src(%11 : memref<896x512xbf16, #tpu.memory_space<any>>) dst(%13 : memref<896x512xbf16, #tpu.memory_space<vmem>>)
    %c1_i32 = arith.constant 1 : i32
    %c1_i32_16 = arith.constant 1 : i32
    %c896_i32 = arith.constant 896 : i32
    %c0_i32_17 = arith.constant 0 : i32
    %16 = tpu.memref_slice %arg1[%c896_i32, %c0_i32_17] : memref<2688x512xbf16, #tpu.memory_space<any>> -> memref<896x512xbf16, #tpu.memory_space<any>>
    %c0_i32_18 = arith.constant 0 : i32
    %c0_i32_19 = arith.constant 0 : i32
    %17 = tpu.memref_slice %arg5[%c1_i32, %c0_i32_18, %c0_i32_19] : memref<2x896x512xbf16, #tpu.memory_space<vmem>> -> memref<1x896x512xbf16, #tpu.memory_space<vmem>>
    %18 = tpu.memref_squeeze %17 : memref<1x896x512xbf16, #tpu.memory_space<vmem>> -> memref<896x512xbf16, #tpu.memory_space<vmem>>
    %19 = tpu.memref_slice %arg6[%c1_i32_16] : memref<2x!tpu.dma_semaphore, #tpu.memory_space<semaphore_mem>> -> memref<1x!tpu.dma_semaphore, #tpu.memory_space<semaphore_mem>>
    %20 = tpu.memref_squeeze %19 : memref<1x!tpu.dma_semaphore, #tpu.memory_space<semaphore_mem>> -> memref<!tpu.dma_semaphore, #tpu.memory_space<semaphore_mem>>
    tpu.enqueue_dma source(%16 : memref<896x512xbf16, #tpu.memory_space<any>>) target(%18 : memref<896x512xbf16, #tpu.memory_space<vmem>>) target_semaphore(%20 : memref<!tpu.dma_semaphore, #tpu.memory_space<semaphore_mem>>)
    %c0_20 = arith.constant 0 : index
    %c0_21 = arith.constant 0 : index
    %21 = vector.load %arg4[%c0_20, %c0_21] : memref<8x2688xbf16, #tpu.memory_space<vmem>>, vector<8x896xbf16>
    %c0_22 = arith.constant 0 : index
    %c0_23 = arith.constant 0 : index
    %c0_24 = arith.constant 0 : index
    %22 = vector.load %arg5[%c0_22, %c0_23, %c0_24] : memref<2x896x512xbf16, #tpu.memory_space<vmem>>, vector<1x896x512xbf16>
    %23 = vector.shape_cast %22 : vector<1x896x512xbf16> to vector<896x512xbf16>
    %cst_25 = arith.constant dense<0.000000e+00> : vector<8x512xf32>
    %24 = tpu.matmul %21, %23, %cst_25 {dimension_numbers = #tpu.dot_dimension_numbers<[1], [0], [0], [1], [0, 0, 1, 1], [], []>} : vector<8x896xbf16>, vector<896x512xbf16>, vector<8x512xf32> -> vector<8x512xf32>
    %25 = arith.addf %10, %24 : vector<8x512xf32>
    %c1_i32_26 = arith.constant 1 : i32
    %c1_i32_27 = arith.constant 1 : i32
    %c896_i32_28 = arith.constant 896 : i32
    %c0_i32_29 = arith.constant 0 : i32
    %26 = tpu.memref_slice %arg1[%c896_i32_28, %c0_i32_29] : memref<2688x512xbf16, #tpu.memory_space<any>> -> memref<896x512xbf16, #tpu.memory_space<any>>
    %c0_i32_30 = arith.constant 0 : i32
    %c0_i32_31 = arith.constant 0 : i32
    %27 = tpu.memref_slice %arg5[%c1_i32_26, %c0_i32_30, %c0_i32_31] : memref<2x896x512xbf16, #tpu.memory_space<vmem>> -> memref<1x896x512xbf16, #tpu.memory_space<vmem>>
    %28 = tpu.memref_squeeze %27 : memref<1x896x512xbf16, #tpu.memory_space<vmem>> -> memref<896x512xbf16, #tpu.memory_space<vmem>>
    %29 = tpu.memref_slice %arg6[%c1_i32_27] : memref<2x!tpu.dma_semaphore, #tpu.memory_space<semaphore_mem>> -> memref<1x!tpu.dma_semaphore, #tpu.memory_space<semaphore_mem>>
    %30 = tpu.memref_squeeze %29 : memref<1x!tpu.dma_semaphore, #tpu.memory_space<semaphore_mem>> -> memref<!tpu.dma_semaphore, #tpu.memory_space<semaphore_mem>>
    tpu.wait_dma2 semaphore(%30 : memref<!tpu.dma_semaphore, #tpu.memory_space<semaphore_mem>>) src(%26 : memref<896x512xbf16, #tpu.memory_space<any>>) dst(%28 : memref<896x512xbf16, #tpu.memory_space<vmem>>)
    %c0_i32_32 = arith.constant 0 : i32
    %c0_i32_33 = arith.constant 0 : i32
    %c1792_i32 = arith.constant 1792 : i32
    %c0_i32_34 = arith.constant 0 : i32
    %31 = tpu.memref_slice %arg1[%c1792_i32, %c0_i32_34] : memref<2688x512xbf16, #tpu.memory_space<any>> -> memref<896x512xbf16, #tpu.memory_space<any>>
    %c0_i32_35 = arith.constant 0 : i32
    %c0_i32_36 = arith.constant 0 : i32
    %32 = tpu.memref_slice %arg5[%c0_i32_32, %c0_i32_35, %c0_i32_36] : memref<2x896x512xbf16, #tpu.memory_space<vmem>> -> memref<1x896x512xbf16, #tpu.memory_space<vmem>>
    %33 = tpu.memref_squeeze %32 : memref<1x896x512xbf16, #tpu.memory_space<vmem>> -> memref<896x512xbf16, #tpu.memory_space<vmem>>
    %34 = tpu.memref_slice %arg6[%c0_i32_33] : memref<2x!tpu.dma_semaphore, #tpu.memory_space<semaphore_mem>> -> memref<1x!tpu.dma_semaphore, #tpu.memory_space<semaphore_mem>>
    %35 = tpu.memref_squeeze %34 : memref<1x!tpu.dma_semaphore, #tpu.memory_space<semaphore_mem>> -> memref<!tpu.dma_semaphore, #tpu.memory_space<semaphore_mem>>
    tpu.enqueue_dma source(%31 : memref<896x512xbf16, #tpu.memory_space<any>>) target(%33 : memref<896x512xbf16, #tpu.memory_space<vmem>>) target_semaphore(%35 : memref<!tpu.dma_semaphore, #tpu.memory_space<semaphore_mem>>)
    %c0_37 = arith.constant 0 : index
    %c896 = arith.constant 896 : index
    %36 = vector.load %arg4[%c0_37, %c896] : memref<8x2688xbf16, #tpu.memory_space<vmem>>, vector<8x896xbf16>
    %c1 = arith.constant 1 : index
    %c0_38 = arith.constant 0 : index
    %c0_39 = arith.constant 0 : index
    %37 = vector.load %arg5[%c1, %c0_38, %c0_39] : memref<2x896x512xbf16, #tpu.memory_space<vmem>>, vector<1x896x512xbf16>
    %38 = vector.shape_cast %37 : vector<1x896x512xbf16> to vector<896x512xbf16>
    %cst_40 = arith.constant dense<0.000000e+00> : vector<8x512xf32>
    %39 = tpu.matmul %36, %38, %cst_40 {dimension_numbers = #tpu.dot_dimension_numbers<[1], [0], [0], [1], [0, 0, 1, 1], [], []>} : vector<8x896xbf16>, vector<896x512xbf16>, vector<8x512xf32> -> vector<8x512xf32>
    %40 = arith.addf %25, %39 : vector<8x512xf32>
    %c0_i32_41 = arith.constant 0 : i32
    %c0_i32_42 = arith.constant 0 : i32
    %c1792_i32_43 = arith.constant 1792 : i32
    %c0_i32_44 = arith.constant 0 : i32
    %41 = tpu.memref_slice %arg1[%c1792_i32_43, %c0_i32_44] : memref<2688x512xbf16, #tpu.memory_space<any>> -> memref<896x512xbf16, #tpu.memory_space<any>>
    %c0_i32_45 = arith.constant 0 : i32
    %c0_i32_46 = arith.constant 0 : i32
    %42 = tpu.memref_slice %arg5[%c0_i32_41, %c0_i32_45, %c0_i32_46] : memref<2x896x512xbf16, #tpu.memory_space<vmem>> -> memref<1x896x512xbf16, #tpu.memory_space<vmem>>
    %43 = tpu.memref_squeeze %42 : memref<1x896x512xbf16, #tpu.memory_space<vmem>> -> memref<896x512xbf16, #tpu.memory_space<vmem>>
    %44 = tpu.memref_slice %arg6[%c0_i32_42] : memref<2x!tpu.dma_semaphore, #tpu.memory_space<semaphore_mem>> -> memref<1x!tpu.dma_semaphore, #tpu.memory_space<semaphore_mem>>
    %45 = tpu.memref_squeeze %44 : memref<1x!tpu.dma_semaphore, #tpu.memory_space<semaphore_mem>> -> memref<!tpu.dma_semaphore, #tpu.memory_space<semaphore_mem>>
    tpu.wait_dma2 semaphore(%45 : memref<!tpu.dma_semaphore, #tpu.memory_space<semaphore_mem>>) src(%41 : memref<896x512xbf16, #tpu.memory_space<any>>) dst(%43 : memref<896x512xbf16, #tpu.memory_space<vmem>>)
    %c0_47 = arith.constant 0 : index
    %c1792 = arith.constant 1792 : index
    %46 = vector.load %arg4[%c0_47, %c1792] : memref<8x2688xbf16, #tpu.memory_space<vmem>>, vector<8x896xbf16>
    %c0_48 = arith.constant 0 : index
    %c0_49 = arith.constant 0 : index
    %c0_50 = arith.constant 0 : index
    %47 = vector.load %arg5[%c0_48, %c0_49, %c0_50] : memref<2x896x512xbf16, #tpu.memory_space<vmem>>, vector<1x896x512xbf16>
    %48 = vector.shape_cast %47 : vector<1x896x512xbf16> to vector<896x512xbf16>
    %cst_51 = arith.constant dense<0.000000e+00> : vector<8x512xf32>
    %49 = tpu.matmul %46, %48, %cst_51 {dimension_numbers = #tpu.dot_dimension_numbers<[1], [0], [0], [1], [0, 0, 1, 1], [], []>} : vector<8x896xbf16>, vector<896x512xbf16>, vector<8x512xf32> -> vector<8x512xf32>
    %50 = arith.addf %40, %49 : vector<8x512xf32>
    %c0_52 = arith.constant 0 : index
    %c0_53 = arith.constant 0 : index
    %51 = vector.load %arg2[%c0_52, %c0_53] : memref<8x512xf32, #tpu.memory_space<vmem>>, vector<8x512xf32>
    %52 = vector.extract_strided_slice %51 {offsets = [0, 0], sizes = [1, 512], strides = [1, 1]} : vector<8x512xf32> to vector<1x512xf32>
    %53 = vector.extract_strided_slice %51 {offsets = [1, 0], sizes = [1, 512], strides = [1, 1]} : vector<8x512xf32> to vector<1x512xf32>
    %54 = vector.extract_strided_slice %51 {offsets = [2, 0], sizes = [1, 4], strides = [1, 1]} : vector<8x512xf32> to vector<1x4xf32>
    %55 = vector.extract_strided_slice %51 {offsets = [3, 0], sizes = [1, 4], strides = [1, 1]} : vector<8x512xf32> to vector<1x4xf32>
    %56 = vector.extract_strided_slice %51 {offsets = [4, 0], sizes = [4, 512], strides = [1, 1]} : vector<8x512xf32> to vector<4x512xf32>
    %cst_54 = arith.constant dense<0.000000e+00> : vector<512xf32>
    %57 = vector.multi_reduction <add>, %50, %cst_54 [0] : vector<8x512xf32> to vector<512xf32>
    %58 = vector.shape_cast %57 : vector<512xf32> to vector<1x512xf32>
    %cst_55 = arith.constant 8.000000e+00 : f32
    %59 = vector.broadcast %cst_55 : f32 to vector<1x512xf32>
    %60 = arith.divf %58, %59 : vector<1x512xf32>
    %61 = vector.broadcast %60 : vector<1x512xf32> to vector<8x512xf32>
    %62 = arith.subf %50, %61 : vector<8x512xf32>
    %63 = arith.mulf %62, %62 : vector<8x512xf32>
    %cst_56 = arith.constant dense<0.000000e+00> : vector<512xf32>
    %64 = vector.multi_reduction <add>, %63, %cst_56 [0] : vector<8x512xf32> to vector<512xf32>
    %65 = vector.shape_cast %64 : vector<512xf32> to vector<1x512xf32>
    %cst_57 = arith.constant 8.000000e+00 : f32
    %66 = vector.broadcast %cst_57 : f32 to vector<1x512xf32>
    %67 = arith.divf %65, %66 : vector<1x512xf32>
    %cst_58 = arith.constant 9.99999974E-6 : f32
    %68 = vector.broadcast %cst_58 : f32 to vector<1x512xf32>
    %69 = arith.addf %67, %68 : vector<1x512xf32>
    %70 = math.rsqrt %69 : vector<1x512xf32>
    %71 = arith.mulf %52, %70 : vector<1x512xf32>
    %72 = vector.broadcast %71 : vector<1x512xf32> to vector<8x512xf32>
    %73 = arith.mulf %62, %72 : vector<8x512xf32>
    %74 = vector.broadcast %53 : vector<1x512xf32> to vector<8x512xf32>
    %75 = arith.addf %73, %74 : vector<8x512xf32>
    %cst_59 = arith.constant 0.000000e+00 : f32
    %76 = vector.broadcast %cst_59 : f32 to vector<8x512xf32>
    %77 = arith.maximumf %75, %76 : vector<8x512xf32>
    %cst_60 = arith.constant dense<0.000000e+00> : vector<8x4xf32>
    %78 = tpu.matmul %77, %56, %cst_60 {dimension_numbers = #tpu.dot_dimension_numbers<[1], [1], [0], [0], [0, 0, 1, 0], [], []>} : vector<8x512xf32>, vector<4x512xf32>, vector<8x4xf32> -> vector<8x4xf32>
    %cst_61 = arith.constant dense<0.000000e+00> : vector<4xf32>
    %79 = vector.multi_reduction <add>, %78, %cst_61 [0] : vector<8x4xf32> to vector<4xf32>
    %80 = vector.shape_cast %79 : vector<4xf32> to vector<1x4xf32>
    %cst_62 = arith.constant 8.000000e+00 : f32
    %81 = vector.broadcast %cst_62 : f32 to vector<1x4xf32>
    %82 = arith.divf %80, %81 : vector<1x4xf32>
    %83 = vector.broadcast %82 : vector<1x4xf32> to vector<8x4xf32>
    %84 = arith.subf %78, %83 : vector<8x4xf32>
    %85 = arith.mulf %84, %84 : vector<8x4xf32>
    %cst_63 = arith.constant dense<0.000000e+00> : vector<4xf32>
    %86 = vector.multi_reduction <add>, %85, %cst_63 [0] : vector<8x4xf32> to vector<4xf32>
    %87 = vector.shape_cast %86 : vector<4xf32> to vector<1x4xf32>
    %cst_64 = arith.constant 8.000000e+00 : f32
    %88 = vector.broadcast %cst_64 : f32 to vector<1x4xf32>
    %89 = arith.divf %87, %88 : vector<1x4xf32>
    %cst_65 = arith.constant 9.99999974E-6 : f32
    %90 = vector.broadcast %cst_65 : f32 to vector<1x4xf32>
    %91 = arith.addf %89, %90 : vector<1x4xf32>
    %92 = math.rsqrt %91 : vector<1x4xf32>
    %93 = arith.mulf %54, %92 : vector<1x4xf32>
    %94 = vector.broadcast %93 : vector<1x4xf32> to vector<8x4xf32>
    %95 = arith.mulf %84, %94 : vector<8x4xf32>
    %96 = vector.broadcast %55 : vector<1x4xf32> to vector<8x4xf32>
    %97 = arith.addf %95, %96 : vector<8x4xf32>
    %cst_66 = arith.constant dense<0xFF800000> : vector<8xf32>
    %98 = vector.multi_reduction <maximumf>, %97, %cst_66 [1] : vector<8x4xf32> to vector<8xf32>
    %99 = vector.shape_cast %98 : vector<8xf32> to vector<8x1xf32>
    %100 = vector.broadcast %99 : vector<8x1xf32> to vector<8x4xf32>
    %101 = arith.subf %97, %100 : vector<8x4xf32>
    %102 = math.exp %101 : vector<8x4xf32>
    %cst_67 = arith.constant dense<0.000000e+00> : vector<8xf32>
    %103 = vector.multi_reduction <add>, %102, %cst_67 [1] : vector<8x4xf32> to vector<8xf32>
    %104 = vector.shape_cast %103 : vector<8xf32> to vector<8x1xf32>
    %105 = tpu.reciprocal %104 {approx = true} : vector<8x1xf32> -> vector<8x1xf32>
    %106 = vector.broadcast %105 : vector<8x1xf32> to vector<8x4xf32>
    %107 = arith.mulf %102, %106 : vector<8x4xf32>
    %c0_68 = arith.constant 0 : index
    %c0_69 = arith.constant 0 : index
    %108 = vector.load %arg3[%c0_68, %c0_69] : memref<8x4xf32, #tpu.memory_space<vmem>>, vector<8x4xf32>
    tpu.vector_store %arg3[%c0_68, %c0_69], %107 {strides = array<i32>} : memref<8x4xf32, #tpu.memory_space<vmem>>, vector<8x4xf32>,
    return
  }
}

</mosaic_0001>

<bundles_post_ra>
// kernel: tpu_custom_call.1
= control target key start
LH: loop header
LB: loop body
LE: loop exit
PB: predicated region body
PF: predicated region fallthrough
CT: control target
= control target key end

     0   :  { %8 = vsyncpa [#allocation6], 0  ;;  %s3489_s0 = inlined_call_operand.hbm [shape: f32[8,2570], index: 0, kind: input, shape index: {}]   ;;  %s3490_s1 = inlined_call_operand.hbm [shape: bf16[2688,512], index: 1, kind: input, shape index: {}]   ;;  %s3491_s2 = inlined_call_operand.hbm [shape: f32[8,512], index: 2, kind: input, shape index: {}]   ;;  %s3492_s3 = inlined_call_operand.vmem [shape: f32[8,4], index: 3, kind: output, shape index: {}]  }
   0x1   :  { %9 = vsyncpa [#allocation8], 0  ;;  %s2596_s12 = smov [#allocation5]   ;;  %s2597_s14 = smov [#allocation7]  }
   0x2   :  { %s16_s13 = sshll.u32 %s2596_s12, 4  ;;  %s26_s15 = sshll.u32 %s2597_s14, 4  ;;  %s17_s13 = int_to_ptr.vmem [resolvable:$true] %s16_s13  ;;  %s27_s15 = int_to_ptr.vmem [resolvable:$true] %s26_s15 }
   0x3   :  { %s2542_s18 = scalar_lea.hbm %s3489_s0, 2688 }
   0x4   :  { %p2543_p0 = scmp.ne.s32.totalorder %s3489_s0, %s2542_s18  ;;  %p2546_p1 = scmp.lt.u32.totalorder %s2542_s18, %s3489_s0 }
   0x6   :  { %p2548_p2 = pnand %p2546_p1, %p2543_p0 }
   0x8   :  { %2551 = shalt.err (!%p2548_p2)
}
   0x9   :  { %s2552_s23 = scalar_lea.vmem %s17_s13, 2688  ;;  %p2557_p4 = scmp.lt.s32.totalorder %s17_s13, %s17_s13 }
   0xa   :  { %p2553_p3 = scmp.ne.s32.totalorder %s17_s13, %s2552_s23  ;;  %p2558_p5 = scmp.lt.s32.totalorder %s2552_s23, %s2552_s23 }
   0xc   :  { %p2559_p6 = por %p2558_p5, %p2557_p4 }
   0xe   :  { %p2560_p7 = pnand %p2559_p6, %p2553_p3 }
  0x10   :  { %2563 = shalt.err (!%p2560_p7)
}
  0x11   :  { %19 = dma.hbm_to_vmem [thread:$0]  %s3489_s0, 2688, %s17_s13, [#allocation6]  }
  0x12   :  { %s2564_s28 = scalar_lea.hbm %s3491_s2, 512 }
  0x13   :  { %p2565_p8 = scmp.ne.s32.totalorder %s3491_s2, %s2564_s28  ;;  %p2568_p9 = scmp.lt.u32.totalorder %s2564_s28, %s3491_s2 }
  0x15   :  { %p2570_p10 = pnand %p2568_p9, %p2565_p8 }
  0x17   :  { %2573 = shalt.err (!%p2570_p10)
}
  0x18   :  { %s2574_s6 = scalar_lea.vmem %s27_s15, 512  ;;  %p2579_p12 = scmp.lt.s32.totalorder %s27_s15, %s27_s15 }
  0x19   :  { %p2575_p11 = scmp.ne.s32.totalorder %s27_s15, %s2574_s6  ;;  %p2580_p13 = scmp.lt.s32.totalorder %s2574_s6, %s2574_s6 }
  0x1b   :  { %p2581_p0 = por %p2580_p13, %p2579_p12 }
  0x1d   :  { %p2582_p1 = pnand %p2581_p0, %p2575_p11 }
  0x1f   :  { %2585 = shalt.err (!%p2582_p1)
}
  0x20   :  { %29 = dma.hbm_to_vmem [thread:$0]  %s3491_s2, 512, %s27_s15, [#allocation8]  }
  0x21   :  { %2586 = dma.done.wait [#allocation6], 2688  }
  0x22   :  { %2587 = vsyncadd [#allocation6], 4294964608 }
  0x23   :  { %2588 = dma.done.wait [#allocation8], 512  }
  0x24   :  { %2589 = vsyncadd [#allocation8], 4294966784  ;;  %s41_s8 = sld [smem:[#allocation0]]   ;;  %s2598_s9 = smov 512   ;;  %v3493_v0 = vmov 0   ;;  %vm189_vm0 = vcmask 76800  }
  0x25   :  { %53 = sst [smem:[#allocation10]] %s2598_s9  ;;  %s2599_s10 = smov 4  }
  0x26   :  { %55 = sst [smem:[#allocation10 + $0x1]] %s2598_s9  ;;  %s2600_s11 = smov 64  }
  0x27   :  { %57 = sst [smem:[#allocation10 + $0x2]] %s2599_s10  ;;  %s2601_s12 = smov 128  }
  0x28   :  { %59 = sst [smem:[#allocation10 + $0x3]] %s2600_s11  ;;  %s2602_s2 = smov 2  }
  0x29   :  { %61 = sst [smem:[#allocation10 + $0x4]] %s2601_s12  ;;  %s2603_s14 = smov 256  }
  0x2a   :  { %63 = sst [smem:[#allocation10 + $0x5]] %s2602_s2  ;;  %s2358_s13 = sshll.u32 %s41_s8, 26 }
  0x2b   :  { %65 = sst [smem:[#allocation10 + $0x6]] %s2603_s14  ;;  %s2663_s15 = sadd.s32 134217728, %s2358_s13 }
  0x2c   :  { %67 = sst [smem:[#allocation10 + $0x7]] %s2600_s11  ;;  %s2604_s16 = smov [#allocation3]  }
  0x2d   :  { %69 = sst [smem:[#allocation10 + $0x8]] %s2599_s10  ;;  %s2667_s17 = sshll.u32 %s2604_s16, 4  ;;  %s50_s17 = int_to_ptr.vmem [resolvable:$true] %s2667_s17 }
  0x2e   :  { %s2605_s18 = smov [#allocation4]   ;;  %s2606_s19 = smov [#allocation9]  }
  0x2f   :  { %71 = dma.general %s3490_s1, 28672, %s50_s17, %s2605_s18, %s2606_s19, [#allocation10], %s2663_s15, 0  }
  0x30   :  { %72 = vst [vmem:[#allocation2 + $0x50] sm:$0xf] %v3493_v0  ;;  %v73_v1 = vld [vmem:[#allocation5] sm:$0xff]  ;;  %v74_v2 = vld [vmem:[#allocation5 + $0x8] sm:$0xff]  ;;  %v75_v3 = vld [vmem:[#allocation5 + $0x10] sm:$0xff] }
  0x31   :  { %v2398_v4 = vpack.c.bf16 %v74_v2, %v73_v1  ;;  %v76_v5 = vld [vmem:[#allocation5 + $0x18] sm:$0xff]  ;;  %v77_v6 = vld [vmem:[#allocation5 + $0x20] sm:$0xff]  ;;  %v78_v7 = vld [vmem:[#allocation5 + $0x28] sm:$0xff] }
  0x32   :  { %v2399_v8 = vpack.c.bf16 %v76_v5, %v75_v3  ;;  %v2400_v9 = vpack.c.bf16 %v78_v7, %v77_v6  ;;  %v79_v10 = vld [vmem:[#allocation5 + $0x30] sm:$0xff]  ;;  %v80_v11 = vld [vmem:[#allocation5 + $0x38] sm:$0xff]  ;;  %v81_v12 = vld [vmem:[#allocation5 + $0x40] sm:$0xff] }
  0x33   :  { %179 = vst [vmem:[#allocation2] sm:$0xff] %v2398_v4  ;;  %v2401_v13 = vpack.c.bf16 %v80_v11, %v79_v10  ;;  %v82_v14 = vld [vmem:[#allocation5 + $0x48] sm:$0xff]  ;;  %v83_v15 = vld [vmem:[#allocation5 + $0x50] sm:$0xff]  ;;  %v84_v16 = vld [vmem:[#allocation5 + $0x58] sm:$0xff] }
  0x34   :  { %180 = vst [vmem:[#allocation2 + $0x8] sm:$0xff] %v2399_v8  ;;  %181 = vst [vmem:[#allocation2 + $0x10] sm:$0xff] %v2400_v9  ;;  %v2402_v17 = vpack.c.bf16 %v82_v14, %v81_v12  ;;  %v2403_v18 = vpack.c.bf16 %v84_v16, %v83_v15  ;;  %v85_v19 = vld [vmem:[#allocation5 + $0x60] sm:$0xff]  ;;  %v86_v20 = vld [vmem:[#allocation5 + $0x68] sm:$0xff] }
  0x35   :  { %v87_v21 = vld [vmem:[#allocation5 + $0x70] sm:$0xff]  ;;  %182 = vst [vmem:[#allocation2 + $0x18] sm:$0xff] %v2401_v13  ;;  %v2404_v22 = vpack.c.bf16 %v86_v20, %v85_v19  ;;  %v88_v23 = vld [vmem:[#allocation5 + $0x78] sm:$0xff]  ;;  %v89_v24 = vld [vmem:[#allocation5 + $0x80] sm:$0xff] }
  0x36   :  { %v90_v25 = vld [vmem:[#allocation5 + $0x88] sm:$0xff]  ;;  %183 = vst [vmem:[#allocation2 + $0x20] sm:$0xff] %v2402_v17  ;;  %184 = vst [vmem:[#allocation2 + $0x28] sm:$0xff] %v2403_v18  ;;  %v2405_v26 = vpack.c.bf16 %v88_v23, %v87_v21  ;;  %v91_v28 = vld [vmem:[#allocation5 + $0x90] sm:$0xff] }
  0x37   :  { %v2406_v27 = vpack.c.bf16 %v90_v25, %v89_v24  ;;  %v92_v29 = vld [vmem:[#allocation5 + $0x98] sm:$0xff]  ;;  %v93_v30 = vld [vmem:[#allocation5 + $0xa0] sm:$0xff]  ;;  %185 = vst [vmem:[#allocation2 + $0x30] sm:$0xff] %v2404_v22 }
  0x38   :  { %v2407_v31 = vpack.c.bf16 %v92_v29, %v91_v28  ;;  %v2408_v32 = vpack.c.bf16 %v93_v30, %v93_v30  ;;  %186 = vst [vmem:[#allocation2 + $0x38] sm:$0xff] %v2405_v26 }
  0x39   :  { %187 = vst [vmem:[#allocation2 + $0x40] sm:$0xff] %v2406_v27 }
  0x3a   :  { %188 = vst [vmem:[#allocation2 + $0x48] sm:$0xff] %v2407_v31  ;;  %190 = vst.msk [vmem:[#allocation2 + $0x50] sm:$0xf] %vm189_vm0, %v2408_v32 }
  0x3b   :  { %2590 = dma.done.wait [#allocation4], 28672 }
  0x3c   :  { %2591 = vsyncadd [#allocation4], 4294938624  ;;  %213 = sst [smem:[#allocation12]] %s2598_s9  ;;  %s2608_s22 = smov [#allocation3 + $0x700]  }
  0x3d   :  { %s209_s23 = sshll.u32 %s2608_s22, 4  ;;  %215 = sst [smem:[#allocation12 + $0x1]] %s2598_s9  ;;  %s210_s23 = int_to_ptr.vmem [resolvable:$true] %s209_s23 }
  0x3e   :  { %217 = sst [smem:[#allocation12 + $0x2]] %s2599_s10  ;;  %s195_s26 = scalar_lea.hbm %s3490_s1, 28672 }
  0x3f   :  { %219 = sst [smem:[#allocation12 + $0x3]] %s2600_s11  ;;  %s2609_s27 = smov [#allocation4 + $0x1]  }
  0x40   :  { %221 = sst [smem:[#allocation12 + $0x4]] %s2601_s12  ;;  %s2610_s28 = smov [#allocation11]  }
  0x41   :  { %223 = sst [smem:[#allocation12 + $0x5]] %s2602_s2 }
  0x42   :  { %225 = sst [smem:[#allocation12 + $0x6]] %s2603_s14 }
  0x43   :  { %227 = sst [smem:[#allocation12 + $0x7]] %s2600_s11 }
  0x44   :  { %229 = sst [smem:[#allocation12 + $0x8]] %s2599_s10 }
  0x45   :  { %231 = dma.general %s195_s26, 28672, %s210_s23, %s2609_s27, %s2610_s28, [#allocation12], %s2663_s15, 0  }
  0x46   :  { %v2691_v33 = vld [vmem:[#allocation2] sm:$0xff]  ;;  %v2693_v34 = vld [vmem:[#allocation2 + $0x8] sm:$0xff]  ;;  %v2695_v35 = vld [vmem:[#allocation2 + $0x10] sm:$0xff] }
  0x47   :  { %3497 = vst [vmem:[#allocation20_spill] sm:$0xff] %v2693_v34  ;;  %3498 = vst [vmem:[#allocation21_spill] sm:$0xff] %v2695_v35  ;;  %v2697_v36 = vld [vmem:[#allocation2 + $0x18] sm:$0xf]  ;;  %v2701_v38 = vld [vmem:[#allocation3 + $0x8] sm:$0xff] }
  0x48   :  { %3499 = vst [vmem:[#allocation22_spill] sm:$0xff] %v2697_v36  ;;  %v2699_v37 = vld [vmem:[#allocation3] sm:$0xff]  ;;  %v2703_v39 = vld [vmem:[#allocation3 + $0x10] sm:$0xff]  ;;  %v2705_v40 = vld [vmem:[#allocation3 + $0x18] sm:$0xff] }
  0x49   :  { %v2707_v41 = vld [vmem:[#allocation3 + $0x20] sm:$0xff]  ;;  %v2709_v42 = vld [vmem:[#allocation3 + $0x28] sm:$0xff]  ;;  %v2711_v43 = vld [vmem:[#allocation3 + $0x30] sm:$0xff] }
  0x4a   :  { %v2713_v44 = vld [vmem:[#allocation3 + $0x38] sm:$0xff]  ;;  %v2715_v45 = vld [vmem:[#allocation3 + $0x40] sm:$0xff]  ;;  %v2717_v46 = vld [vmem:[#allocation3 + $0x48] sm:$0xff] }
  0x4b   :  { %v2719_v47 = vld [vmem:[#allocation3 + $0x50] sm:$0xff]  ;;  %v2721_v48 = vld [vmem:[#allocation3 + $0x58] sm:$0xff]  ;;  %v2723_v49 = vld [vmem:[#allocation3 + $0x60] sm:$0xff] }
  0x4c   :  { %v2725_v50 = vld [vmem:[#allocation3 + $0x68] sm:$0xff]  ;;  %v2727_v51 = vld [vmem:[#allocation3 + $0x70] sm:$0xff]  ;;  %v2729_v52 = vld [vmem:[#allocation3 + $0x78] sm:$0xff] }
  0x4d   :  { %v2731_v53 = vld [vmem:[#allocation3 + $0x80] sm:$0xff]  ;;  %v2733_v54 = vld [vmem:[#allocation3 + $0x88] sm:$0xff]  ;;  %v2735_v55 = vld [vmem:[#allocation3 + $0x90] sm:$0xff] }
  0x4e   :  { %v2737_v56 = vld [vmem:[#allocation3 + $0x98] sm:$0xff]  ;;  %v2739_v57 = vld [vmem:[#allocation3 + $0xa0] sm:$0xff]  ;;  %v2741_v58 = vld [vmem:[#allocation3 + $0xa8] sm:$0xff] }
  0x4f   :  { %v2743_v59 = vld [vmem:[#allocation3 + $0xb0] sm:$0xff]  ;;  %v2745_v60 = vld [vmem:[#allocation3 + $0xb8] sm:$0xff]  ;;  %v2747_v61 = vld [vmem:[#allocation3 + $0xc0] sm:$0xff] }
  0x50   :  { %v2749_v62 = vld [vmem:[#allocation3 + $0xc8] sm:$0xff]  ;;  %v2751_v63 = vld [vmem:[#allocation3 + $0xd0] sm:$0xff]  ;;  %v2753_v1 = vld [vmem:[#allocation3 + $0xd8] sm:$0xff] }
  0x51   :  { %v2755_v2 = vld [vmem:[#allocation3 + $0xe0] sm:$0xff]  ;;  %v2757_v3 = vld [vmem:[#allocation3 + $0xe8] sm:$0xff]  ;;  %v2759_v4 = vld [vmem:[#allocation3 + $0xf0] sm:$0xff] }
  0x52   :  { %v2761_v5 = vld [vmem:[#allocation3 + $0xf8] sm:$0xff]  ;;  %v2763_v6 = vld [vmem:[#allocation3 + $0x100] sm:$0xff]  ;;  %v2765_v7 = vld [vmem:[#allocation3 + $0x108] sm:$0xff] }
  0x53   :  { %v2767_v8 = vld [vmem:[#allocation3 + $0x110] sm:$0xff]  ;;  %v2769_v9 = vld [vmem:[#allocation3 + $0x118] sm:$0xff]  ;;  %v2771_v10 = vld [vmem:[#allocation3 + $0x120] sm:$0xff] }
  0x54   :  { %v2773_v11 = vld [vmem:[#allocation3 + $0x128] sm:$0xff]  ;;  %v2775_v12 = vld [vmem:[#allocation3 + $0x130] sm:$0xff]  ;;  %v2777_v13 = vld [vmem:[#allocation3 + $0x138] sm:$0xff] }
  0x55   :  { %v2779_v14 = vld [vmem:[#allocation3 + $0x140] sm:$0xff]  ;;  %v2781_v15 = vld [vmem:[#allocation3 + $0x148] sm:$0xff]  ;;  %v2783_v16 = vld [vmem:[#allocation3 + $0x150] sm:$0xff] }
  0x56   :  { %v2785_v17 = vld [vmem:[#allocation3 + $0x158] sm:$0xff]  ;;  %v2787_v18 = vld [vmem:[#allocation3 + $0x160] sm:$0xff]  ;;  %v2789_v19 = vld [vmem:[#allocation3 + $0x168] sm:$0xff] }
  0x57   :  { %v2791_v20 = vld [vmem:[#allocation3 + $0x170] sm:$0xff]  ;;  %v2793_v21 = vld [vmem:[#allocation3 + $0x178] sm:$0xff]  ;;  %v2795_v22 = vld [vmem:[#allocation3 + $0x180] sm:$0xff] }
  0x58   :  { %3500 = vst [vmem:[#allocation23_spill] sm:$0xff] %v2795_v22  ;;  %v2797_v23 = vld [vmem:[#allocation3 + $0x188] sm:$0xff]  ;;  %v2799_v24 = vld [vmem:[#allocation3 + $0x190] sm:$0xff]  ;;  %v2801_v25 = vld [vmem:[#allocation3 + $0x198] sm:$0xff] }
  0x59   :  { %3501 = vst [vmem:[#allocation24_spill] sm:$0xff] %v2797_v23  ;;  %3502 = vst [vmem:[#allocation25_spill] sm:$0xff] %v2799_v24  ;;  %v2803_v26 = vld [vmem:[#allocation3 + $0x1a0] sm:$0xff]  ;;  %v2805_v27 = vld [vmem:[#allocation3 + $0x1a8] sm:$0xff] }
  0x5a   :  { %3503 = vst [vmem:[#allocation26_spill] sm:$0xff] %v2801_v25  ;;  %3504 = vst [vmem:[#allocation27_spill] sm:$0xff] %v2803_v26  ;;  %v2807_v28 = vld [vmem:[#allocation3 + $0x1b0] sm:$0xff]  ;;  %v2809_v29 = vld [vmem:[#allocation3 + $0x1b8] sm:$0xff] }
  0x5b   :  { %3505 = vst [vmem:[#allocation28_spill] sm:$0xff] %v2805_v27  ;;  %3506 = vst [vmem:[#allocation29_spill] sm:$0xff] %v2807_v28  ;;  %v2811_v30 = vld [vmem:[#allocation3 + $0x1c0] sm:$0xff]  ;;  %v2813_v31 = vld [vmem:[#allocation3 + $0x1c8] sm:$0xff] }
  0x5c   :  { %3507 = vst [vmem:[#allocation30_spill] sm:$0xff] %v2809_v29  ;;  %3508 = vst [vmem:[#allocation31_spill] sm:$0xff] %v2811_v30  ;;  %v2815_v32 = vld [vmem:[#allocation3 + $0x1d0] sm:$0xff]  ;;  %v2817_v0 = vld [vmem:[#allocation3 + $0x1d8] sm:$0xff] }
  0x5d   :  { %3509 = vst [vmem:[#allocation32_spill] sm:$0xff] %v2813_v31  ;;  %3510 = vst [vmem:[#allocation33_spill] sm:$0xff] %v2815_v32  ;;  %v2819_v36 = vld [vmem:[#allocation3 + $0x1e0] sm:$0xff]  ;;  %v2821_v35 = vld [vmem:[#allocation3 + $0x1e8] sm:$0xff] }
  0x5e   :  { %3511 = vst [vmem:[#allocation34_spill] sm:$0xff] %v2817_v0  ;;  %3512 = vst [vmem:[#allocation35_spill] sm:$0xff] %v2819_v36  ;;  %v2823_v34 = vld [vmem:[#allocation3 + $0x1f0] sm:$0xff]  ;;  %v2825_v26 = vld [vmem:[#allocation3 + $0x1f8] sm:$0xff] }
  0x5f   :  { %3513 = vst [vmem:[#allocation36_spill] sm:$0xff] %v2821_v35  ;;  %3514 = vst [vmem:[#allocation37_spill] sm:$0xff] %v2823_v34  ;;  %v2827_v27 = vld [vmem:[#allocation3 + $0x200] sm:$0xff]  ;;  %v2829_v28 = vld [vmem:[#allocation3 + $0x208] sm:$0xff] }
  0x60   :  { %3515 = vst [vmem:[#allocation38_spill] sm:$0xff] %v2825_v26  ;;  %3516 = vst [vmem:[#allocation39_spill] sm:$0xff] %v2827_v27  ;;  %v2831_v29 = vld [vmem:[#allocation3 + $0x210] sm:$0xff]  ;;  %v2833_v30 = vld [vmem:[#allocation3 + $0x218] sm:$0xff] }
  0x61   :  { %3517 = vst [vmem:[#allocation40_spill] sm:$0xff] %v2829_v28  ;;  %3518 = vst [vmem:[#allocation41_spill] sm:$0xff] %v2831_v29  ;;  %v2835_v31 = vld [vmem:[#allocation3 + $0x220] sm:$0xff]  ;;  %v2837_v32 = vld [vmem:[#allocation3 + $0x228] sm:$0xff] }
  0x62   :  { %3519 = vst [vmem:[#allocation42_spill] sm:$0xff] %v2833_v30  ;;  %3520 = vst [vmem:[#allocation43_spill] sm:$0xff] %v2835_v31  ;;  %v2839_v0 = vld [vmem:[#allocation3 + $0x230] sm:$0xff]  ;;  %v2841_v36 = vld [vmem:[#allocation3 + $0x238] sm:$0xff] }
  0x63   :  { %3521 = vst [vmem:[#allocation44_spill] sm:$0xff] %v2837_v32  ;;  %3522 = vst [vmem:[#allocation45_spill] sm:$0xff] %v2839_v0  ;;  %v2843_v35 = vld [vmem:[#allocation3 + $0x240] sm:$0xff]  ;;  %v2845_v34 = vld [vmem:[#allocation3 + $0x248] sm:$0xff] }
  0x64   :  { %3523 = vst [vmem:[#allocation46_spill] sm:$0xff] %v2841_v36  ;;  %3524 = vst [vmem:[#allocation47_spill] sm:$0xff] %v2843_v35  ;;  %v2847_v26 = vld [vmem:[#allocation3 + $0x250] sm:$0xff]  ;;  %v2849_v27 = vld [vmem:[#allocation3 + $0x258] sm:$0xff] }
  0x65   :  { %3525 = vst [vmem:[#allocation48_spill] sm:$0xff] %v2845_v34  ;;  %3526 = vst [vmem:[#allocation49_spill] sm:$0xff] %v2847_v26  ;;  %v2851_v28 = vld [vmem:[#allocation3 + $0x260] sm:$0xff]  ;;  %v2853_v29 = vld [vmem:[#allocation3 + $0x268] sm:$0xff] }
  0x66   :  { %3527 = vst [vmem:[#allocation50_spill] sm:$0xff] %v2849_v27  ;;  %3528 = vst [vmem:[#allocation51_spill] sm:$0xff] %v2851_v28  ;;  %v2855_v30 = vld [vmem:[#allocation3 + $0x270] sm:$0xff]  ;;  %v2857_v31 = vld [vmem:[#allocation3 + $0x278] sm:$0xff] }
  0x67   :  { %3529 = vst [vmem:[#allocation52_spill] sm:$0xff] %v2853_v29  ;;  %3530 = vst [vmem:[#allocation53_spill] sm:$0xff] %v2855_v30  ;;  %v2859_v32 = vld [vmem:[#allocation3 + $0x280] sm:$0xff]  ;;  %v2861_v0 = vld [vmem:[#allocation3 + $0x288] sm:$0xff] }
  0x68   :  { %3531 = vst [vmem:[#allocation54_spill] sm:$0xff] %v2857_v31  ;;  %3532 = vst [vmem:[#allocation55_spill] sm:$0xff] %v2859_v32  ;;  %v2863_v36 = vld [vmem:[#allocation3 + $0x290] sm:$0xff]  ;;  %v2865_v35 = vld [vmem:[#allocation3 + $0x298] sm:$0xff] }
  0x69   :  { %3533 = vst [vmem:[#allocation56_spill] sm:$0xff] %v2861_v0  ;;  %3534 = vst [vmem:[#allocation57_spill] sm:$0xff] %v2863_v36  ;;  %v2867_v34 = vld [vmem:[#allocation3 + $0x2a0] sm:$0xff]  ;;  %v2869_v26 = vld [vmem:[#allocation3 + $0x2a8] sm:$0xff] }
  0x6a   :  { %3535 = vst [vmem:[#allocation58_spill] sm:$0xff] %v2865_v35  ;;  %3536 = vst [vmem:[#allocation59_spill] sm:$0xff] %v2867_v34  ;;  %v2871_v27 = vld [vmem:[#allocation3 + $0x2b0] sm:$0xff]  ;;  %v2873_v28 = vld [vmem:[#allocation3 + $0x2b8] sm:$0xff] }
  0x6b   :  { %3537 = vst [vmem:[#allocation60_spill] sm:$0xff] %v2869_v26  ;;  %3538 = vst [vmem:[#allocation61_spill] sm:$0xff] %v2871_v27  ;;  %v2875_v29 = vld [vmem:[#allocation3 + $0x2c0] sm:$0xff]  ;;  %v2877_v30 = vld [vmem:[#allocation3 + $0x2c8] sm:$0xff] }
  0x6c   :  { %3539 = vst [vmem:[#allocation62_spill] sm:$0xff] %v2873_v28  ;;  %3540 = vst [vmem:[#allocation63_spill] sm:$0xff] %v2875_v29  ;;  %v2879_v31 = vld [vmem:[#allocation3 + $0x2d0] sm:$0xff]  ;;  %v2881_v32 = vld [vmem:[#allocation3 + $0x2d8] sm:$0xff] }
  0x6d   :  { %3541 = vst [vmem:[#allocation64_spill] sm:$0xff] %v2877_v30  ;;  %3542 = vst [vmem:[#allocation65_spill] sm:$0xff] %v2879_v31  ;;  %v2883_v0 = vld [vmem:[#allocation3 + $0x2e0] sm:$0xff]  ;;  %v2885_v36 = vld [vmem:[#allocation3 + $0x2e8] sm:$0xff] }
  0x6e   :  { %3543 = vst [vmem:[#allocation66_spill] sm:$0xff] %v2881_v32  ;;  %3544 = vst [vmem:[#allocation67_spill] sm:$0xff] %v2883_v0  ;;  %v2887_v35 = vld [vmem:[#allocation3 + $0x2f0] sm:$0xff]  ;;  %v2889_v34 = vld [vmem:[#allocation3 + $0x2f8] sm:$0xff] }
  0x6f   :  { %3545 = vst [vmem:[#allocation68_spill] sm:$0xff] %v2885_v36  ;;  %3546 = vst [vmem:[#allocation69_spill] sm:$0xff] %v2887_v35  ;;  %v2891_v26 = vld [vmem:[#allocation3 + $0x300] sm:$0xff]  ;;  %v2893_v27 = vld [vmem:[#allocation3 + $0x308] sm:$0xff] }
  0x70   :  { %3547 = vst [vmem:[#allocation70_spill] sm:$0xff] %v2889_v34  ;;  %3548 = vst [vmem:[#allocation71_spill] sm:$0xff] %v2891_v26  ;;  %v2895_v28 = vld [vmem:[#allocation3 + $0x310] sm:$0xff]  ;;  %v2897_v29 = vld [vmem:[#allocation3 + $0x318] sm:$0xff] }
  0x71   :  { %3549 = vst [vmem:[#allocation72_spill] sm:$0xff] %v2893_v27  ;;  %3550 = vst [vmem:[#allocation73_spill] sm:$0xff] %v2895_v28  ;;  %v2899_v30 = vld [vmem:[#allocation3 + $0x320] sm:$0xff]  ;;  %v2901_v31 = vld [vmem:[#allocation3 + $0x328] sm:$0xff] }
  0x72   :  { %3551 = vst [vmem:[#allocation74_spill] sm:$0xff] %v2897_v29  ;;  %3552 = vst [vmem:[#allocation75_spill] sm:$0xff] %v2899_v30  ;;  %v2903_v32 = vld [vmem:[#allocation3 + $0x330] sm:$0xff]  ;;  %v2905_v0 = vld [vmem:[#allocation3 + $0x338] sm:$0xff] }
  0x73   :  { %3553 = vst [vmem:[#allocation76_spill] sm:$0xff] %v2901_v31  ;;  %3554 = vst [vmem:[#allocation77_spill] sm:$0xff] %v2903_v32  ;;  %v2907_v36 = vld [vmem:[#allocation3 + $0x340] sm:$0xff]  ;;  %v2909_v35 = vld [vmem:[#allocation3 + $0x348] sm:$0xff] }
  0x74   :  { %3555 = vst [vmem:[#allocation78_spill] sm:$0xff] %v2905_v0  ;;  %3556 = vst [vmem:[#allocation79_spill] sm:$0xff] %v2907_v36  ;;  %v2911_v34 = vld [vmem:[#allocation3 + $0x350] sm:$0xff]  ;;  %v2913_v26 = vld [vmem:[#allocation3 + $0x358] sm:$0xff] }
  0x75   :  { %3557 = vst [vmem:[#allocation80_spill] sm:$0xff] %v2909_v35  ;;  %3558 = vst [vmem:[#allocation81_spill] sm:$0xff] %v2911_v34  ;;  %v2915_v27 = vld [vmem:[#allocation3 + $0x360] sm:$0xff]  ;;  %v2917_v28 = vld [vmem:[#allocation3 + $0x368] sm:$0xff] }
  0x76   :  { %3559 = vst [vmem:[#allocation82_spill] sm:$0xff] %v2913_v26  ;;  %3560 = vst [vmem:[#allocation83_spill] sm:$0xff] %v2915_v27  ;;  %v2919_v29 = vld [vmem:[#allocation3 + $0x370] sm:$0xff]  ;;  %v2921_v30 = vld [vmem:[#allocation3 + $0x378] sm:$0xff] }
  0x77   :  { %3561 = vst [vmem:[#allocation84_spill] sm:$0xff] %v2917_v28  ;;  %3562 = vst [vmem:[#allocation85_spill] sm:$0xff] %v2919_v29  ;;  %v2923_v31 = vld [vmem:[#allocation3 + $0x380] sm:$0xff]  ;;  %v2925_v32 = vld [vmem:[#allocation3 + $0x388] sm:$0xff] }
  0x78   :  { %3563 = vst [vmem:[#allocation86_spill] sm:$0xff] %v2921_v30  ;;  %3564 = vst [vmem:[#allocation87_spill] sm:$0xff] %v2923_v31  ;;  %v2927_v0 = vld [vmem:[#allocation3 + $0x390] sm:$0xff]  ;;  %v2929_v36 = vld [vmem:[#allocation3 + $0x398] sm:$0xff] }
  0x79   :  { %3565 = vst [vmem:[#allocation88_spill] sm:$0xff] %v2925_v32  ;;  %3566 = vst [vmem:[#allocation89_spill] sm:$0xff] %v2927_v0  ;;  %v2931_v35 = vld [vmem:[#allocation3 + $0x3a0] sm:$0xff]  ;;  %v2933_v34 = vld [vmem:[#allocation3 + $0x3a8] sm:$0xff] }
  0x7a   :  { %3567 = vst [vmem:[#allocation90_spill] sm:$0xff] %v2929_v36  ;;  %3568 = vst [vmem:[#allocation91_spill] sm:$0xff] %v2931_v35  ;;  %v2935_v26 = vld [vmem:[#allocation3 + $0x3b0] sm:$0xff]  ;;  %v2937_v27 = vld [vmem:[#allocation3 + $0x3b8] sm:$0xff] }
  0x7b   :  { %3569 = vst [vmem:[#allocation92_spill] sm:$0xff] %v2933_v34  ;;  %3570 = vst [vmem:[#allocation93_spill] sm:$0xff] %v2935_v26  ;;  %v2939_v28 = vld [vmem:[#allocation3 + $0x3c0] sm:$0xff]  ;;  %v2941_v29 = vld [vmem:[#allocation3 + $0x3c8] sm:$0xff] }
  0x7c   :  { %3571 = vst [vmem:[#allocation94_spill] sm:$0xff] %v2937_v27  ;;  %3572 = vst [vmem:[#allocation95_spill] sm:$0xff] %v2939_v28  ;;  %v2943_v30 = vld [vmem:[#allocation3 + $0x3d0] sm:$0xff]  ;;  %v2945_v31 = vld [vmem:[#allocation3 + $0x3d8] sm:$0xff] }
  0x7d   :  { %3573 = vst [vmem:[#allocation96_spill] sm:$0xff] %v2941_v29  ;;  %3574 = vst [vmem:[#allocation97_spill] sm:$0xff] %v2943_v30  ;;  %v2947_v32 = vld [vmem:[#allocation3 + $0x3e0] sm:$0xff]  ;;  %v2949_v0 = vld [vmem:[#allocation3 + $0x3e8] sm:$0xff] }
  0x7e   :  { %3575 = vst [vmem:[#allocation98_spill] sm:$0xff] %v2945_v31  ;;  %3576 = vst [vmem:[#allocation99_spill] sm:$0xff] %v2947_v32  ;;  %v2951_v36 = vld [vmem:[#allocation3 + $0x3f0] sm:$0xff]  ;;  %v2953_v35 = vld [vmem:[#allocation3 + $0x3f8] sm:$0xff] }
  0x7f   :  { %3577 = vst [vmem:[#allocation100_spill] sm:$0xff] %v2949_v0  ;;  %3578 = vst [vmem:[#allocation101_spill] sm:$0xff] %v2951_v36  ;;  %v2955_v34 = vld [vmem:[#allocation3 + $0x400] sm:$0xff]  ;;  %v2957_v26 = vld [vmem:[#allocation3 + $0x408] sm:$0xff] }
  0x80   :  { %3579 = vst [vmem:[#allocation102_spill] sm:$0xff] %v2953_v35  ;;  %3580 = vst [vmem:[#allocation103_spill] sm:$0xff] %v2955_v34  ;;  %v2959_v27 = vld [vmem:[#allocation3 + $0x410] sm:$0xff]  ;;  %v2961_v28 = vld [vmem:[#allocation3 + $0x418] sm:$0xff] }
  0x81   :  { %3581 = vst [vmem:[#allocation104_spill] sm:$0xff] %v2957_v26  ;;  %3582 = vst [vmem:[#allocation105_spill] sm:$0xff] %v2959_v27  ;;  %v2963_v29 = vld [vmem:[#allocation3 + $0x420] sm:$0xff]  ;;  %v2965_v30 = vld [vmem:[#allocation3 + $0x428] sm:$0xff] }
  0x82   :  { %3583 = vst [vmem:[#allocation106_spill] sm:$0xff] %v2961_v28  ;;  %3584 = vst [vmem:[#allocation107_spill] sm:$0xff] %v2963_v29  ;;  %v2967_v31 = vld [vmem:[#allocation3 + $0x430] sm:$0xff]  ;;  %v2969_v32 = vld [vmem:[#allocation3 + $0x438] sm:$0xff] }
  0x83   :  { %3585 = vst [vmem:[#allocation108_spill] sm:$0xff] %v2965_v30  ;;  %3586 = vst [vmem:[#allocation109_spill] sm:$0xff] %v2967_v31  ;;  %v2971_v0 = vld [vmem:[#allocation3 + $0x440] sm:$0xff]  ;;  %v2973_v36 = vld [vmem:[#allocation3 + $0x448] sm:$0xff] }
  0x84   :  { %3587 = vst [vmem:[#allocation110_spill] sm:$0xff] %v2969_v32  ;;  %3588 = vst [vmem:[#allocation111_spill] sm:$0xff] %v2971_v0  ;;  %v2975_v35 = vld [vmem:[#allocation3 + $0x450] sm:$0xff]  ;;  %v2977_v34 = vld [vmem:[#allocation3 + $0x458] sm:$0xff] }
  0x85   :  { %3589 = vst [vmem:[#allocation112_spill] sm:$0xff] %v2973_v36  ;;  %3590 = vst [vmem:[#allocation113_spill] sm:$0xff] %v2975_v35  ;;  %v2979_v26 = vld [vmem:[#allocation3 + $0x460] sm:$0xff]  ;;  %v2981_v27 = vld [vmem:[#allocation3 + $0x468] sm:$0xff] }
  0x86   :  { %3591 = vst [vmem:[#allocation114_spill] sm:$0xff] %v2977_v34  ;;  %3592 = vst [vmem:[#allocation115_spill] sm:$0xff] %v2979_v26  ;;  %v2983_v28 = vld [vmem:[#allocation3 + $0x470] sm:$0xff]  ;;  %v2985_v29 = vld [vmem:[#allocation3 + $0x478] sm:$0xff] }
  0x87   :  { %3593 = vst [vmem:[#allocation116_spill] sm:$0xff] %v2981_v27  ;;  %3594 = vst [vmem:[#allocation117_spill] sm:$0xff] %v2983_v28  ;;  %v2987_v30 = vld [vmem:[#allocation3 + $0x480] sm:$0xff]  ;;  %v2989_v31 = vld [vmem:[#allocation3 + $0x488] sm:$0xff] }
  0x88   :  { %3595 = vst [vmem:[#allocation118_spill] sm:$0xff] %v2985_v29  ;;  %3596 = vst [vmem:[#allocation119_spill] sm:$0xff] %v2987_v30  ;;  %v2991_v32 = vld [vmem:[#allocation3 + $0x490] sm:$0xff]  ;;  %v2993_v0 = vld [vmem:[#allocation3 + $0x498] sm:$0xff] }
  0x89   :  { %3597 = vst [vmem:[#allocation120_spill] sm:$0xff] %v2989_v31  ;;  %3598 = vst [vmem:[#allocation121_spill] sm:$0xff] %v2991_v32  ;;  %v2995_v36 = vld [vmem:[#allocation3 + $0x4a0] sm:$0xff]  ;;  %v2997_v35 = vld [vmem:[#allocation3 + $0x4a8] sm:$0xff] }
  0x8a   :  { %3599 = vst [vmem:[#allocation122_spill] sm:$0xff] %v2993_v0  ;;  %3600 = vst [vmem:[#allocation123_spill] sm:$0xff] %v2995_v36  ;;  %v2999_v34 = vld [vmem:[#allocation3 + $0x4b0] sm:$0xff]  ;;  %v3001_v26 = vld [vmem:[#allocation3 + $0x4b8] sm:$0xff] }
  0x8b   :  { %3601 = vst [vmem:[#allocation124_spill] sm:$0xff] %v2997_v35  ;;  %3602 = vst [vmem:[#allocation125_spill] sm:$0xff] %v2999_v34  ;;  %v3003_v27 = vld [vmem:[#allocation3 + $0x4c0] sm:$0xff]  ;;  %v3005_v28 = vld [vmem:[#allocation3 + $0x4c8] sm:$0xff] }
  0x8c   :  { %3603 = vst [vmem:[#allocation126_spill] sm:$0xff] %v3001_v26  ;;  %3604 = vst [vmem:[#allocation127_spill] sm:$0xff] %v3003_v27  ;;  %v3007_v29 = vld [vmem:[#allocation3 + $0x4d0] sm:$0xff]  ;;  %v3009_v30 = vld [vmem:[#allocation3 + $0x4d8] sm:$0xff] }
  0x8d   :  { %3605 = vst [vmem:[#allocation128_spill] sm:$0xff] %v3005_v28  ;;  %3606 = vst [vmem:[#allocation129_spill] sm:$0xff] %v3007_v29  ;;  %v3011_v31 = vld [vmem:[#allocation3 + $0x4e0] sm:$0xff]  ;;  %v3013_v32 = vld [vmem:[#allocation3 + $0x4e8] sm:$0xff] }
  0x8e   :  { %3607 = vst [vmem:[#allocation130_spill] sm:$0xff] %v3009_v30  ;;  %3608 = vst [vmem:[#allocation131_spill] sm:$0xff] %v3011_v31  ;;  %v3015_v0 = vld [vmem:[#allocation3 + $0x4f0] sm:$0xff]  ;;  %v3017_v36 = vld [vmem:[#allocation3 + $0x4f8] sm:$0xff] }
  0x8f   :  { %3609 = vst [vmem:[#allocation132_spill] sm:$0xff] %v3013_v32  ;;  %3610 = vst [vmem:[#allocation133_spill] sm:$0xff] %v3015_v0  ;;  %v3019_v35 = vld [vmem:[#allocation3 + $0x500] sm:$0xff]  ;;  %v3021_v34 = vld [vmem:[#allocation3 + $0x508] sm:$0xff] }
  0x90   :  { %3611 = vst [vmem:[#allocation134_spill] sm:$0xff] %v3017_v36  ;;  %3612 = vst [vmem:[#allocation135_spill] sm:$0xff] %v3019_v35  ;;  %v3023_v26 = vld [vmem:[#allocation3 + $0x510] sm:$0xff]  ;;  %v3025_v27 = vld [vmem:[#allocation3 + $0x518] sm:$0xff] }
  0x91   :  { %3613 = vst [vmem:[#allocation136_spill] sm:$0xff] %v3021_v34  ;;  %3614 = vst [vmem:[#allocation137_spill] sm:$0xff] %v3023_v26  ;;  %v3027_v28 = vld [vmem:[#allocation3 + $0x520] sm:$0xff]  ;;  %v3029_v29 = vld [vmem:[#allocation3 + $0x528] sm:$0xff] }
  0x92   :  { %3615 = vst [vmem:[#allocation138_spill] sm:$0xff] %v3025_v27  ;;  %3616 = vst [vmem:[#allocation139_spill] sm:$0xff] %v3027_v28  ;;  %v3031_v30 = vld [vmem:[#allocation3 + $0x530] sm:$0xff]  ;;  %v3033_v31 = vld [vmem:[#allocation3 + $0x538] sm:$0xff] }
  0x93   :  { %3617 = vst [vmem:[#allocation140_spill] sm:$0xff] %v3029_v29  ;;  %3618 = vst [vmem:[#allocation141_spill] sm:$0xff] %v3031_v30  ;;  %v3035_v32 = vld [vmem:[#allocation3 + $0x540] sm:$0xff]  ;;  %v3037_v0 = vld [vmem:[#allocation3 + $0x548] sm:$0xff] }
  0x94   :  { %3619 = vst [vmem:[#allocation142_spill] sm:$0xff] %v3033_v31  ;;  %3620 = vst [vmem:[#allocation143_spill] sm:$0xff] %v3035_v32  ;;  %v3039_v36 = vld [vmem:[#allocation3 + $0x550] sm:$0xff]  ;;  %v3041_v35 = vld [vmem:[#allocation3 + $0x558] sm:$0xff] }
  0x95   :  { %3621 = vst [vmem:[#allocation144_spill] sm:$0xff] %v3037_v0  ;;  %3622 = vst [vmem:[#allocation145_spill] sm:$0xff] %v3039_v36  ;;  %v3043_v34 = vld [vmem:[#allocation3 + $0x560] sm:$0xff]  ;;  %v3045_v26 = vld [vmem:[#allocation3 + $0x568] sm:$0xff] }
  0x96   :  { %3623 = vst [vmem:[#allocation146_spill] sm:$0xff] %v3041_v35  ;;  %3624 = vst [vmem:[#allocation147_spill] sm:$0xff] %v3043_v34  ;;  %v3047_v27 = vld [vmem:[#allocation3 + $0x570] sm:$0xff]  ;;  %v3049_v28 = vld [vmem:[#allocation3 + $0x578] sm:$0xff] }
  0x97   :  { %3625 = vst [vmem:[#allocation148_spill] sm:$0xff] %v3045_v26  ;;  %3626 = vst [vmem:[#allocation149_spill] sm:$0xff] %v3047_v27  ;;  %v3051_v29 = vld [vmem:[#allocation3 + $0x580] sm:$0xff]  ;;  %v3053_v30 = vld [vmem:[#allocation3 + $0x588] sm:$0xff] }
  0x98   :  { %3627 = vst [vmem:[#allocation150_spill] sm:$0xff] %v3049_v28  ;;  %3628 = vst [vmem:[#allocation151_spill] sm:$0xff] %v3051_v29  ;;  %v3055_v31 = vld [vmem:[#allocation3 + $0x590] sm:$0xff]  ;;  %v3057_v32 = vld [vmem:[#allocation3 + $0x598] sm:$0xff] }
  0x99   :  { %3629 = vst [vmem:[#allocation152_spill] sm:$0xff] %v3053_v30  ;;  %3630 = vst [vmem:[#allocation153_spill] sm:$0xff] %v3055_v31  ;;  %v3059_v0 = vld [vmem:[#allocation3 + $0x5a0] sm:$0xff]  ;;  %v3061_v36 = vld [vmem:[#allocation3 + $0x5a8] sm:$0xff] }
  0x9a   :  { %3631 = vst [vmem:[#allocation154_spill] sm:$0xff] %v3057_v32  ;;  %3632 = vst [vmem:[#allocation155_spill] sm:$0xff] %v3059_v0  ;;  %v3063_v35 = vld [vmem:[#allocation3 + $0x5b0] sm:$0xff]  ;;  %v3065_v34 = vld [vmem:[#allocation3 + $0x5b8] sm:$0xff] }
  0x9b   :  { %3633 = vst [vmem:[#allocation156_spill] sm:$0xff] %v3061_v36  ;;  %3634 = vst [vmem:[#allocation157_spill] sm:$0xff] %v3063_v35  ;;  %v3067_v26 = vld [vmem:[#allocation3 + $0x5c0] sm:$0xff]  ;;  %v3069_v27 = vld [vmem:[#allocation3 + $0x5c8] sm:$0xff] }
  0x9c   :  { %3635 = vst [vmem:[#allocation158_spill] sm:$0xff] %v3065_v34  ;;  %3636 = vst [vmem:[#allocation159_spill] sm:$0xff] %v3067_v26  ;;  %v3071_v28 = vld [vmem:[#allocation3 + $0x5d0] sm:$0xff]  ;;  %v3073_v29 = vld [vmem:[#allocation3 + $0x5d8] sm:$0xff] }
  0x9d   :  { %3637 = vst [vmem:[#allocation160_spill] sm:$0xff] %v3069_v27  ;;  %3638 = vst [vmem:[#allocation161_spill] sm:$0xff] %v3071_v28  ;;  %v3075_v30 = vld [vmem:[#allocation3 + $0x5e0] sm:$0xff]  ;;  %v3077_v31 = vld [vmem:[#allocation3 + $0x5e8] sm:$0xff] }
  0x9e   :  { %3639 = vst [vmem:[#allocation162_spill] sm:$0xff] %v3073_v29  ;;  %3640 = vst [vmem:[#allocation163_spill] sm:$0xff] %v3075_v30  ;;  %v3079_v32 = vld [vmem:[#allocation3 + $0x5f0] sm:$0xff]  ;;  %v3081_v0 = vld [vmem:[#allocation3 + $0x5f8] sm:$0xff] }
  0x9f   :  { %3641 = vst [vmem:[#allocation164_spill] sm:$0xff] %v3077_v31  ;;  %3642 = vst [vmem:[#allocation165_spill] sm:$0xff] %v3079_v32  ;;  %v3083_v36 = vld [vmem:[#allocation3 + $0x600] sm:$0xff]  ;;  %v3085_v35 = vld [vmem:[#allocation3 + $0x608] sm:$0xff] }
  0xa0   :  { %3643 = vst [vmem:[#allocation166_spill] sm:$0xff] %v3081_v0  ;;  %3644 = vst [vmem:[#allocation167_spill] sm:$0xff] %v3083_v36  ;;  %v3087_v34 = vld [vmem:[#allocation3 + $0x610] sm:$0xff]  ;;  %v3089_v26 = vld [vmem:[#allocation3 + $0x618] sm:$0xff] }
  0xa1   :  { %3645 = vst [vmem:[#allocation168_spill] sm:$0xff] %v3085_v35  ;;  %3646 = vst [vmem:[#allocation169_spill] sm:$0xff] %v3087_v34  ;;  %v3091_v27 = vld [vmem:[#allocation3 + $0x620] sm:$0xff]  ;;  %v3093_v28 = vld [vmem:[#allocation3 + $0x628] sm:$0xff] }
  0xa2   :  { %3647 = vst [vmem:[#allocation170_spill] sm:$0xff] %v3089_v26  ;;  %3648 = vst [vmem:[#allocation171_spill] sm:$0xff] %v3091_v27  ;;  %v3095_v29 = vld [vmem:[#allocation3 + $0x630] sm:$0xff]  ;;  %v3097_v30 = vld [vmem:[#allocation3 + $0x638] sm:$0xff] }
  0xa3   :  { %3649 = vst [vmem:[#allocation172_spill] sm:$0xff] %v3093_v28  ;;  %3650 = vst [vmem:[#allocation173_spill] sm:$0xff] %v3095_v29  ;;  %v3099_v31 = vld [vmem:[#allocation3 + $0x640] sm:$0xff]  ;;  %v3101_v32 = vld [vmem:[#allocation3 + $0x648] sm:$0xff] }
  0xa4   :  { %3651 = vst [vmem:[#allocation174_spill] sm:$0xff] %v3097_v30  ;;  %3652 = vst [vmem:[#allocation175_spill] sm:$0xff] %v3099_v31  ;;  %v3103_v0 = vld [vmem:[#allocation3 + $0x650] sm:$0xff]  ;;  %v3105_v36 = vld [vmem:[#allocation3 + $0x658] sm:$0xff] }
  0xa5   :  { %3653 = vst [vmem:[#allocation176_spill] sm:$0xff] %v3101_v32  ;;  %3654 = vst [vmem:[#allocation177_spill] sm:$0xff] %v3103_v0  ;;  %v3107_v35 = vld [vmem:[#allocation3 + $0x660] sm:$0xff]  ;;  %v3109_v34 = vld [vmem:[#allocation3 + $0x668] sm:$0xff] }
  0xa6   :  { %3655 = vst [vmem:[#allocation178_spill] sm:$0xff] %v3105_v36  ;;  %3656 = vst [vmem:[#allocation179_spill] sm:$0xff] %v3107_v35  ;;  %v3111_v26 = vld [vmem:[#allocation3 + $0x670] sm:$0xff]  ;;  %v3113_v27 = vld [vmem:[#allocation3 + $0x678] sm:$0xff] }
  0xa7   :  { %3657 = vst [vmem:[#allocation180_spill] sm:$0xff] %v3109_v34  ;;  %3658 = vst [vmem:[#allocation181_spill] sm:$0xff] %v3111_v26  ;;  %v3115_v28 = vld [vmem:[#allocation3 + $0x680] sm:$0xff]  ;;  %v3117_v29 = vld [vmem:[#allocation3 + $0x688] sm:$0xff] }
  0xa8   :  { %3659 = vst [vmem:[#allocation182_spill] sm:$0xff] %v3113_v27  ;;  %3660 = vst [vmem:[#allocation183_spill] sm:$0xff] %v3115_v28  ;;  %v3119_v30 = vld [vmem:[#allocation3 + $0x690] sm:$0xff]  ;;  %v3121_v31 = vld [vmem:[#allocation3 + $0x698] sm:$0xff] }
  0xa9   :  { %3661 = vst [vmem:[#allocation184_spill] sm:$0xff] %v3117_v29  ;;  %3662 = vst [vmem:[#allocation185_spill] sm:$0xff] %v3119_v30  ;;  %v3123_v32 = vld [vmem:[#allocation3 + $0x6a0] sm:$0xff]  ;;  %v3125_v0 = vld [vmem:[#allocation3 + $0x6a8] sm:$0xff] }
  0xaa   :  { %3663 = vst [vmem:[#allocation186_spill] sm:$0xff] %v3121_v31  ;;  %3664 = vst [vmem:[#allocation187_spill] sm:$0xff] %v3123_v32  ;;  %v3127_v36 = vld [vmem:[#allocation3 + $0x6b0] sm:$0xff]  ;;  %v3129_v35 = vld [vmem:[#allocation3 + $0x6b8] sm:$0xff] }
  0xab   :  { %3665 = vst [vmem:[#allocation188_spill] sm:$0xff] %v3125_v0  ;;  %3666 = vst [vmem:[#allocation189_spill] sm:$0xff] %v3127_v36  ;;  %v3131_v34 = vld [vmem:[#allocation3 + $0x6c0] sm:$0xff]  ;;  %v3133_v26 = vld [vmem:[#allocation3 + $0x6c8] sm:$0xff] }
  0xac   :  { %3667 = vst [vmem:[#allocation190_spill] sm:$0xff] %v3129_v35  ;;  %3668 = vst [vmem:[#allocation191_spill] sm:$0xff] %v3131_v34  ;;  %v3135_v27 = vld [vmem:[#allocation3 + $0x6d0] sm:$0xff]  ;;  %v3137_v28 = vld [vmem:[#allocation3 + $0x6d8] sm:$0xff] }
  0xad   :  { %3669 = vst [vmem:[#allocation192_spill] sm:$0xff] %v3133_v26  ;;  %3670 = vst [vmem:[#allocation193_spill] sm:$0xff] %v3135_v27  ;;  %v3139_v29 = vld [vmem:[#allocation3 + $0x6e0] sm:$0xff]  ;;  %v3141_v30 = vld [vmem:[#allocation3 + $0x6e8] sm:$0xff] }
  0xae   :  { %3671 = vst [vmem:[#allocation194_spill] sm:$0xff] %v3137_v28  ;;  %3672 = vst [vmem:[#allocation195_spill] sm:$0xff] %v3139_v29  ;;  %v3143_v31 = vld [vmem:[#allocation3 + $0x6f0] sm:$0xff]  ;;  %v3145_v32 = vld [vmem:[#allocation3 + $0x6f8] sm:$0xff] }
  0xaf   :  { %3673 = vst [vmem:[#allocation196_spill] sm:$0xff] %v3141_v30  ;;  %3674 = vst [vmem:[#allocation197_spill] sm:$0xff] %v3143_v31 }
  0xb0   :  { %3675 = vst [vmem:[#allocation198_spill] sm:$0xff] %v3145_v32 }
  0xb1   :  { %2592 = dma.done.wait [#allocation4 + $0x1], 28672 }
  0xb2   :  { %2593 = vsyncadd [#allocation4 + $0x1], 4294938624  ;;  %478 = sst [smem:[#allocation14]] %s2598_s9  ;;  %s462_s4 = scalar_lea.hbm %s3490_s1, 57344 }
  0xb3   :  { %480 = sst [smem:[#allocation14 + $0x1]] %s2598_s9  ;;  %s2611_s5 = smov [#allocation13]  }
  0xb4   :  { %482 = sst [smem:[#allocation14 + $0x2]] %s2599_s10 }
  0xb5   :  { %484 = sst [smem:[#allocation14 + $0x3]] %s2600_s11 }
  0xb6   :  { %486 = sst [smem:[#allocation14 + $0x4]] %s2601_s12 }
  0xb7   :  { %488 = sst [smem:[#allocation14 + $0x5]] %s2602_s2 }
  0xb8   :  { %490 = sst [smem:[#allocation14 + $0x6]] %s2603_s14 }
  0xb9   :  { %492 = sst [smem:[#allocation14 + $0x7]] %s2600_s11 }
  0xba   :  { %494 = sst [smem:[#allocation14 + $0x8]] %s2599_s10 }
  0xbb   :  { %496 = dma.general %s462_s4, 28672, %s50_s17, %s2605_s18, %s2611_s5, [#allocation14], %s2663_s15, 0  }
  0xbc   :  { %v502_v31 = vld [vmem:[#allocation3 + $0x708] sm:$0xff]  ;;  %v504_v29 = vld [vmem:[#allocation3 + $0x718] sm:$0xff]  ;;  %v501_v32 = vld [vmem:[#allocation3 + $0x700] sm:$0xff] }
  0xbd   :  { %750 = vmatprep.subr.bf16.mxu0 %v502_v31  ;;  %914 = vmatprep.subr.bf16.mxu1 %v504_v29  ;;  %v503_v30 = vld [vmem:[#allocation3 + $0x710] sm:$0xff]  ;;  %v506_v27 = vld [vmem:[#allocation3 + $0x728] sm:$0xff]  ;;  %v508_v34 = vld [vmem:[#allocation3 + $0x738] sm:$0xff] }
  0xbe   :  { %751 = vmatpush1.bf16.msra.mxu0 %v501_v32  ;;  %915 = vmatpush1.bf16.msra.mxu1 %v503_v30  ;;  %v505_v28 = vld [vmem:[#allocation3 + $0x720] sm:$0xff]  ;;  %v507_v26 = vld [vmem:[#allocation3 + $0x730] sm:$0xff]  ;;  %v510_v36 = vld [vmem:[#allocation3 + $0x748] sm:$0xff] }
  0xbf   :  { %752 = vmatprep.subr.bf16.mxu0 %v506_v27  ;;  %916 = vmatprep.subr.bf16.mxu1 %v508_v34  ;;  %v512_v35 = vld [vmem:[#allocation3 + $0x758] sm:$0xff]  ;;  %v509_v0 = vld [vmem:[#allocation3 + $0x740] sm:$0xff]  ;;  %v511_v24 = vld [vmem:[#allocation3 + $0x750] sm:$0xff] }
  0xc0   :  { %v514_v22 = vld [vmem:[#allocation3 + $0x768] sm:$0xff]  ;;  %v516_v31 = vld [vmem:[#allocation3 + $0x778] sm:$0xff]  ;;  %v513_v29 = vld [vmem:[#allocation3 + $0x760] sm:$0xff] }
  0xc1   :  { %v515_v30 = vld [vmem:[#allocation3 + $0x770] sm:$0xff]  ;;  %v518_v27 = vld [vmem:[#allocation3 + $0x788] sm:$0xff]  ;;  %v520_v34 = vld [vmem:[#allocation3 + $0x798] sm:$0xff] }
  0xc2   :  { %753 = vmatpush1.bf16.msra.mxu0 %v505_v28  ;;  %917 = vmatpush1.bf16.msra.mxu1 %v507_v26  ;;  %v517_v28 = vld [vmem:[#allocation3 + $0x780] sm:$0xff]  ;;  %v519_v26 = vld [vmem:[#allocation3 + $0x790] sm:$0xff]  ;;  %v528_v32 = vld [vmem:[#allocation3 + $0x7d8] sm:$0xff] }
  0xc3   :  { %754 = vmatprep.subr.bf16.mxu0 %v510_v36  ;;  %918 = vmatprep.subr.bf16.mxu1 %v512_v35  ;;  %v522_v36 = vld [vmem:[#allocation3 + $0x7a8] sm:$0xff]  ;;  %v524_v35 = vld [vmem:[#allocation3 + $0x7b8] sm:$0xff]  ;;  %v3169_v23 = vld [vmem:[#allocation2 + $0x24] sm:$0xff] }
  0xc4   :  { %v540_v25 = vld [vmem:[#allocation3 + $0x838] sm:$0xff] }
  0xc6   :  { %755 = vmatpush1.bf16.msra.mxu0 %v509_v0  ;;  %919 = vmatpush1.bf16.msra.mxu1 %v511_v24  ;;  %v521_v0 = vld [vmem:[#allocation3 + $0x7a0] sm:$0xff]  ;;  %v523_v24 = vld [vmem:[#allocation3 + $0x7b0] sm:$0xff] }
  0xc7   :  { %756 = vmatprep.subr.bf16.mxu0 %v514_v22  ;;  %920 = vmatprep.subr.bf16.mxu1 %v516_v31  ;;  %v526_v22 = vld [vmem:[#allocation3 + $0x7c8] sm:$0xff] }
  0xc8   :  { %v3163_v31 = vld [vmem:[#allocation2 + $0x1c] sm:$0xff] }
  0xca   :  { %757 = vmatpush1.bf16.msra.mxu0 %v513_v29  ;;  %921 = vmatpush1.bf16.msra.mxu1 %v515_v30  ;;  %v2376_v29 = vcombine.high %v3163_v31, %v3163_v31  ;;  %v525_v30 = vld [vmem:[#allocation3 + $0x7c0] sm:$0xff] }
  0xcb   :  { %758 = vmatprep.subr.bf16.mxu0 %v518_v27  ;;  %922 = vmatprep.subr.bf16.mxu1 %v520_v34  ;;  %v527_v27 = vld [vmem:[#allocation3 + $0x7d0] sm:$0xff]  ;;  %v530_v34 = vld [vmem:[#allocation3 + $0x7e8] sm:$0xff] }
  0xcc   :  { %782 = vmatprep.mubr.bf16.mxu0 %v2376_v29  ;;  %946 = vmatprep.mubr.bf16.mxu1 %v2376_v29  ;;  %v537_v29 = vld [vmem:[#allocation3 + $0x820] sm:$0xff] }
  0xce   :  { %759 = vmatpush1.bf16.msra.mxu0 %v517_v28  ;;  %923 = vmatpush1.bf16.msra.mxu1 %v519_v26  ;;  %v532_v28 = vld [vmem:[#allocation3 + $0x7f8] sm:$0xff]  ;;  %v529_v26 = vld [vmem:[#allocation3 + $0x7e0] sm:$0xff] }
  0xcf   :  { %760 = vmatprep.subr.bf16.mxu0 %v522_v36  ;;  %924 = vmatprep.subr.bf16.mxu1 %v524_v35  ;;  %v531_v36 = vld [vmem:[#allocation3 + $0x7f0] sm:$0xff]  ;;  %v534_v35 = vld [vmem:[#allocation3 + $0x808] sm:$0xff] }
  0xd2   :  { %761 = vmatpush1.bf16.msra.mxu0 %v521_v0  ;;  %925 = vmatpush1.bf16.msra.mxu1 %v523_v24  ;;  %v536_v0 = vld [vmem:[#allocation3 + $0x818] sm:$0xff]  ;;  %v533_v24 = vld [vmem:[#allocation3 + $0x800] sm:$0xff] }
  0xd3   :  { %762 = vmatprep.subr.bf16.mxu0 %v526_v22  ;;  %926 = vmatprep.subr.bf16.mxu1 %v528_v32  ;;  %v535_v22 = vld [vmem:[#allocation3 + $0x810] sm:$0xff]  ;;  %v538_v32 = vld [vmem:[#allocation3 + $0x828] sm:$0xff] }
  0xd6   :  { %763 = vmatpush1.bf16.msra.mxu0 %v525_v30  ;;  %927 = vmatpush1.bf16.msra.mxu1 %v527_v27  ;;  %v539_v30 = vld [vmem:[#allocation3 + $0x830] sm:$0xff]  ;;  %v542_v27 = vld [vmem:[#allocation3 + $0x848] sm:$0xff] }
  0xd7   :  { %764 = vmatprep.subr.bf16.mxu0 %v530_v34  ;;  %928 = vmatprep.subr.bf16.mxu1 %v532_v28  ;;  %v544_v34 = vld [vmem:[#allocation3 + $0x858] sm:$0xff]  ;;  %v541_v28 = vld [vmem:[#allocation3 + $0x840] sm:$0xff] }
  0xda   :  { %765 = vmatpush1.bf16.msra.mxu0 %v529_v26  ;;  %929 = vmatpush1.bf16.msra.mxu1 %v531_v36  ;;  %v543_v26 = vld [vmem:[#allocation3 + $0x850] sm:$0xff]  ;;  %v546_v36 = vld [vmem:[#allocation3 + $0x868] sm:$0xff] }
  0xdb   :  { %766 = vmatprep.subr.bf16.mxu0 %v534_v35  ;;  %930 = vmatprep.subr.bf16.mxu1 %v536_v0  ;;  %v548_v35 = vld [vmem:[#allocation3 + $0x878] sm:$0xff]  ;;  %v545_v0 = vld [vmem:[#allocation3 + $0x860] sm:$0xff] }
  0xde   :  { %767 = vmatpush1.bf16.msra.mxu0 %v533_v24  ;;  %931 = vmatpush1.bf16.msra.mxu1 %v535_v22  ;;  %v547_v24 = vld [vmem:[#allocation3 + $0x870] sm:$0xff]  ;;  %v550_v22 = vld [vmem:[#allocation3 + $0x888] sm:$0xff] }
  0xdf   :  { %768 = vmatprep.subr.bf16.mxu0 %v538_v32  ;;  %932 = vmatprep.subr.bf16.mxu1 %v540_v25  ;;  %v552_v25 = vld [vmem:[#allocation3 + $0x898] sm:$0xff]  ;;  %v549_v32 = vld [vmem:[#allocation3 + $0x880] sm:$0xff] }
  0xe2   :  { %769 = vmatpush1.bf16.msra.mxu0 %v537_v29  ;;  %933 = vmatpush1.bf16.msra.mxu1 %v539_v30  ;;  %v551_v29 = vld [vmem:[#allocation3 + $0x890] sm:$0xff]  ;;  %v554_v30 = vld [vmem:[#allocation3 + $0x8a8] sm:$0xff] }
  0xe3   :  { %770 = vmatprep.subr.bf16.mxu0 %v542_v27  ;;  %934 = vmatprep.subr.bf16.mxu1 %v544_v34  ;;  %v556_v27 = vld [vmem:[#allocation3 + $0x8b8] sm:$0xff]  ;;  %v553_v34 = vld [vmem:[#allocation3 + $0x8a0] sm:$0xff] }
  0xe6   :  { %771 = vmatpush1.bf16.msra.mxu0 %v541_v28  ;;  %935 = vmatpush1.bf16.msra.mxu1 %v543_v26  ;;  %v555_v28 = vld [vmem:[#allocation3 + $0x8b0] sm:$0xff]  ;;  %v558_v26 = vld [vmem:[#allocation3 + $0x8c8] sm:$0xff] }
  0xe7   :  { %772 = vmatprep.subr.bf16.mxu0 %v546_v36  ;;  %936 = vmatprep.subr.bf16.mxu1 %v548_v35  ;;  %v560_v36 = vld [vmem:[#allocation3 + $0x8d8] sm:$0xff]  ;;  %v557_v35 = vld [vmem:[#allocation3 + $0x8c0] sm:$0xff] }
  0xea   :  { %773 = vmatpush1.bf16.msra.mxu0 %v545_v0  ;;  %937 = vmatpush1.bf16.msra.mxu1 %v547_v24  ;;  %v559_v0 = vld [vmem:[#allocation3 + $0x8d0] sm:$0xff]  ;;  %v562_v24 = vld [vmem:[#allocation3 + $0x8e8] sm:$0xff] }
  0xeb   :  { %774 = vmatprep.subr.bf16.mxu0 %v550_v22  ;;  %938 = vmatprep.subr.bf16.mxu1 %v552_v25  ;;  %v564_v22 = vld [vmem:[#allocation3 + $0x8f8] sm:$0xff]  ;;  %v561_v25 = vld [vmem:[#allocation3 + $0x8e0] sm:$0xff] }
  0xee   :  { %775 = vmatpush1.bf16.msra.mxu0 %v549_v32  ;;  %939 = vmatpush1.bf16.msra.mxu1 %v551_v29  ;;  %v563_v32 = vld [vmem:[#allocation3 + $0x8f0] sm:$0xff]  ;;  %v566_v29 = vld [vmem:[#allocation3 + $0x908] sm:$0xff] }
  0xef   :  { %776 = vmatprep.subr.bf16.mxu0 %v554_v30  ;;  %940 = vmatprep.subr.bf16.mxu1 %v556_v27  ;;  %v568_v30 = vld [vmem:[#allocation3 + $0x918] sm:$0xff]  ;;  %v2375_v27 = vcombine.low %v3163_v31, %v3163_v31  ;;  %v569_v31 = vld [vmem:[#allocation3 + $0x920] sm:$0xff] }
  0xf2   :  { %777 = vmatpush1.bf16.msra.mxu0 %v553_v34  ;;  %941 = vmatpush1.bf16.msra.mxu1 %v555_v28  ;;  %v565_v34 = vld [vmem:[#allocation3 + $0x900] sm:$0xff]  ;;  %v567_v28 = vld [vmem:[#allocation3 + $0x910] sm:$0xff] }
  0xf3   :  { %778 = vmatprep.subr.bf16.mxu0 %v558_v26  ;;  %942 = vmatprep.subr.bf16.mxu1 %v560_v36  ;;  %v570_v26 = vld [vmem:[#allocation3 + $0x928] sm:$0xff]  ;;  %v572_v36 = vld [vmem:[#allocation3 + $0x938] sm:$0xff] }
  0xf6   :  { %779 = vmatpush1.bf16.msra.mxu0 %v557_v35  ;;  %943 = vmatpush1.bf16.msra.mxu1 %v559_v0  ;;  %v2378_v35 = vcombine.high %v3169_v23, %v3169_v23  ;;  %v571_v0 = vld [vmem:[#allocation3 + $0x930] sm:$0xff] }
  0xf7   :  { %780 = vmatprep.subr.bf16.mxu0 %v562_v24  ;;  %944 = vmatprep.subr.bf16.mxu1 %v564_v22  ;;  %v574_v24 = vld [vmem:[#allocation3 + $0x948] sm:$0xff]  ;;  %v576_v22 = vld [vmem:[#allocation3 + $0x958] sm:$0xff] }
  0xfa   :  { %781 = vmatpush1.bf16.msra.mxu0 %v561_v25  ;;  %945 = vmatpush1.bf16.msra.mxu1 %v563_v32  ;;  %v573_v25 = vld [vmem:[#allocation3 + $0x940] sm:$0xff]  ;;  %v575_v32 = vld [vmem:[#allocation3 + $0x950] sm:$0xff] }
  0xfb   :  { %791 = vmatprep.subr.bf16.mxu0 %v566_v29  ;;  %955 = vmatprep.subr.bf16.mxu1 %v568_v30  ;;  %v578_v29 = vld [vmem:[#allocation3 + $0x968] sm:$0xff]  ;;  %v580_v30 = vld [vmem:[#allocation3 + $0x978] sm:$0xff] }
  0xfd   :  { %783 = vmatmul.mubr.bf16.vlgmr.msra.gmra.mrb[0].mxu0 %v2375_v27  ;;  %947 = vmatmul.mubr.bf16.vlgmr.msra.gmra.mrb[0].mxu1 %v2375_v27  ;;  %v577_v27 = vld [vmem:[#allocation3 + $0x960] sm:$0xff] }
  0xfe   :  { %792 = vmatpush1.bf16.msra.mxu0 %v565_v34  ;;  %956 = vmatpush1.bf16.msra.mxu1 %v567_v28  ;;  %v579_v34 = vld [vmem:[#allocation3 + $0x970] sm:$0xff]  ;;  %v582_v28 = vld [vmem:[#allocation3 + $0x988] sm:$0xff] }
  0xff   :  { %793 = vmatprep.subr.bf16.mxu0 %v570_v26  ;;  %957 = vmatprep.subr.bf16.mxu1 %v572_v36  ;;  %v584_v26 = vld [vmem:[#allocation3 + $0x998] sm:$0xff]  ;;  %v581_v36 = vld [vmem:[#allocation3 + $0x980] sm:$0xff] }
 0x100   :  { %823 = vmatprep.mubr.bf16.mxu0 %v2378_v35  ;;  %987 = vmatprep.mubr.bf16.mxu1 %v2378_v35  ;;  %v583_v35 = vld [vmem:[#allocation3 + $0x990] sm:$0xff] }
 0x102   :  { %794 = vmatpush1.bf16.msra.mxu0 %v569_v31  ;;  %958 = vmatpush1.bf16.msra.mxu1 %v571_v0  ;;  %v586_v31 = vld [vmem:[#allocation3 + $0x9a8] sm:$0xff]  ;;  %v588_v0 = vld [vmem:[#allocation3 + $0x9b8] sm:$0xff] }
 0x103   :  { %795 = vmatprep.subr.bf16.mxu0 %v574_v24  ;;  %959 = vmatprep.subr.bf16.mxu1 %v576_v22  ;;  %v585_v24 = vld [vmem:[#allocation3 + $0x9a0] sm:$0xff]  ;;  %v587_v22 = vld [vmem:[#allocation3 + $0x9b0] sm:$0xff] }
 0x106   :  { %796 = vmatpush1.bf16.msra.mxu0 %v573_v25  ;;  %960 = vmatpush1.bf16.msra.mxu1 %v575_v32  ;;  %v590_v25 = vld [vmem:[#allocation3 + $0x9c8] sm:$0xff]  ;;  %v592_v32 = vld [vmem:[#allocation3 + $0x9d8] sm:$0xff] }
 0x107   :  { %797 = vmatprep.subr.bf16.mxu0 %v578_v29  ;;  %961 = vmatprep.subr.bf16.mxu1 %v580_v30  ;;  %v589_v29 = vld [vmem:[#allocation3 + $0x9c0] sm:$0xff]  ;;  %v591_v30 = vld [vmem:[#allocation3 + $0x9d0] sm:$0xff] }
 0x10a   :  { %798 = vmatpush1.bf16.msra.mxu0 %v577_v27  ;;  %962 = vmatpush1.bf16.msra.mxu1 %v579_v34  ;;  %v594_v27 = vld [vmem:[#allocation3 + $0x9e8] sm:$0xff]  ;;  %v596_v34 = vld [vmem:[#allocation3 + $0x9f8] sm:$0xff] }
 0x10b   :  { %799 = vmatprep.subr.bf16.mxu0 %v582_v28  ;;  %963 = vmatprep.subr.bf16.mxu1 %v584_v26  ;;  %v593_v28 = vld [vmem:[#allocation3 + $0x9e0] sm:$0xff]  ;;  %v595_v26 = vld [vmem:[#allocation3 + $0x9f0] sm:$0xff] }
 0x10e   :  { %800 = vmatpush1.bf16.msra.mxu0 %v581_v36  ;;  %964 = vmatpush1.bf16.msra.mxu1 %v583_v35  ;;  %v598_v36 = vld [vmem:[#allocation3 + $0xa08] sm:$0xff]  ;;  %v600_v35 = vld [vmem:[#allocation3 + $0xa18] sm:$0xff] }
 0x10f   :  { %801 = vmatprep.subr.bf16.mxu0 %v586_v31  ;;  %965 = vmatprep.subr.bf16.mxu1 %v588_v0  ;;  %v597_v31 = vld [vmem:[#allocation3 + $0xa00] sm:$0xff]  ;;  %v599_v0 = vld [vmem:[#allocation3 + $0xa10] sm:$0xff] }
 0x112   :  { %802 = vmatpush1.bf16.msra.mxu0 %v585_v24  ;;  %966 = vmatpush1.bf16.msra.mxu1 %v587_v22  ;;  %v602_v24 = vld [vmem:[#allocation3 + $0xa28] sm:$0xff]  ;;  %v604_v22 = vld [vmem:[#allocation3 + $0xa38] sm:$0xff] }
 0x113   :  { %803 = vmatprep.subr.bf16.mxu0 %v590_v25  ;;  %967 = vmatprep.subr.bf16.mxu1 %v592_v32  ;;  %v601_v25 = vld [vmem:[#allocation3 + $0xa20] sm:$0xff]  ;;  %v603_v32 = vld [vmem:[#allocation3 + $0xa30] sm:$0xff] }
 0x116   :  { %804 = vmatpush1.bf16.msra.mxu0 %v589_v29  ;;  %968 = vmatpush1.bf16.msra.mxu1 %v591_v30  ;;  %v606_v29 = vld [vmem:[#allocation3 + $0xa48] sm:$0xff]  ;;  %v608_v30 = vld [vmem:[#allocation3 + $0xa58] sm:$0xff] }
 0x117   :  { %805 = vmatprep.subr.bf16.mxu0 %v594_v27  ;;  %969 = vmatprep.subr.bf16.mxu1 %v596_v34  ;;  %v605_v27 = vld [vmem:[#allocation3 + $0xa40] sm:$0xff]  ;;  %v607_v34 = vld [vmem:[#allocation3 + $0xa50] sm:$0xff] }
 0x11a   :  { %806 = vmatpush1.bf16.msra.mxu0 %v593_v28  ;;  %970 = vmatpush1.bf16.msra.mxu1 %v595_v26  ;;  %v610_v28 = vld [vmem:[#allocation3 + $0xa68] sm:$0xff]  ;;  %v612_v26 = vld [vmem:[#allocation3 + $0xa78] sm:$0xff] }
 0x11b   :  { %807 = vmatprep.subr.bf16.mxu0 %v598_v36  ;;  %971 = vmatprep.subr.bf16.mxu1 %v600_v35  ;;  %v609_v36 = vld [vmem:[#allocation3 + $0xa60] sm:$0xff]  ;;  %v611_v35 = vld [vmem:[#allocation3 + $0xa70] sm:$0xff] }
 0x11e   :  { %808 = vmatpush1.bf16.msra.mxu0 %v597_v31  ;;  %972 = vmatpush1.bf16.msra.mxu1 %v599_v0  ;;  %v614_v31 = vld [vmem:[#allocation3 + $0xa88] sm:$0xff]  ;;  %v616_v0 = vld [vmem:[#allocation3 + $0xa98] sm:$0xff] }
 0x11f   :  { %809 = vmatprep.subr.bf16.mxu0 %v602_v24  ;;  %973 = vmatprep.subr.bf16.mxu1 %v604_v22  ;;  %v613_v24 = vld [vmem:[#allocation3 + $0xa80] sm:$0xff]  ;;  %v615_v22 = vld [vmem:[#allocation3 + $0xa90] sm:$0xff] }
 0x122   :  { %810 = vmatpush1.bf16.msra.mxu0 %v601_v25  ;;  %974 = vmatpush1.bf16.msra.mxu1 %v603_v32  ;;  %v618_v25 = vld [vmem:[#allocation3 + $0xaa8] sm:$0xff]  ;;  %v620_v32 = vld [vmem:[#allocation3 + $0xab8] sm:$0xff] }
 0x123   :  { %811 = vmatprep.subr.bf16.mxu0 %v606_v29  ;;  %975 = vmatprep.subr.bf16.mxu1 %v608_v30  ;;  %v617_v29 = vld [vmem:[#allocation3 + $0xaa0] sm:$0xff]  ;;  %v619_v30 = vld [vmem:[#allocation3 + $0xab0] sm:$0xff] }
 0x126   :  { %812 = vmatpush1.bf16.msra.mxu0 %v605_v27  ;;  %976 = vmatpush1.bf16.msra.mxu1 %v607_v34  ;;  %v622_v27 = vld [vmem:[#allocation3 + $0xac8] sm:$0xff]  ;;  %v624_v34 = vld [vmem:[#allocation3 + $0xad8] sm:$0xff] }
 0x127   :  { %813 = vmatprep.subr.bf16.mxu0 %v610_v28  ;;  %977 = vmatprep.subr.bf16.mxu1 %v612_v26  ;;  %v621_v28 = vld [vmem:[#allocation3 + $0xac0] sm:$0xff]  ;;  %v623_v26 = vld [vmem:[#allocation3 + $0xad0] sm:$0xff] }
 0x12a   :  { %814 = vmatpush1.bf16.msra.mxu0 %v609_v36  ;;  %978 = vmatpush1.bf16.msra.mxu1 %v611_v35  ;;  %v626_v36 = vld [vmem:[#allocation3 + $0xae8] sm:$0xff]  ;;  %v628_v35 = vld [vmem:[#allocation3 + $0xaf8] sm:$0xff] }
 0x12b   :  { %815 = vmatprep.subr.bf16.mxu0 %v614_v31  ;;  %979 = vmatprep.subr.bf16.mxu1 %v616_v0  ;;  %v625_v31 = vld [vmem:[#allocation3 + $0xae0] sm:$0xff]  ;;  %v627_v0 = vld [vmem:[#allocation3 + $0xaf0] sm:$0xff] }
 0x12e   :  { %816 = vmatpush1.bf16.msra.mxu0 %v613_v24  ;;  %980 = vmatpush1.bf16.msra.mxu1 %v615_v22  ;;  %v630_v24 = vld [vmem:[#allocation3 + $0xb08] sm:$0xff]  ;;  %v632_v22 = vld [vmem:[#allocation3 + $0xb18] sm:$0xff] }
 0x12f   :  { %817 = vmatprep.subr.bf16.mxu0 %v618_v25  ;;  %981 = vmatprep.subr.bf16.mxu1 %v620_v32  ;;  %v2377_v25 = vcombine.low %v3169_v23, %v3169_v23  ;;  %v3175_v32 = vld [vmem:[#allocation2 + $0x2c] sm:$0xff]  ;;  %v633_v23 = vld [vmem:[#allocation3 + $0xb20] sm:$0xff] }
 0x132   :  { %818 = vmatpush1.bf16.msra.mxu0 %v617_v29  ;;  %982 = vmatpush1.bf16.msra.mxu1 %v619_v30  ;;  %v629_v29 = vld [vmem:[#allocation3 + $0xb00] sm:$0xff]  ;;  %v631_v30 = vld [vmem:[#allocation3 + $0xb10] sm:$0xff] }
 0x133   :  { %819 = vmatprep.subr.bf16.mxu0 %v622_v27  ;;  %983 = vmatprep.subr.bf16.mxu1 %v624_v34  ;;  %v634_v27 = vld [vmem:[#allocation3 + $0xb28] sm:$0xff]  ;;  %v636_v34 = vld [vmem:[#allocation3 + $0xb38] sm:$0xff] }
 0x136   :  { %820 = vmatpush1.bf16.msra.mxu0 %v621_v28  ;;  %984 = vmatpush1.bf16.msra.mxu1 %v623_v26  ;;  %v2380_v28 = vcombine.high %v3175_v32, %v3175_v32  ;;  %v635_v26 = vld [vmem:[#allocation3 + $0xb30] sm:$0xff] }
 0x137   :  { %821 = vmatprep.subr.bf16.mxu0 %v626_v36  ;;  %985 = vmatprep.subr.bf16.mxu1 %v628_v35  ;;  %v638_v36 = vld [vmem:[#allocation3 + $0xb48] sm:$0xff]  ;;  %v640_v35 = vld [vmem:[#allocation3 + $0xb58] sm:$0xff] }
 0x13a   :  { %822 = vmatpush1.bf16.msra.mxu0 %v625_v31  ;;  %986 = vmatpush1.bf16.msra.mxu1 %v627_v0  ;;  %v637_v31 = vld [vmem:[#allocation3 + $0xb40] sm:$0xff]  ;;  %v639_v0 = vld [vmem:[#allocation3 + $0xb50] sm:$0xff] }
 0x13b   :  { %832 = vmatprep.subr.bf16.mxu0 %v630_v24  ;;  %996 = vmatprep.subr.bf16.mxu1 %v632_v22  ;;  %v642_v24 = vld [vmem:[#allocation3 + $0xb68] sm:$0xff]  ;;  %v644_v22 = vld [vmem:[#allocation3 + $0xb78] sm:$0xff] }
 0x13d   :  { %824 = vmatmul.mubr.bf16.vlgmr.msra.gmra.mrb[0].mxu0 %v2377_v25  ;;  %988 = vmatmul.mubr.bf16.vlgmr.msra.gmra.mrb[0].mxu1 %v2377_v25  ;;  %v641_v25 = vld [vmem:[#allocation3 + $0xb60] sm:$0xff] }
 0x13e   :  { %833 = vmatpush1.bf16.msra.mxu0 %v629_v29  ;;  %997 = vmatpush1.bf16.msra.mxu1 %v631_v30  ;;  %v643_v29 = vld [vmem:[#allocation3 + $0xb70] sm:$0xff]  ;;  %v646_v30 = vld [vmem:[#allocation3 + $0xb88] sm:$0xff] }
 0x13f   :  { %834 = vmatprep.subr.bf16.mxu0 %v634_v27  ;;  %998 = vmatprep.subr.bf16.mxu1 %v636_v34  ;;  %v648_v27 = vld [vmem:[#allocation3 + $0xb98] sm:$0xff]  ;;  %v645_v34 = vld [vmem:[#allocation3 + $0xb80] sm:$0xff] }
 0x140   :  { %864 = vmatprep.mubr.bf16.mxu0 %v2380_v28  ;;  %1028 = vmatprep.mubr.bf16.mxu1 %v2380_v28  ;;  %v647_v28 = vld [vmem:[#allocation3 + $0xb90] sm:$0xff] }
 0x142   :  { %835 = vmatpush1.bf16.msra.mxu0 %v633_v23  ;;  %999 = vmatpush1.bf16.msra.mxu1 %v635_v26  ;;  %v650_v23 = vld [vmem:[#allocation3 + $0xba8] sm:$0xff]  ;;  %v652_v26 = vld [vmem:[#allocation3 + $0xbb8] sm:$0xff] }
 0x143   :  { %836 = vmatprep.subr.bf16.mxu0 %v638_v36  ;;  %1000 = vmatprep.subr.bf16.mxu1 %v640_v35  ;;  %v649_v36 = vld [vmem:[#allocation3 + $0xba0] sm:$0xff]  ;;  %v651_v35 = vld [vmem:[#allocation3 + $0xbb0] sm:$0xff] }
 0x146   :  { %837 = vmatpush1.bf16.msra.mxu0 %v637_v31  ;;  %1001 = vmatpush1.bf16.msra.mxu1 %v639_v0  ;;  %v654_v31 = vld [vmem:[#allocation3 + $0xbc8] sm:$0xff]  ;;  %v656_v0 = vld [vmem:[#allocation3 + $0xbd8] sm:$0xff] }
 0x147   :  { %838 = vmatprep.subr.bf16.mxu0 %v642_v24  ;;  %1002 = vmatprep.subr.bf16.mxu1 %v644_v22  ;;  %v653_v24 = vld [vmem:[#allocation3 + $0xbc0] sm:$0xff]  ;;  %v655_v22 = vld [vmem:[#allocation3 + $0xbd0] sm:$0xff] }
 0x14a   :  { %839 = vmatpush1.bf16.msra.mxu0 %v641_v25  ;;  %1003 = vmatpush1.bf16.msra.mxu1 %v643_v29  ;;  %v658_v25 = vld [vmem:[#allocation3 + $0xbe8] sm:$0xff]  ;;  %v660_v29 = vld [vmem:[#allocation3 + $0xbf8] sm:$0xff] }
 0x14b   :  { %840 = vmatprep.subr.bf16.mxu0 %v646_v30  ;;  %1004 = vmatprep.subr.bf16.mxu1 %v648_v27  ;;  %v657_v30 = vld [vmem:[#allocation3 + $0xbe0] sm:$0xff]  ;;  %v659_v27 = vld [vmem:[#allocation3 + $0xbf0] sm:$0xff] }
 0x14e   :  { %841 = vmatpush1.bf16.msra.mxu0 %v645_v34  ;;  %1005 = vmatpush1.bf16.msra.mxu1 %v647_v28  ;;  %v662_v34 = vld [vmem:[#allocation3 + $0xc08] sm:$0xff]  ;;  %v664_v28 = vld [vmem:[#allocation3 + $0xc18] sm:$0xff] }
 0x14f   :  { %842 = vmatprep.subr.bf16.mxu0 %v650_v23  ;;  %1006 = vmatprep.subr.bf16.mxu1 %v652_v26  ;;  %v661_v23 = vld [vmem:[#allocation3 + $0xc00] sm:$0xff]  ;;  %v663_v26 = vld [vmem:[#allocation3 + $0xc10] sm:$0xff] }
 0x152   :  { %843 = vmatpush1.bf16.msra.mxu0 %v649_v36  ;;  %1007 = vmatpush1.bf16.msra.mxu1 %v651_v35  ;;  %v666_v36 = vld [vmem:[#allocation3 + $0xc28] sm:$0xff]  ;;  %v668_v35 = vld [vmem:[#allocation3 + $0xc38] sm:$0xff] }
 0x153   :  { %844 = vmatprep.subr.bf16.mxu0 %v654_v31  ;;  %1008 = vmatprep.subr.bf16.mxu1 %v656_v0  ;;  %v665_v31 = vld [vmem:[#allocation3 + $0xc20] sm:$0xff]  ;;  %v667_v0 = vld [vmem:[#allocation3 + $0xc30] sm:$0xff] }
 0x156   :  { %845 = vmatpush1.bf16.msra.mxu0 %v653_v24  ;;  %1009 = vmatpush1.bf16.msra.mxu1 %v655_v22  ;;  %v670_v24 = vld [vmem:[#allocation3 + $0xc48] sm:$0xff]  ;;  %v672_v22 = vld [vmem:[#allocation3 + $0xc58] sm:$0xff] }
 0x157   :  { %846 = vmatprep.subr.bf16.mxu0 %v658_v25  ;;  %1010 = vmatprep.subr.bf16.mxu1 %v660_v29  ;;  %v669_v25 = vld [vmem:[#allocation3 + $0xc40] sm:$0xff]  ;;  %v671_v29 = vld [vmem:[#allocation3 + $0xc50] sm:$0xff] }
 0x15a   :  { %847 = vmatpush1.bf16.msra.mxu0 %v657_v30  ;;  %1011 = vmatpush1.bf16.msra.mxu1 %v659_v27  ;;  %v674_v30 = vld [vmem:[#allocation3 + $0xc68] sm:$0xff]  ;;  %v676_v27 = vld [vmem:[#allocation3 + $0xc78] sm:$0xff] }
 0x15b   :  { %848 = vmatprep.subr.bf16.mxu0 %v662_v34  ;;  %1012 = vmatprep.subr.bf16.mxu1 %v664_v28  ;;  %v673_v34 = vld [vmem:[#allocation3 + $0xc60] sm:$0xff]  ;;  %v675_v28 = vld [vmem:[#allocation3 + $0xc70] sm:$0xff] }
 0x15e   :  { %849 = vmatpush1.bf16.msra.mxu0 %v661_v23  ;;  %1013 = vmatpush1.bf16.msra.mxu1 %v663_v26  ;;  %v678_v23 = vld [vmem:[#allocation3 + $0xc88] sm:$0xff]  ;;  %v680_v26 = vld [vmem:[#allocation3 + $0xc98] sm:$0xff] }
 0x15f   :  { %850 = vmatprep.subr.bf16.mxu0 %v666_v36  ;;  %1014 = vmatprep.subr.bf16.mxu1 %v668_v35  ;;  %v677_v36 = vld [vmem:[#allocation3 + $0xc80] sm:$0xff]  ;;  %v679_v35 = vld [vmem:[#allocation3 + $0xc90] sm:$0xff] }
 0x162   :  { %851 = vmatpush1.bf16.msra.mxu0 %v665_v31  ;;  %1015 = vmatpush1.bf16.msra.mxu1 %v667_v0  ;;  %v682_v31 = vld [vmem:[#allocation3 + $0xca8] sm:$0xff]  ;;  %v684_v0 = vld [vmem:[#allocation3 + $0xcb8] sm:$0xff] }
 0x163   :  { %852 = vmatprep.subr.bf16.mxu0 %v670_v24  ;;  %1016 = vmatprep.subr.bf16.mxu1 %v672_v22  ;;  %v681_v24 = vld [vmem:[#allocation3 + $0xca0] sm:$0xff]  ;;  %v683_v22 = vld [vmem:[#allocation3 + $0xcb0] sm:$0xff] }
 0x166   :  { %853 = vmatpush1.bf16.msra.mxu0 %v669_v25  ;;  %1017 = vmatpush1.bf16.msra.mxu1 %v671_v29  ;;  %v686_v25 = vld [vmem:[#allocation3 + $0xcc8] sm:$0xff]  ;;  %v688_v29 = vld [vmem:[#allocation3 + $0xcd8] sm:$0xff] }
 0x167   :  { %854 = vmatprep.subr.bf16.mxu0 %v674_v30  ;;  %1018 = vmatprep.subr.bf16.mxu1 %v676_v27  ;;  %v685_v30 = vld [vmem:[#allocation3 + $0xcc0] sm:$0xff]  ;;  %v687_v27 = vld [vmem:[#allocation3 + $0xcd0] sm:$0xff] }
 0x16a   :  { %855 = vmatpush1.bf16.msra.mxu0 %v673_v34  ;;  %1019 = vmatpush1.bf16.msra.mxu1 %v675_v28  ;;  %v690_v34 = vld [vmem:[#allocation3 + $0xce8] sm:$0xff]  ;;  %v692_v28 = vld [vmem:[#allocation3 + $0xcf8] sm:$0xff] }
 0x16b   :  { %856 = vmatprep.subr.bf16.mxu0 %v678_v23  ;;  %1020 = vmatprep.subr.bf16.mxu1 %v680_v26  ;;  %v689_v23 = vld [vmem:[#allocation3 + $0xce0] sm:$0xff]  ;;  %v691_v26 = vld [vmem:[#allocation3 + $0xcf0] sm:$0xff] }
 0x16e   :  { %857 = vmatpush1.bf16.msra.mxu0 %v677_v36  ;;  %1021 = vmatpush1.bf16.msra.mxu1 %v679_v35  ;;  %v694_v36 = vld [vmem:[#allocation3 + $0xd08] sm:$0xff]  ;;  %v696_v35 = vld [vmem:[#allocation3 + $0xd18] sm:$0xff] }
 0x16f   :  { %858 = vmatprep.subr.bf16.mxu0 %v682_v31  ;;  %1022 = vmatprep.subr.bf16.mxu1 %v684_v0  ;;  %v2379_v31 = vcombine.low %v3175_v32, %v3175_v32  ;;  %v693_v0 = vld [vmem:[#allocation3 + $0xd00] sm:$0xff] }
 0x170   :  { %v701_v32 = vld [vmem:[#allocation3 + $0xd40] sm:$0xff] }
 0x172   :  { %859 = vmatpush1.bf16.msra.mxu0 %v681_v24  ;;  %1023 = vmatpush1.bf16.msra.mxu1 %v683_v22  ;;  %v695_v24 = vld [vmem:[#allocation3 + $0xd10] sm:$0xff]  ;;  %v698_v22 = vld [vmem:[#allocation3 + $0xd28] sm:$0xff] }
 0x173   :  { %860 = vmatprep.subr.bf16.mxu0 %v686_v25  ;;  %1024 = vmatprep.subr.bf16.mxu1 %v688_v29  ;;  %v700_v25 = vld [vmem:[#allocation3 + $0xd38] sm:$0xff]  ;;  %v697_v29 = vld [vmem:[#allocation3 + $0xd20] sm:$0xff] }
 0x176   :  { %861 = vmatpush1.bf16.msra.mxu0 %v685_v30  ;;  %1025 = vmatpush1.bf16.msra.mxu1 %v687_v27  ;;  %v699_v30 = vld [vmem:[#allocation3 + $0xd30] sm:$0xff]  ;;  %v702_v27 = vld [vmem:[#allocation3 + $0xd48] sm:$0xff] }
 0x177   :  { %862 = vmatprep.subr.bf16.mxu0 %v690_v34  ;;  %1026 = vmatprep.subr.bf16.mxu1 %v692_v28  ;;  %v704_v34 = vld [vmem:[#allocation3 + $0xd58] sm:$0xff]  ;;  %v3676_v28 = vmov 0  }
 0x17a   :  { %863 = vmatpush1.bf16.msra.mxu0 %v689_v23  ;;  %1027 = vmatpush1.bf16.msra.mxu1 %v691_v26  ;;  %v703_v23 = vld [vmem:[#allocation3 + $0xd50] sm:$0xff]  ;;  %v706_v26 = vld [vmem:[#allocation3 + $0xd68] sm:$0xff] }
 0x17b   :  { %873 = vmatprep.subr.bf16.mxu0 %v694_v36  ;;  %1037 = vmatprep.subr.bf16.mxu1 %v696_v35  ;;  %v708_v36 = vld [vmem:[#allocation3 + $0xd78] sm:$0xff]  ;;  %v705_v35 = vld [vmem:[#allocation3 + $0xd60] sm:$0xff] }
 0x17d   :  { %865 = vmatmul.mubr.bf16.vlgmr.msra.gmra.mrb[0].mxu0 %v2379_v31  ;;  %1029 = vmatmul.mubr.bf16.vlgmr.msra.gmra.mrb[0].mxu1 %v2379_v31  ;;  %v707_v31 = vld [vmem:[#allocation3 + $0xd70] sm:$0xff] }
 0x17e   :  { %874 = vmatpush1.bf16.msra.mxu0 %v693_v0  ;;  %1038 = vmatpush1.bf16.msra.mxu1 %v695_v24  ;;  %v710_v0 = vld [vmem:[#allocation3 + $0xd88] sm:$0xff]  ;;  %v712_v24 = vld [vmem:[#allocation3 + $0xd98] sm:$0xff] }
 0x17f   :  { %875 = vmatprep.subr.bf16.mxu0 %v698_v22  ;;  %1039 = vmatprep.subr.bf16.mxu1 %v700_v25  ;;  %v709_v22 = vld [vmem:[#allocation3 + $0xd80] sm:$0xff]  ;;  %v711_v25 = vld [vmem:[#allocation3 + $0xd90] sm:$0xff] }
 0x180   :  { %905 = vmatprep.mubr.bf16.mxu0 %v3676_v28  ;;  %1069 = vmatprep.mubr.bf16.mxu1 %v3676_v28 }
 0x182   :  { %876 = vmatpush1.bf16.msra.mxu0 %v697_v29  ;;  %1040 = vmatpush1.bf16.msra.mxu1 %v699_v30  ;;  %v714_v29 = vld [vmem:[#allocation3 + $0xda8] sm:$0xff]  ;;  %v716_v30 = vld [vmem:[#allocation3 + $0xdb8] sm:$0xff] }
 0x183   :  { %877 = vmatprep.subr.bf16.mxu0 %v702_v27  ;;  %1041 = vmatprep.subr.bf16.mxu1 %v704_v34  ;;  %v713_v27 = vld [vmem:[#allocation3 + $0xda0] sm:$0xff]  ;;  %v715_v34 = vld [vmem:[#allocation3 + $0xdb0] sm:$0xff] }
 0x186   :  { %878 = vmatpush1.bf16.msra.mxu0 %v701_v32  ;;  %1042 = vmatpush1.bf16.msra.mxu1 %v703_v23  ;;  %v718_v32 = vld [vmem:[#allocation3 + $0xdc8] sm:$0xff]  ;;  %v720_v23 = vld [vmem:[#allocation3 + $0xdd8] sm:$0xff] }
 0x187   :  { %879 = vmatprep.subr.bf16.mxu0 %v706_v26  ;;  %1043 = vmatprep.subr.bf16.mxu1 %v708_v36  ;;  %v717_v26 = vld [vmem:[#allocation3 + $0xdc0] sm:$0xff]  ;;  %v719_v36 = vld [vmem:[#allocation3 + $0xdd0] sm:$0xff] }
 0x18a   :  { %880 = vmatpush1.bf16.msra.mxu0 %v705_v35  ;;  %1044 = vmatpush1.bf16.msra.mxu1 %v707_v31  ;;  %v722_v35 = vld [vmem:[#allocation3 + $0xde8] sm:$0xff]  ;;  %v724_v31 = vld [vmem:[#allocation3 + $0xdf8] sm:$0xff] }
 0x18b   :  { %881 = vmatprep.subr.bf16.mxu0 %v710_v0  ;;  %1045 = vmatprep.subr.bf16.mxu1 %v712_v24  ;;  %v721_v0 = vld [vmem:[#allocation3 + $0xde0] sm:$0xff]  ;;  %v723_v24 = vld [vmem:[#allocation3 + $0xdf0] sm:$0xff] }
 0x18e   :  { %882 = vmatpush1.bf16.msra.mxu0 %v709_v22  ;;  %1046 = vmatpush1.bf16.msra.mxu1 %v711_v25  ;;  %v2520_v22 = vld [vmem:[#allocation2 + $0x34] ss:$0 sps:$4 sm:$0xff]   ;;  %v2383_v25 = vcombine.high %v2691_v33, %v2691_v33 }
 0x18f   :  { %883 = vmatprep.subr.bf16.mxu0 %v714_v29  ;;  %1047 = vmatprep.subr.bf16.mxu1 %v716_v30  ;;  %v3724_v29 = vld [vmem:[#allocation67_spill] sm:$0xff]  ;;  %v3725_v30 = vld [vmem:[#allocation69_spill] sm:$0xff] }
 0x192   :  { %884 = vmatpush1.bf16.msra.mxu0 %v713_v27  ;;  %1048 = vmatpush1.bf16.msra.mxu1 %v715_v34  ;;  %v3726_v27 = vld [vmem:[#allocation72_spill] sm:$0xff]  ;;  %v3727_v34 = vld [vmem:[#allocation74_spill] sm:$0xff] }
 0x193   :  { %885 = vmatprep.subr.bf16.mxu0 %v718_v32  ;;  %1049 = vmatprep.subr.bf16.mxu1 %v720_v23  ;;  %v3728_v32 = vld [vmem:[#allocation71_spill] sm:$0xff]  ;;  %v3729_v23 = vld [vmem:[#allocation73_spill] sm:$0xff] }
 0x196   :  { %886 = vmatpush1.bf16.msra.mxu0 %v717_v26  ;;  %1050 = vmatpush1.bf16.msra.mxu1 %v719_v36  ;;  %v3730_v26 = vld [vmem:[#allocation76_spill] sm:$0xff]  ;;  %v3731_v36 = vld [vmem:[#allocation78_spill] sm:$0xff] }
 0x197   :  { %887 = vmatprep.subr.bf16.mxu0 %v722_v35  ;;  %1051 = vmatprep.subr.bf16.mxu1 %v724_v31  ;;  %v3732_v35 = vld [vmem:[#allocation75_spill] sm:$0xff]  ;;  %v3733_v31 = vld [vmem:[#allocation77_spill] sm:$0xff] }
 0x19a   :  { %888 = vmatpush1.bf16.msra.mxu0 %v721_v0  ;;  %1052 = vmatpush1.bf16.msra.mxu1 %v723_v24  ;;  %v3734_v0 = vld [vmem:[#allocation80_spill] sm:$0xff]  ;;  %v3735_v24 = vld [vmem:[#allocation82_spill] sm:$0xff] }
 0x19b   :  { %1103 = vmatprep.subr.bf16.mxu0 %v2701_v38  ;;  %1267 = vmatprep.subr.bf16.mxu1 %v2705_v40  ;;  %v3678_v38 = vld [vmem:[#allocation26_spill] sm:$0xff]  ;;  %v3680_v40 = vld [vmem:[#allocation25_spill] sm:$0xff] }
 0x19d   :  { %906 = vmatmul.mubr.bf16.vlgmr.msra.gmra.mrb[0].mxu0 %v2520_v22  ;;  %1070 = vmatmul.mubr.bf16.vlgmr.msra.gmra.mrb[0].mxu1 %v2520_v22  ;;  %v3736_v22 = vld [vmem:[#allocation79_spill] sm:$0xff] }
 0x19e   :  { %1104 = vmatpush1.bf16.msra.mxu0 %v2699_v37  ;;  %1268 = vmatpush1.bf16.msra.mxu1 %v2703_v39  ;;  %v3677_v37 = vld [vmem:[#allocation24_spill] sm:$0xff]  ;;  %v3679_v39 = vld [vmem:[#allocation23_spill] sm:$0xff] }
 0x19f   :  { %1105 = vmatprep.subr.bf16.mxu0 %v2709_v42  ;;  %1269 = vmatprep.subr.bf16.mxu1 %v2713_v44  ;;  %v3682_v42 = vld [vmem:[#allocation30_spill] sm:$0xff]  ;;  %v3684_v44 = vld [vmem:[#allocation29_spill] sm:$0xff] }
 0x1a0   :  { %1135 = vmatprep.mubr.bf16.mxu0 %v2383_v25  ;;  %1299 = vmatprep.mubr.bf16.mxu1 %v2383_v25  ;;  %v3737_v25 = vld [vmem:[#allocation81_spill] sm:$0xff] }
 0x1a2   :  { %1106 = vmatpush1.bf16.msra.mxu0 %v2707_v41  ;;  %1270 = vmatpush1.bf16.msra.mxu1 %v2711_v43  ;;  %v3681_v41 = vld [vmem:[#allocation28_spill] sm:$0xff]  ;;  %v3683_v43 = vld [vmem:[#allocation27_spill] sm:$0xff] }
 0x1a3   :  { %1107 = vmatprep.subr.bf16.mxu0 %v2717_v46  ;;  %1271 = vmatprep.subr.bf16.mxu1 %v2721_v48  ;;  %v3686_v46 = vld [vmem:[#allocation34_spill] sm:$0xff]  ;;  %v3688_v48 = vld [vmem:[#allocation33_spill] sm:$0xff] }
 0x1a6   :  { %1108 = vmatpush1.bf16.msra.mxu0 %v2715_v45  ;;  %1272 = vmatpush1.bf16.msra.mxu1 %v2719_v47  ;;  %v3685_v45 = vld [vmem:[#allocation32_spill] sm:$0xff]  ;;  %v3687_v47 = vld [vmem:[#allocation31_spill] sm:$0xff] }
 0x1a7   :  { %1109 = vmatprep.subr.bf16.mxu0 %v2725_v50  ;;  %1273 = vmatprep.subr.bf16.mxu1 %v2729_v52  ;;  %v3690_v50 = vld [vmem:[#allocation38_spill] sm:$0xff]  ;;  %v3691_v52 = vld [vmem:[#allocation35_spill] sm:$0xff] }
 0x1aa   :  { %1110 = vmatpush1.bf16.msra.mxu0 %v2723_v49  ;;  %1274 = vmatpush1.bf16.msra.mxu1 %v2727_v51  ;;  %v3689_v49 = vld [vmem:[#allocation36_spill] sm:$0xff]  ;;  %v2382_v51 = vcombine.low %v2691_v33, %v2691_v33  ;;  %v3699_v33 = vld [vmem:[#allocation46_spill] sm:$0xff] }
 0x1ab   :  { %1111 = vmatprep.subr.bf16.mxu0 %v2733_v54  ;;  %1275 = vmatprep.subr.bf16.mxu1 %v2737_v56  ;;  %v3693_v54 = vld [vmem:[#allocation40_spill] sm:$0xff] }
 0x1ac   :  { %v3695_v56 = vld [vmem:[#allocation20_spill] sm:$0xff] }
 0x1ae   :  { %1112 = vmatpush1.bf16.msra.mxu0 %v2731_v53  ;;  %1276 = vmatpush1.bf16.msra.mxu1 %v2735_v55  ;;  %v3692_v53 = vld [vmem:[#allocation37_spill] sm:$0xff]  ;;  %v3694_v55 = vld [vmem:[#allocation42_spill] sm:$0xff] }
 0x1af   :  { %1113 = vmatprep.subr.bf16.mxu0 %v2741_v58  ;;  %1277 = vmatprep.subr.bf16.mxu1 %v2745_v60  ;;  %v3696_v58 = vld [vmem:[#allocation39_spill] sm:$0xff]  ;;  %v3698_v60 = vld [vmem:[#allocation44_spill] sm:$0xff] }
 0x1b2   :  { %1114 = vmatpush1.bf16.msra.mxu0 %v2739_v57  ;;  %1278 = vmatpush1.bf16.msra.mxu1 %v2743_v59  ;;  %v2385_v57 = vcombine.high %v3695_v56, %v3695_v56  ;;  %v3697_v59 = vld [vmem:[#allocation41_spill] sm:$0xff] }
 0x1b3   :  { %1115 = vmatprep.subr.bf16.mxu0 %v2749_v62  ;;  %1279 = vmatprep.subr.bf16.mxu1 %v2753_v1  ;;  %v3701_v62 = vld [vmem:[#allocation45_spill] sm:$0xff]  ;;  %v3703_v1 = vld [vmem:[#allocation50_spill] sm:$0xff] }
 0x1b6   :  { %1116 = vmatpush1.bf16.msra.mxu0 %v2747_v61  ;;  %1280 = vmatpush1.bf16.msra.mxu1 %v2751_v63  ;;  %v3700_v61 = vld [vmem:[#allocation43_spill] sm:$0xff]  ;;  %v3702_v63 = vld [vmem:[#allocation48_spill] sm:$0xff] }
 0x1b7   :  { %1117 = vmatprep.subr.bf16.mxu0 %v2757_v3  ;;  %1281 = vmatprep.subr.bf16.mxu1 %v2761_v5  ;;  %v3705_v3 = vld [vmem:[#allocation49_spill] sm:$0xff]  ;;  %v3707_v5 = vld [vmem:[#allocation54_spill] sm:$0xff] }
 0x1ba   :  { %1118 = vmatpush1.bf16.msra.mxu0 %v2755_v2  ;;  %1282 = vmatpush1.bf16.msra.mxu1 %v2759_v4  ;;  %v3704_v2 = vld [vmem:[#allocation47_spill] sm:$0xff]  ;;  %v3706_v4 = vld [vmem:[#allocation52_spill] sm:$0xff] }
 0x1bb   :  { %1119 = vmatprep.subr.bf16.mxu0 %v2765_v7  ;;  %1283 = vmatprep.subr.bf16.mxu1 %v2769_v9  ;;  %v3709_v7 = vld [vmem:[#allocation53_spill] sm:$0xff]  ;;  %v3711_v9 = vld [vmem:[#allocation58_spill] sm:$0xff] }
 0x1be   :  { %1120 = vmatpush1.bf16.msra.mxu0 %v2763_v6  ;;  %1284 = vmatpush1.bf16.msra.mxu1 %v2767_v8  ;;  %v3708_v6 = vld [vmem:[#allocation51_spill] sm:$0xff]  ;;  %v3710_v8 = vld [vmem:[#allocation56_spill] sm:$0xff] }
 0x1bf   :  { %1121 = vmatprep.subr.bf16.mxu0 %v2773_v11  ;;  %1285 = vmatprep.subr.bf16.mxu1 %v2777_v13  ;;  %v3713_v11 = vld [vmem:[#allocation57_spill] sm:$0xff]  ;;  %v3715_v13 = vld [vmem:[#allocation62_spill] sm:$0xff] }
 0x1c2   :  { %1122 = vmatpush1.bf16.msra.mxu0 %v2771_v10  ;;  %1286 = vmatpush1.bf16.msra.mxu1 %v2775_v12  ;;  %v3712_v10 = vld [vmem:[#allocation55_spill] sm:$0xff]  ;;  %v3714_v12 = vld [vmem:[#allocation60_spill] sm:$0xff] }
 0x1c3   :  { %1123 = vmatprep.subr.bf16.mxu0 %v2781_v15  ;;  %1287 = vmatprep.subr.bf16.mxu1 %v2785_v17  ;;  %v3717_v15 = vld [vmem:[#allocation61_spill] sm:$0xff]  ;;  %v3719_v17 = vld [vmem:[#allocation66_spill] sm:$0xff] }
 0x1c6   :  { %1124 = vmatpush1.bf16.msra.mxu0 %v2779_v14  ;;  %1288 = vmatpush1.bf16.msra.mxu1 %v2783_v16  ;;  %v3716_v14 = vld [vmem:[#allocation59_spill] sm:$0xff]  ;;  %v3718_v16 = vld [vmem:[#allocation64_spill] sm:$0xff] }
 0x1c7   :  { %1125 = vmatprep.subr.bf16.mxu0 %v2789_v19  ;;  %1289 = vmatprep.subr.bf16.mxu1 %v2793_v21  ;;  %v3721_v19 = vld [vmem:[#allocation65_spill] sm:$0xff]  ;;  %v3723_v21 = vld [vmem:[#allocation70_spill] sm:$0xff] }
 0x1ca   :  { %1126 = vmatpush1.bf16.msra.mxu0 %v2787_v18  ;;  %1290 = vmatpush1.bf16.msra.mxu1 %v2791_v20  ;;  %v3720_v18 = vld [vmem:[#allocation63_spill] sm:$0xff]  ;;  %v3722_v20 = vld [vmem:[#allocation68_spill] sm:$0xff] }
 0x1cb   :  { %1127 = vmatprep.subr.bf16.mxu0 %v3677_v37  ;;  %1291 = vmatprep.subr.bf16.mxu1 %v3678_v38  ;;  %v3738_v37 = vld [vmem:[#allocation84_spill] sm:$0xff]  ;;  %v3739_v38 = vld [vmem:[#allocation86_spill] sm:$0xff] }
 0x1ce   :  { %1128 = vmatpush1.bf16.msra.mxu0 %v3679_v39  ;;  %1292 = vmatpush1.bf16.msra.mxu1 %v3680_v40  ;;  %v3740_v39 = vld [vmem:[#allocation83_spill] sm:$0xff]  ;;  %v3741_v40 = vld [vmem:[#allocation85_spill] sm:$0xff] }
 0x1cf   :  { %1129 = vmatprep.subr.bf16.mxu0 %v3681_v41  ;;  %1293 = vmatprep.subr.bf16.mxu1 %v3682_v42  ;;  %v3742_v41 = vld [vmem:[#allocation88_spill] sm:$0xff]  ;;  %v3743_v42 = vld [vmem:[#allocation90_spill] sm:$0xff] }
 0x1d2   :  { %1130 = vmatpush1.bf16.msra.mxu0 %v3683_v43  ;;  %1294 = vmatpush1.bf16.msra.mxu1 %v3684_v44  ;;  %v3744_v43 = vld [vmem:[#allocation87_spill] sm:$0xff]  ;;  %v3745_v44 = vld [vmem:[#allocation89_spill] sm:$0xff] }
 0x1d3   :  { %1131 = vmatprep.subr.bf16.mxu0 %v3685_v45  ;;  %1295 = vmatprep.subr.bf16.mxu1 %v3686_v46  ;;  %v3746_v45 = vld [vmem:[#allocation92_spill] sm:$0xff]  ;;  %v3747_v46 = vld [vmem:[#allocation94_spill] sm:$0xff] }
 0x1d6   :  { %1132 = vmatpush1.bf16.msra.mxu0 %v3687_v47  ;;  %1296 = vmatpush1.bf16.msra.mxu1 %v3688_v48  ;;  %v3748_v47 = vld [vmem:[#allocation91_spill] sm:$0xff]  ;;  %v3749_v48 = vld [vmem:[#allocation93_spill] sm:$0xff] }
 0x1d7   :  { %1133 = vmatprep.subr.bf16.mxu0 %v3689_v49  ;;  %1297 = vmatprep.subr.bf16.mxu1 %v3690_v50  ;;  %v3750_v49 = vld [vmem:[#allocation96_spill] sm:$0xff]  ;;  %v3751_v50 = vld [vmem:[#allocation98_spill] sm:$0xff] }
 0x1da   :  { %1134 = vmatpush1.bf16.msra.mxu0 %v3691_v52  ;;  %1298 = vmatpush1.bf16.msra.mxu1 %v3692_v53  ;;  %v3753_v52 = vld [vmem:[#allocation97_spill] sm:$0xff]  ;;  %v3754_v53 = vld [vmem:[#allocation100_spill] sm:$0xff] }
 0x1db   :  { %1144 = vmatprep.subr.bf16.mxu0 %v3693_v54  ;;  %1308 = vmatprep.subr.bf16.mxu1 %v3694_v55  ;;  %v3755_v54 = vld [vmem:[#allocation102_spill] sm:$0xff]  ;;  %v2384_v55 = vcombine.low %v3695_v56, %v3695_v56 }
 0x1dc   :  { %v3764_v56 = vld [vmem:[#allocation110_spill] sm:$0xff] }
 0x1dd   :  { %1136 = vmatmul.mubr.bf16.vlgmr.msra.gmra.mrb[0].mxu0 %v2382_v51  ;;  %1300 = vmatmul.mubr.bf16.vlgmr.msra.gmra.mrb[0].mxu1 %v2382_v51  ;;  %v3752_v51 = vld [vmem:[#allocation95_spill] sm:$0xff] }
 0x1de   :  { %1145 = vmatpush1.bf16.msra.mxu0 %v3696_v58  ;;  %1309 = vmatpush1.bf16.msra.mxu1 %v3697_v59  ;;  %v3757_v58 = vld [vmem:[#allocation101_spill] sm:$0xff]  ;;  %v3758_v59 = vld [vmem:[#allocation104_spill] sm:$0xff] }
 0x1df   :  { %1146 = vmatprep.subr.bf16.mxu0 %v3698_v60  ;;  %1310 = vmatprep.subr.bf16.mxu1 %v3699_v33  ;;  %v3759_v60 = vld [vmem:[#allocation106_spill] sm:$0xff]  ;;  %v3760_v33 = vld [vmem:[#allocation21_spill] sm:$0xff] }
 0x1e0   :  { %1176 = vmatprep.mubr.bf16.mxu0 %v2385_v57  ;;  %1340 = vmatprep.mubr.bf16.mxu1 %v2385_v57  ;;  %v3756_v57 = vld [vmem:[#allocation99_spill] sm:$0xff] }
 0x1e2   :  { %1147 = vmatpush1.bf16.msra.mxu0 %v3700_v61  ;;  %1311 = vmatpush1.bf16.msra.mxu1 %v3701_v62  ;;  %v2387_v61 = vcombine.high %v3760_v33, %v3760_v33  ;;  %v3761_v62 = vld [vmem:[#allocation103_spill] sm:$0xff] }
 0x1e3   :  { %1148 = vmatprep.subr.bf16.mxu0 %v3702_v63  ;;  %1312 = vmatprep.subr.bf16.mxu1 %v3703_v1  ;;  %v3762_v63 = vld [vmem:[#allocation105_spill] sm:$0xff]  ;;  %v3763_v1 = vld [vmem:[#allocation108_spill] sm:$0xff] }
 0x1e6   :  { %1149 = vmatpush1.bf16.msra.mxu0 %v3704_v2  ;;  %1313 = vmatpush1.bf16.msra.mxu1 %v3705_v3  ;;  %v3765_v2 = vld [vmem:[#allocation107_spill] sm:$0xff]  ;;  %v3766_v3 = vld [vmem:[#allocation109_spill] sm:$0xff] }
 0x1e7   :  { %1150 = vmatprep.subr.bf16.mxu0 %v3706_v4  ;;  %1314 = vmatprep.subr.bf16.mxu1 %v3707_v5  ;;  %v3767_v4 = vld [vmem:[#allocation112_spill] sm:$0xff]  ;;  %v3768_v5 = vld [vmem:[#allocation114_spill] sm:$0xff] }
 0x1ea   :  { %1151 = vmatpush1.bf16.msra.mxu0 %v3708_v6  ;;  %1315 = vmatpush1.bf16.msra.mxu1 %v3709_v7  ;;  %v3769_v6 = vld [vmem:[#allocation111_spill] sm:$0xff]  ;;  %v3770_v7 = vld [vmem:[#allocation113_spill] sm:$0xff] }
 0x1eb   :  { %1152 = vmatprep.subr.bf16.mxu0 %v3710_v8  ;;  %1316 = vmatprep.subr.bf16.mxu1 %v3711_v9  ;;  %v3771_v8 = vld [vmem:[#allocation116_spill] sm:$0xff]  ;;  %v3772_v9 = vld [vmem:[#allocation118_spill] sm:$0xff] }
 0x1ee   :  { %1153 = vmatpush1.bf16.msra.mxu0 %v3712_v10  ;;  %1317 = vmatpush1.bf16.msra.mxu1 %v3713_v11  ;;  %v3773_v10 = vld [vmem:[#allocation115_spill] sm:$0xff]  ;;  %v3774_v11 = vld [vmem:[#allocation117_spill] sm:$0xff] }
 0x1ef   :  { %1154 = vmatprep.subr.bf16.mxu0 %v3714_v12  ;;  %1318 = vmatprep.subr.bf16.mxu1 %v3715_v13  ;;  %v3775_v12 = vld [vmem:[#allocation120_spill] sm:$0xff]  ;;  %v3776_v13 = vld [vmem:[#allocation122_spill] sm:$0xff] }
 0x1f2   :  { %1155 = vmatpush1.bf16.msra.mxu0 %v3716_v14  ;;  %1319 = vmatpush1.bf16.msra.mxu1 %v3717_v15  ;;  %v3777_v14 = vld [vmem:[#allocation119_spill] sm:$0xff]  ;;  %v3778_v15 = vld [vmem:[#allocation121_spill] sm:$0xff] }
 0x1f3   :  { %1156 = vmatprep.subr.bf16.mxu0 %v3718_v16  ;;  %1320 = vmatprep.subr.bf16.mxu1 %v3719_v17  ;;  %v3779_v16 = vld [vmem:[#allocation124_spill] sm:$0xff]  ;;  %v3780_v17 = vld [vmem:[#allocation126_spill] sm:$0xff] }
 0x1f6   :  { %1157 = vmatpush1.bf16.msra.mxu0 %v3720_v18  ;;  %1321 = vmatpush1.bf16.msra.mxu1 %v3721_v19  ;;  %v3781_v18 = vld [vmem:[#allocation123_spill] sm:$0xff]  ;;  %v3782_v19 = vld [vmem:[#allocation125_spill] sm:$0xff] }
 0x1f7   :  { %1158 = vmatprep.subr.bf16.mxu0 %v3722_v20  ;;  %1322 = vmatprep.subr.bf16.mxu1 %v3723_v21  ;;  %v3783_v20 = vld [vmem:[#allocation128_spill] sm:$0xff]  ;;  %v3784_v21 = vld [vmem:[#allocation130_spill] sm:$0xff] }
 0x1fa   :  { %1159 = vmatpush1.bf16.msra.mxu0 %v3724_v29  ;;  %1323 = vmatpush1.bf16.msra.mxu1 %v3725_v30  ;;  %v3785_v29 = vld [vmem:[#allocation127_spill] sm:$0xff]  ;;  %v3786_v30 = vld [vmem:[#allocation129_spill] sm:$0xff] }
 0x1fb   :  { %1160 = vmatprep.subr.bf16.mxu0 %v3726_v27  ;;  %1324 = vmatprep.subr.bf16.mxu1 %v3727_v34  ;;  %v3787_v27 = vld [vmem:[#allocation132_spill] sm:$0xff]  ;;  %v3788_v34 = vld [vmem:[#allocation134_spill] sm:$0xff] }
 0x1fe   :  { %1161 = vmatpush1.bf16.msra.mxu0 %v3728_v32  ;;  %1325 = vmatpush1.bf16.msra.mxu1 %v3729_v23  ;;  %v3789_v32 = vld [vmem:[#allocation131_spill] sm:$0xff]  ;;  %v3790_v23 = vld [vmem:[#allocation133_spill] sm:$0xff] }
 0x1ff   :  { %1162 = vmatprep.subr.bf16.mxu0 %v3730_v26  ;;  %1326 = vmatprep.subr.bf16.mxu1 %v3731_v36  ;;  %v3791_v26 = vld [vmem:[#allocation136_spill] sm:$0xff]  ;;  %v3792_v36 = vld [vmem:[#allocation138_spill] sm:$0xff] }
 0x202   :  { %1163 = vmatpush1.bf16.msra.mxu0 %v3732_v35  ;;  %1327 = vmatpush1.bf16.msra.mxu1 %v3733_v31  ;;  %v3793_v35 = vld [vmem:[#allocation135_spill] sm:$0xff]  ;;  %v3794_v31 = vld [vmem:[#allocation137_spill] sm:$0xff] }
 0x203   :  { %1164 = vmatprep.subr.bf16.mxu0 %v3734_v0  ;;  %1328 = vmatprep.subr.bf16.mxu1 %v3735_v24  ;;  %v3795_v0 = vld [vmem:[#allocation140_spill] sm:$0xff]  ;;  %v3796_v24 = vld [vmem:[#allocation142_spill] sm:$0xff] }
 0x206   :  { %1165 = vmatpush1.bf16.msra.mxu0 %v3736_v22  ;;  %1329 = vmatpush1.bf16.msra.mxu1 %v3737_v25  ;;  %v3797_v22 = vld [vmem:[#allocation139_spill] sm:$0xff]  ;;  %v3798_v25 = vld [vmem:[#allocation141_spill] sm:$0xff] }
 0x207   :  { %1166 = vmatprep.subr.bf16.mxu0 %v3738_v37  ;;  %1330 = vmatprep.subr.bf16.mxu1 %v3739_v38  ;;  %v3799_v37 = vld [vmem:[#allocation144_spill] sm:$0xff]  ;;  %v3800_v38 = vld [vmem:[#allocation146_spill] sm:$0xff] }
 0x20a   :  { %1167 = vmatpush1.bf16.msra.mxu0 %v3740_v39  ;;  %1331 = vmatpush1.bf16.msra.mxu1 %v3741_v40  ;;  %v3801_v39 = vld [vmem:[#allocation143_spill] sm:$0xff]  ;;  %v3802_v40 = vld [vmem:[#allocation145_spill] sm:$0xff] }
 0x20b   :  { %1168 = vmatprep.subr.bf16.mxu0 %v3742_v41  ;;  %1332 = vmatprep.subr.bf16.mxu1 %v3743_v42  ;;  %v3803_v41 = vld [vmem:[#allocation148_spill] sm:$0xff]  ;;  %v3804_v42 = vld [vmem:[#allocation150_spill] sm:$0xff] }
 0x20e   :  { %1169 = vmatpush1.bf16.msra.mxu0 %v3744_v43  ;;  %1333 = vmatpush1.bf16.msra.mxu1 %v3745_v44  ;;  %v3805_v43 = vld [vmem:[#allocation147_spill] sm:$0xff]  ;;  %v3806_v44 = vld [vmem:[#allocation149_spill] sm:$0xff] }
 0x20f   :  { %1170 = vmatprep.subr.bf16.mxu0 %v3746_v45  ;;  %1334 = vmatprep.subr.bf16.mxu1 %v3747_v46  ;;  %v3807_v45 = vld [vmem:[#allocation152_spill] sm:$0xff]  ;;  %v3808_v46 = vld [vmem:[#allocation154_spill] sm:$0xff] }
 0x212   :  { %1171 = vmatpush1.bf16.msra.mxu0 %v3748_v47  ;;  %1335 = vmatpush1.bf16.msra.mxu1 %v3749_v48  ;;  %v3809_v47 = vld [vmem:[#allocation151_spill] sm:$0xff]  ;;  %v3810_v48 = vld [vmem:[#allocation153_spill] sm:$0xff] }
 0x213   :  { %1172 = vmatprep.subr.bf16.mxu0 %v3750_v49  ;;  %1336 = vmatprep.subr.bf16.mxu1 %v3751_v50  ;;  %v3811_v49 = vld [vmem:[#allocation156_spill] sm:$0xff]  ;;  %v3812_v50 = vld [vmem:[#allocation158_spill] sm:$0xff] }
 0x216   :  { %1173 = vmatpush1.bf16.msra.mxu0 %v3752_v51  ;;  %1337 = vmatpush1.bf16.msra.mxu1 %v3753_v52  ;;  %v3813_v51 = vld [vmem:[#allocation155_spill] sm:$0xff]  ;;  %v3814_v52 = vld [vmem:[#allocation157_spill] sm:$0xff] }
 0x217   :  { %1174 = vmatprep.subr.bf16.mxu0 %v3754_v53  ;;  %1338 = vmatprep.subr.bf16.mxu1 %v3755_v54  ;;  %v3815_v53 = vld [vmem:[#allocation160_spill] sm:$0xff]  ;;  %v3816_v54 = vld [vmem:[#allocation162_spill] sm:$0xff] }
 0x21a   :  { %1175 = vmatpush1.bf16.msra.mxu0 %v3756_v57  ;;  %1339 = vmatpush1.bf16.msra.mxu1 %v3757_v58  ;;  %v3818_v57 = vld [vmem:[#allocation161_spill] sm:$0xff]  ;;  %v3819_v58 = vld [vmem:[#allocation164_spill] sm:$0xff] }
 0x21b   :  { %1185 = vmatprep.subr.bf16.mxu0 %v3758_v59  ;;  %1349 = vmatprep.subr.bf16.mxu1 %v3759_v60  ;;  %v3820_v59 = vld [vmem:[#allocation166_spill] sm:$0xff]  ;;  %v2386_v60 = vcombine.low %v3760_v33, %v3760_v33  ;;  %v3829_v33 = vld [vmem:[#allocation171_spill] sm:$0xff] }
 0x21d   :  { %1177 = vmatmul.mubr.bf16.vlgmr.msra.gmra.mrb[0].mxu0 %v2384_v55  ;;  %1341 = vmatmul.mubr.bf16.vlgmr.msra.gmra.mrb[0].mxu1 %v2384_v55  ;;  %v3817_v55 = vld [vmem:[#allocation159_spill] sm:$0xff] }
 0x21e   :  { %1186 = vmatpush1.bf16.msra.mxu0 %v3761_v62  ;;  %1350 = vmatpush1.bf16.msra.mxu1 %v3762_v63  ;;  %v3822_v62 = vld [vmem:[#allocation165_spill] sm:$0xff]  ;;  %v3823_v63 = vld [vmem:[#allocation168_spill] sm:$0xff] }
 0x21f   :  { %1187 = vmatprep.subr.bf16.mxu0 %v3763_v1  ;;  %1351 = vmatprep.subr.bf16.mxu1 %v3764_v56  ;;  %v3824_v1 = vld [vmem:[#allocation170_spill] sm:$0xff]  ;;  %v3825_v56 = vld [vmem:[#allocation167_spill] sm:$0xff] }
 0x220   :  { %1217 = vmatprep.mubr.bf16.mxu0 %v2387_v61  ;;  %1381 = vmatprep.mubr.bf16.mxu1 %v2387_v61  ;;  %v3821_v61 = vld [vmem:[#allocation163_spill] sm:$0xff] }
 0x222   :  { %1188 = vmatpush1.bf16.msra.mxu0 %v3765_v2  ;;  %1352 = vmatpush1.bf16.msra.mxu1 %v3766_v3  ;;  %v3826_v2 = vld [vmem:[#allocation169_spill] sm:$0xff]  ;;  %v3827_v3 = vld [vmem:[#allocation172_spill] sm:$0xff] }
 0x223   :  { %1189 = vmatprep.subr.bf16.mxu0 %v3767_v4  ;;  %1353 = vmatprep.subr.bf16.mxu1 %v3768_v5  ;;  %v3828_v4 = vld [vmem:[#allocation174_spill] sm:$0xff]  ;;  %v3830_v5 = vld [vmem:[#allocation173_spill] sm:$0xff] }
 0x226   :  { %1190 = vmatpush1.bf16.msra.mxu0 %v3769_v6  ;;  %1354 = vmatpush1.bf16.msra.mxu1 %v3770_v7  ;;  %v3831_v6 = vld [vmem:[#allocation176_spill] sm:$0xff]  ;;  %v3832_v7 = vld [vmem:[#allocation178_spill] sm:$0xff] }
 0x227   :  { %1191 = vmatprep.subr.bf16.mxu0 %v3771_v8  ;;  %1355 = vmatprep.subr.bf16.mxu1 %v3772_v9  ;;  %v3833_v8 = vld [vmem:[#allocation175_spill] sm:$0xff]  ;;  %v3834_v9 = vld [vmem:[#allocation177_spill] sm:$0xff] }
 0x22a   :  { %1192 = vmatpush1.bf16.msra.mxu0 %v3773_v10  ;;  %1356 = vmatpush1.bf16.msra.mxu1 %v3774_v11  ;;  %v3835_v10 = vld [vmem:[#allocation180_spill] sm:$0xff]  ;;  %v3836_v11 = vld [vmem:[#allocation182_spill] sm:$0xff] }
 0x22b   :  { %1193 = vmatprep.subr.bf16.mxu0 %v3775_v12  ;;  %1357 = vmatprep.subr.bf16.mxu1 %v3776_v13  ;;  %v3837_v12 = vld [vmem:[#allocation179_spill] sm:$0xff]  ;;  %v3838_v13 = vld [vmem:[#allocation181_spill] sm:$0xff] }
 0x22e   :  { %1194 = vmatpush1.bf16.msra.mxu0 %v3777_v14  ;;  %1358 = vmatpush1.bf16.msra.mxu1 %v3778_v15  ;;  %v3839_v14 = vld [vmem:[#allocation184_spill] sm:$0xff]  ;;  %v3840_v15 = vld [vmem:[#allocation186_spill] sm:$0xff] }
 0x22f   :  { %1195 = vmatprep.subr.bf16.mxu0 %v3779_v16  ;;  %1359 = vmatprep.subr.bf16.mxu1 %v3780_v17  ;;  %v3841_v16 = vld [vmem:[#allocation183_spill] sm:$0xff]  ;;  %v3842_v17 = vld [vmem:[#allocation185_spill] sm:$0xff] }
 0x232   :  { %1196 = vmatpush1.bf16.msra.mxu0 %v3781_v18  ;;  %1360 = vmatpush1.bf16.msra.mxu1 %v3782_v19  ;;  %v3843_v18 = vld [vmem:[#allocation188_spill] sm:$0xff]  ;;  %v3844_v19 = vld [vmem:[#allocation190_spill] sm:$0xff] }
 0x233   :  { %1197 = vmatprep.subr.bf16.mxu0 %v3783_v20  ;;  %1361 = vmatprep.subr.bf16.mxu1 %v3784_v21  ;;  %v3845_v20 = vld [vmem:[#allocation187_spill] sm:$0xff]  ;;  %v3846_v21 = vld [vmem:[#allocation189_spill] sm:$0xff] }
 0x236   :  { %1198 = vmatpush1.bf16.msra.mxu0 %v3785_v29  ;;  %1362 = vmatpush1.bf16.msra.mxu1 %v3786_v30  ;;  %v3847_v29 = vld [vmem:[#allocation192_spill] sm:$0xff]  ;;  %v3848_v30 = vld [vmem:[#allocation194_spill] sm:$0xff] }
 0x237   :  { %1199 = vmatprep.subr.bf16.mxu0 %v3787_v27  ;;  %1363 = vmatprep.subr.bf16.mxu1 %v3788_v34  ;;  %v3849_v27 = vld [vmem:[#allocation191_spill] sm:$0xff]  ;;  %v3850_v34 = vld [vmem:[#allocation193_spill] sm:$0xff] }
 0x23a   :  { %1200 = vmatpush1.bf16.msra.mxu0 %v3789_v32  ;;  %1364 = vmatpush1.bf16.msra.mxu1 %v3790_v23  ;;  %v3851_v32 = vld [vmem:[#allocation196_spill] sm:$0xff]  ;;  %v3852_v23 = vld [vmem:[#allocation198_spill] sm:$0xff] }
 0x23b   :  { %1201 = vmatprep.subr.bf16.mxu0 %v3791_v26  ;;  %1365 = vmatprep.subr.bf16.mxu1 %v3792_v36  ;;  %v3853_v26 = vld [vmem:[#allocation22_spill] sm:$0xff] }
 0x23c   :  { %v2388_v36 = vcombine.low %v3853_v26, %v3853_v26 }
 0x23e   :  { %1202 = vmatpush1.bf16.msra.mxu0 %v3793_v35  ;;  %1366 = vmatpush1.bf16.msra.mxu1 %v3794_v31  ;;  %v3854_v35 = vld [vmem:[#allocation195_spill] sm:$0xff]  ;;  %v3855_v31 = vld [vmem:[#allocation197_spill] sm:$0xff] }
 0x23f   :  { %1203 = vmatprep.subr.bf16.mxu0 %v3795_v0  ;;  %1367 = vmatprep.subr.bf16.mxu1 %v3796_v24 }
 0x242   :  { %1204 = vmatpush1.bf16.msra.mxu0 %v3797_v22  ;;  %1368 = vmatpush1.bf16.msra.mxu1 %v3798_v25 }
 0x243   :  { %1205 = vmatprep.subr.bf16.mxu0 %v3799_v37  ;;  %1369 = vmatprep.subr.bf16.mxu1 %v3800_v38 }
 0x246   :  { %1206 = vmatpush1.bf16.msra.mxu0 %v3801_v39  ;;  %1370 = vmatpush1.bf16.msra.mxu1 %v3802_v40 }
 0x247   :  { %1207 = vmatprep.subr.bf16.mxu0 %v3803_v41  ;;  %1371 = vmatprep.subr.bf16.mxu1 %v3804_v42 }
 0x24a   :  { %1208 = vmatpush1.bf16.msra.mxu0 %v3805_v43  ;;  %1372 = vmatpush1.bf16.msra.mxu1 %v3806_v44 }
 0x24b   :  { %1209 = vmatprep.subr.bf16.mxu0 %v3807_v45  ;;  %1373 = vmatprep.subr.bf16.mxu1 %v3808_v46 }
 0x24e   :  { %1210 = vmatpush1.bf16.msra.mxu0 %v3809_v47  ;;  %1374 = vmatpush1.bf16.msra.mxu1 %v3810_v48 }
 0x24f   :  { %1211 = vmatprep.subr.bf16.mxu0 %v3811_v49  ;;  %1375 = vmatprep.subr.bf16.mxu1 %v3812_v50 }
 0x252   :  { %1212 = vmatpush1.bf16.msra.mxu0 %v3813_v51  ;;  %1376 = vmatpush1.bf16.msra.mxu1 %v3814_v52 }
 0x253   :  { %1213 = vmatprep.subr.bf16.mxu0 %v3815_v53  ;;  %1377 = vmatprep.subr.bf16.mxu1 %v3816_v54 }
 0x256   :  { %1214 = vmatpush1.bf16.msra.mxu0 %v3817_v55  ;;  %1378 = vmatpush1.bf16.msra.mxu1 %v3818_v57 }
 0x257   :  { %1215 = vmatprep.subr.bf16.mxu0 %v3819_v58  ;;  %1379 = vmatprep.subr.bf16.mxu1 %v3820_v59 }
 0x25a   :  { %1216 = vmatpush1.bf16.msra.mxu0 %v3821_v61  ;;  %1380 = vmatpush1.bf16.msra.mxu1 %v3822_v62 }
 0x25b   :  { %1226 = vmatprep.subr.bf16.mxu0 %v3823_v63  ;;  %1390 = vmatprep.subr.bf16.mxu1 %v3824_v1 }
 0x25d   :  { %1218 = vmatmul.mubr.bf16.vlgmr.msra.gmra.mrb[0].mxu0 %v2386_v60  ;;  %1382 = vmatmul.mubr.bf16.vlgmr.msra.gmra.mrb[0].mxu1 %v2386_v60 }
 0x25e   :  { %1227 = vmatpush1.bf16.msra.mxu0 %v3825_v56  ;;  %1391 = vmatpush1.bf16.msra.mxu1 %v3826_v2 }
 0x25f   :  { %1228 = vmatprep.subr.bf16.mxu0 %v3827_v3  ;;  %1392 = vmatprep.subr.bf16.mxu1 %v3828_v4 }
 0x260   :  { %1258 = vmatprep.mubr.bf16.mxu0 %v3676_v28  ;;  %1422 = vmatprep.mubr.bf16.mxu1 %v3676_v28 }
 0x262   :  { %1229 = vmatpush1.bf16.msra.mxu0 %v3829_v33  ;;  %1393 = vmatpush1.bf16.msra.mxu1 %v3830_v5 }
 0x263   :  { %1230 = vmatprep.subr.bf16.mxu0 %v3831_v6  ;;  %1394 = vmatprep.subr.bf16.mxu1 %v3832_v7 }
 0x266   :  { %1231 = vmatpush1.bf16.msra.mxu0 %v3833_v8  ;;  %1395 = vmatpush1.bf16.msra.mxu1 %v3834_v9 }
 0x267   :  { %1232 = vmatprep.subr.bf16.mxu0 %v3835_v10  ;;  %1396 = vmatprep.subr.bf16.mxu1 %v3836_v11 }
 0x26a   :  { %1233 = vmatpush1.bf16.msra.mxu0 %v3837_v12  ;;  %1397 = vmatpush1.bf16.msra.mxu1 %v3838_v13 }
 0x26b   :  { %1234 = vmatprep.subr.bf16.mxu0 %v3839_v14  ;;  %1398 = vmatprep.subr.bf16.mxu1 %v3840_v15 }
 0x26e   :  { %1235 = vmatpush1.bf16.msra.mxu0 %v3841_v16  ;;  %1399 = vmatpush1.bf16.msra.mxu1 %v3842_v17 }
 0x26f   :  { %1236 = vmatprep.subr.bf16.mxu0 %v3843_v18  ;;  %1400 = vmatprep.subr.bf16.mxu1 %v3844_v19 }
 0x272   :  { %1237 = vmatpush1.bf16.msra.mxu0 %v3845_v20  ;;  %1401 = vmatpush1.bf16.msra.mxu1 %v3846_v21 }
 0x273   :  { %1238 = vmatprep.subr.bf16.mxu0 %v3847_v29  ;;  %1402 = vmatprep.subr.bf16.mxu1 %v3848_v30 }
 0x276   :  { %1239 = vmatpush1.bf16.msra.mxu0 %v3849_v27  ;;  %1403 = vmatpush1.bf16.msra.mxu1 %v3850_v34 }
 0x277   :  { %1240 = vmatprep.subr.bf16.mxu0 %v3851_v32  ;;  %1404 = vmatprep.subr.bf16.mxu1 %v3852_v23 }
 0x27a   :  { %1241 = vmatpush1.bf16.msra.mxu0 %v3854_v35  ;;  %1405 = vmatpush1.bf16.msra.mxu1 %v3855_v31 }
 0x27d   :  { %1259 = vmatmul.mubr.bf16.vlgmr.msra.gmra.mrb[0].mxu0 %v2388_v36  ;;  %1423 = vmatmul.mubr.bf16.vlgmr.msra.gmra.mrb[0].mxu1 %v2388_v36 }
 0x27e   :  { %2594 = dma.done.wait [#allocation4], 28672 }
 0x27f   :  { %2595 = vsyncadd [#allocation4], 4294938624  ;;  %v1438_v0 = vld [vmem:[#allocation3 + $0x8] sm:$0xff]  ;;  %v1440_v24 = vld [vmem:[#allocation3 + $0x18] sm:$0xff]  ;;  %vm2295_vm1 = vcmask 31744  }
 0x280   :  { %v1437_v22 = vld [vmem:[#allocation3] sm:$0xff]  ;;  %1686 = vmatprep.subr.bf16.mxu0 %v1438_v0  ;;  %1850 = vmatprep.subr.bf16.mxu1 %v1440_v24  ;;  %v1439_v25 = vld [vmem:[#allocation3 + $0x10] sm:$0xff]  ;;  %v1442_v37 = vld [vmem:[#allocation3 + $0x28] sm:$0xff] }
 0x281   :  { %v1444_v38 = vld [vmem:[#allocation3 + $0x38] sm:$0xff]  ;;  %1687 = vmatpush1.bf16.msra.mxu0 %v1437_v22  ;;  %1851 = vmatpush1.bf16.msra.mxu1 %v1439_v25  ;;  %v1441_v39 = vld [vmem:[#allocation3 + $0x20] sm:$0xff]  ;;  %v1443_v40 = vld [vmem:[#allocation3 + $0x30] sm:$0xff] }
 0x282   :  { %1688 = vmatprep.subr.bf16.mxu0 %v1442_v37  ;;  %1852 = vmatprep.subr.bf16.mxu1 %v1444_v38  ;;  %v1446_v41 = vld [vmem:[#allocation3 + $0x48] sm:$0xff]  ;;  %v1448_v42 = vld [vmem:[#allocation3 + $0x58] sm:$0xff]  ;;  %v1445_v43 = vld [vmem:[#allocation3 + $0x40] sm:$0xff] }
 0x283   :  { %v1447_v44 = vld [vmem:[#allocation3 + $0x50] sm:$0xff]  ;;  %v1450_v45 = vld [vmem:[#allocation3 + $0x68] sm:$0xff]  ;;  %v1452_v46 = vld [vmem:[#allocation3 + $0x78] sm:$0xff] }
 0x284   :  { %v1449_v47 = vld [vmem:[#allocation3 + $0x60] sm:$0xff]  ;;  %v1451_v48 = vld [vmem:[#allocation3 + $0x70] sm:$0xff]  ;;  %v1454_v49 = vld [vmem:[#allocation3 + $0x88] sm:$0xff] }
 0x285   :  { %1689 = vmatpush1.bf16.msra.mxu0 %v1441_v39  ;;  %1853 = vmatpush1.bf16.msra.mxu1 %v1443_v40  ;;  %v1456_v50 = vld [vmem:[#allocation3 + $0x98] sm:$0xff]  ;;  %v1453_v51 = vld [vmem:[#allocation3 + $0x80] sm:$0xff]  ;;  %v1455_v52 = vld [vmem:[#allocation3 + $0x90] sm:$0xff] }
 0x286   :  { %1690 = vmatprep.subr.bf16.mxu0 %v1446_v41  ;;  %1854 = vmatprep.subr.bf16.mxu1 %v1448_v42  ;;  %v1458_v53 = vld [vmem:[#allocation3 + $0xa8] sm:$0xff]  ;;  %v1460_v54 = vld [vmem:[#allocation3 + $0xb8] sm:$0xff]  ;;  %v1457_v55 = vld [vmem:[#allocation3 + $0xa0] sm:$0xff] }
 0x287   :  { %v1459_v57 = vld [vmem:[#allocation3 + $0xb0] sm:$0xff]  ;;  %v1462_v58 = vld [vmem:[#allocation3 + $0xc8] sm:$0xff]  ;;  %v1464_v59 = vld [vmem:[#allocation3 + $0xd8] sm:$0xff] }
 0x288   :  { %v3423_v60 = vld [vmem:[#allocation2 + $0x38] sm:$0xff]  ;;  %v1463_v63 = vld [vmem:[#allocation3 + $0xd0] sm:$0xff]  ;;  %v1468_v56 = vld [vmem:[#allocation3 + $0xf8] sm:$0xff] }
 0x289   :  { %1691 = vmatpush1.bf16.msra.mxu0 %v1445_v43  ;;  %1855 = vmatpush1.bf16.msra.mxu1 %v1447_v44  ;;  %v2390_v61 = vcombine.high %v3423_v60, %v3423_v60  ;;  %v1461_v62 = vld [vmem:[#allocation3 + $0xc0] sm:$0xff]  ;;  %v1466_v1 = vld [vmem:[#allocation3 + $0xe8] sm:$0xff]  ;;  %v1467_v3 = vld [vmem:[#allocation3 + $0xf0] sm:$0xff]  ;;  %v2389_v38 = vcombine.low %v3423_v60, %v3423_v60 }
 0x28a   :  { %1692 = vmatprep.subr.bf16.mxu0 %v1450_v45  ;;  %1856 = vmatprep.subr.bf16.mxu1 %v1452_v46  ;;  %v1465_v2 = vld [vmem:[#allocation3 + $0xe0] sm:$0xff]  ;;  %v1470_v4 = vld [vmem:[#allocation3 + $0x108] sm:$0xff]  ;;  %v1472_v33 = vld [vmem:[#allocation3 + $0x118] sm:$0xff] }
 0x28b   :  { %1718 = vmatprep.mubr.bf16.mxu0 %v2390_v61  ;;  %1882 = vmatprep.mubr.bf16.mxu1 %v2390_v61  ;;  %v1469_v5 = vld [vmem:[#allocation3 + $0x100] sm:$0xff]  ;;  %v1471_v6 = vld [vmem:[#allocation3 + $0x110] sm:$0xff]  ;;  %v1474_v7 = vld [vmem:[#allocation3 + $0x128] sm:$0xff] }
 0x28c   :  { %v1476_v8 = vld [vmem:[#allocation3 + $0x138] sm:$0xff]  ;;  %v1473_v9 = vld [vmem:[#allocation3 + $0x120] sm:$0xff]  ;;  %v1475_v10 = vld [vmem:[#allocation3 + $0x130] sm:$0xff] }
 0x28d   :  { %1693 = vmatpush1.bf16.msra.mxu0 %v1449_v47  ;;  %1857 = vmatpush1.bf16.msra.mxu1 %v1451_v48  ;;  %v1478_v11 = vld [vmem:[#allocation3 + $0x148] sm:$0xff]  ;;  %v1480_v12 = vld [vmem:[#allocation3 + $0x158] sm:$0xff]  ;;  %v1477_v13 = vld [vmem:[#allocation3 + $0x140] sm:$0xff] }
 0x28e   :  { %1694 = vmatprep.subr.bf16.mxu0 %v1454_v49  ;;  %1858 = vmatprep.subr.bf16.mxu1 %v1456_v50  ;;  %v1479_v14 = vld [vmem:[#allocation3 + $0x150] sm:$0xff]  ;;  %v1482_v15 = vld [vmem:[#allocation3 + $0x168] sm:$0xff]  ;;  %v1484_v16 = vld [vmem:[#allocation3 + $0x178] sm:$0xff] }
 0x28f   :  { %v1481_v17 = vld [vmem:[#allocation3 + $0x160] sm:$0xff]  ;;  %v1483_v18 = vld [vmem:[#allocation3 + $0x170] sm:$0xff]  ;;  %v1486_v19 = vld [vmem:[#allocation3 + $0x188] sm:$0xff] }
 0x290   :  { %v1488_v20 = vld [vmem:[#allocation3 + $0x198] sm:$0xff]  ;;  %v1485_v21 = vld [vmem:[#allocation3 + $0x180] sm:$0xff]  ;;  %v1487_v29 = vld [vmem:[#allocation3 + $0x190] sm:$0xff] }
 0x291   :  { %1695 = vmatpush1.bf16.msra.mxu0 %v1453_v51  ;;  %1859 = vmatpush1.bf16.msra.mxu1 %v1455_v52  ;;  %v1490_v30 = vld [vmem:[#allocation3 + $0x1a8] sm:$0xff]  ;;  %v1492_v27 = vld [vmem:[#allocation3 + $0x1b8] sm:$0xff]  ;;  %v1489_v34 = vld [vmem:[#allocation3 + $0x1a0] sm:$0xff] }
 0x292   :  { %1696 = vmatprep.subr.bf16.mxu0 %v1458_v53  ;;  %1860 = vmatprep.subr.bf16.mxu1 %v1460_v54  ;;  %v1491_v32 = vld [vmem:[#allocation3 + $0x1b0] sm:$0xff]  ;;  %v1494_v23 = vld [vmem:[#allocation3 + $0x1c8] sm:$0xff]  ;;  %v1496_v26 = vld [vmem:[#allocation3 + $0x1d8] sm:$0xff] }
 0x293   :  { %v1493_v36 = vld [vmem:[#allocation3 + $0x1c0] sm:$0xff]  ;;  %v1495_v35 = vld [vmem:[#allocation3 + $0x1d0] sm:$0xff]  ;;  %v1498_v31 = vld [vmem:[#allocation3 + $0x1e8] sm:$0xff] }
 0x294   :  { %v1500_v0 = vld [vmem:[#allocation3 + $0x1f8] sm:$0xff]  ;;  %v1497_v24 = vld [vmem:[#allocation3 + $0x1e0] sm:$0xff]  ;;  %v1499_v22 = vld [vmem:[#allocation3 + $0x1f0] sm:$0xff] }
 0x295   :  { %1697 = vmatpush1.bf16.msra.mxu0 %v1457_v55  ;;  %1861 = vmatpush1.bf16.msra.mxu1 %v1459_v57  ;;  %v1502_v25 = vld [vmem:[#allocation3 + $0x208] sm:$0xff]  ;;  %v1504_v37 = vld [vmem:[#allocation3 + $0x218] sm:$0xff]  ;;  %v1501_v40 = vld [vmem:[#allocation3 + $0x200] sm:$0xff] }
 0x296   :  { %1698 = vmatprep.subr.bf16.mxu0 %v1462_v58  ;;  %1862 = vmatprep.subr.bf16.mxu1 %v1464_v59  ;;  %v3429_v39 = vld [vmem:[#allocation2 + $0x40] sm:$0xff]  ;;  %v1508_v43 = vld [vmem:[#allocation3 + $0x238] sm:$0xff]  ;;  %v1505_v45 = vld [vmem:[#allocation3 + $0x220] sm:$0xff] }
 0x297   :  { %v1503_v41 = vld [vmem:[#allocation3 + $0x210] sm:$0xff]  ;;  %v1506_v42 = vld [vmem:[#allocation3 + $0x228] sm:$0xff]  ;;  %v2392_v44 = vcombine.high %v3429_v39, %v3429_v39  ;;  %v1512_v48 = vld [vmem:[#allocation3 + $0x258] sm:$0xff] }
 0x298   :  { %v1507_v46 = vld [vmem:[#allocation3 + $0x230] sm:$0xff]  ;;  %v1510_v47 = vld [vmem:[#allocation3 + $0x248] sm:$0xff]  ;;  %v1509_v49 = vld [vmem:[#allocation3 + $0x240] sm:$0xff] }
 0x299   :  { %1699 = vmatpush1.bf16.msra.mxu0 %v1461_v62  ;;  %1863 = vmatpush1.bf16.msra.mxu1 %v1463_v63  ;;  %v1511_v50 = vld [vmem:[#allocation3 + $0x250] sm:$0xff]  ;;  %v1514_v51 = vld [vmem:[#allocation3 + $0x268] sm:$0xff]  ;;  %v1516_v52 = vld [vmem:[#allocation3 + $0x278] sm:$0xff] }
 0x29a   :  { %1700 = vmatprep.subr.bf16.mxu0 %v1466_v1  ;;  %1864 = vmatprep.subr.bf16.mxu1 %v1468_v56  ;;  %v1513_v53 = vld [vmem:[#allocation3 + $0x260] sm:$0xff]  ;;  %v1515_v54 = vld [vmem:[#allocation3 + $0x270] sm:$0xff]  ;;  %v1518_v55 = vld [vmem:[#allocation3 + $0x288] sm:$0xff] }
 0x29b   :  { %v1520_v57 = vld [vmem:[#allocation3 + $0x298] sm:$0xff]  ;;  %v1517_v58 = vld [vmem:[#allocation3 + $0x280] sm:$0xff]  ;;  %v1519_v59 = vld [vmem:[#allocation3 + $0x290] sm:$0xff] }
 0x29c   :  { %v1522_v60 = vld [vmem:[#allocation3 + $0x2a8] sm:$0xff]  ;;  %v1524_v61 = vld [vmem:[#allocation3 + $0x2b8] sm:$0xff]  ;;  %v1521_v62 = vld [vmem:[#allocation3 + $0x2a0] sm:$0xff] }
 0x29d   :  { %1701 = vmatpush1.bf16.msra.mxu0 %v1465_v2  ;;  %1865 = vmatpush1.bf16.msra.mxu1 %v1467_v3  ;;  %v1523_v63 = vld [vmem:[#allocation3 + $0x2b0] sm:$0xff]  ;;  %v1526_v1 = vld [vmem:[#allocation3 + $0x2c8] sm:$0xff]  ;;  %v1528_v56 = vld [vmem:[#allocation3 + $0x2d8] sm:$0xff] }
 0x29e   :  { %1702 = vmatprep.subr.bf16.mxu0 %v1470_v4  ;;  %1866 = vmatprep.subr.bf16.mxu1 %v1472_v33  ;;  %v1525_v2 = vld [vmem:[#allocation3 + $0x2c0] sm:$0xff]  ;;  %v1527_v3 = vld [vmem:[#allocation3 + $0x2d0] sm:$0xff]  ;;  %v1530_v4 = vld [vmem:[#allocation3 + $0x2e8] sm:$0xff] }
 0x29f   :  { %v1532_v33 = vld [vmem:[#allocation3 + $0x2f8] sm:$0xff] }
 0x2a1   :  { %1703 = vmatpush1.bf16.msra.mxu0 %v1469_v5  ;;  %1867 = vmatpush1.bf16.msra.mxu1 %v1471_v6  ;;  %v1529_v5 = vld [vmem:[#allocation3 + $0x2e0] sm:$0xff]  ;;  %v1531_v6 = vld [vmem:[#allocation3 + $0x2f0] sm:$0xff] }
 0x2a2   :  { %1704 = vmatprep.subr.bf16.mxu0 %v1474_v7  ;;  %1868 = vmatprep.subr.bf16.mxu1 %v1476_v8  ;;  %v1534_v7 = vld [vmem:[#allocation3 + $0x308] sm:$0xff]  ;;  %v1536_v8 = vld [vmem:[#allocation3 + $0x318] sm:$0xff] }
 0x2a5   :  { %1705 = vmatpush1.bf16.msra.mxu0 %v1473_v9  ;;  %1869 = vmatpush1.bf16.msra.mxu1 %v1475_v10  ;;  %v1533_v9 = vld [vmem:[#allocation3 + $0x300] sm:$0xff]  ;;  %v1535_v10 = vld [vmem:[#allocation3 + $0x310] sm:$0xff] }
 0x2a6   :  { %1706 = vmatprep.subr.bf16.mxu0 %v1478_v11  ;;  %1870 = vmatprep.subr.bf16.mxu1 %v1480_v12  ;;  %v1538_v11 = vld [vmem:[#allocation3 + $0x328] sm:$0xff]  ;;  %v1540_v12 = vld [vmem:[#allocation3 + $0x338] sm:$0xff] }
 0x2a9   :  { %1707 = vmatpush1.bf16.msra.mxu0 %v1477_v13  ;;  %1871 = vmatpush1.bf16.msra.mxu1 %v1479_v14  ;;  %v1537_v13 = vld [vmem:[#allocation3 + $0x320] sm:$0xff]  ;;  %v1539_v14 = vld [vmem:[#allocation3 + $0x330] sm:$0xff] }
 0x2aa   :  { %1708 = vmatprep.subr.bf16.mxu0 %v1482_v15  ;;  %1872 = vmatprep.subr.bf16.mxu1 %v1484_v16  ;;  %v1542_v15 = vld [vmem:[#allocation3 + $0x348] sm:$0xff]  ;;  %v1544_v16 = vld [vmem:[#allocation3 + $0x358] sm:$0xff] }
 0x2ad   :  { %1709 = vmatpush1.bf16.msra.mxu0 %v1481_v17  ;;  %1873 = vmatpush1.bf16.msra.mxu1 %v1483_v18  ;;  %v1541_v17 = vld [vmem:[#allocation3 + $0x340] sm:$0xff]  ;;  %v1543_v18 = vld [vmem:[#allocation3 + $0x350] sm:$0xff] }
 0x2ae   :  { %1710 = vmatprep.subr.bf16.mxu0 %v1486_v19  ;;  %1874 = vmatprep.subr.bf16.mxu1 %v1488_v20  ;;  %v1546_v19 = vld [vmem:[#allocation3 + $0x368] sm:$0xff]  ;;  %v1548_v20 = vld [vmem:[#allocation3 + $0x378] sm:$0xff] }
 0x2b1   :  { %1711 = vmatpush1.bf16.msra.mxu0 %v1485_v21  ;;  %1875 = vmatpush1.bf16.msra.mxu1 %v1487_v29  ;;  %v1545_v21 = vld [vmem:[#allocation3 + $0x360] sm:$0xff]  ;;  %v1547_v29 = vld [vmem:[#allocation3 + $0x370] sm:$0xff] }
 0x2b2   :  { %1712 = vmatprep.subr.bf16.mxu0 %v1490_v30  ;;  %1876 = vmatprep.subr.bf16.mxu1 %v1492_v27  ;;  %v1550_v30 = vld [vmem:[#allocation3 + $0x388] sm:$0xff]  ;;  %v1552_v27 = vld [vmem:[#allocation3 + $0x398] sm:$0xff] }
 0x2b5   :  { %1713 = vmatpush1.bf16.msra.mxu0 %v1489_v34  ;;  %1877 = vmatpush1.bf16.msra.mxu1 %v1491_v32  ;;  %v1549_v34 = vld [vmem:[#allocation3 + $0x380] sm:$0xff]  ;;  %v1551_v32 = vld [vmem:[#allocation3 + $0x390] sm:$0xff] }
 0x2b6   :  { %1714 = vmatprep.subr.bf16.mxu0 %v1494_v23  ;;  %1878 = vmatprep.subr.bf16.mxu1 %v1496_v26  ;;  %v1554_v23 = vld [vmem:[#allocation3 + $0x3a8] sm:$0xff]  ;;  %v1556_v26 = vld [vmem:[#allocation3 + $0x3b8] sm:$0xff] }
 0x2b9   :  { %1715 = vmatpush1.bf16.msra.mxu0 %v1493_v36  ;;  %1879 = vmatpush1.bf16.msra.mxu1 %v1495_v35  ;;  %v1553_v36 = vld [vmem:[#allocation3 + $0x3a0] sm:$0xff]  ;;  %v1555_v35 = vld [vmem:[#allocation3 + $0x3b0] sm:$0xff] }
 0x2ba   :  { %1716 = vmatprep.subr.bf16.mxu0 %v1498_v31  ;;  %1880 = vmatprep.subr.bf16.mxu1 %v1500_v0  ;;  %v1558_v31 = vld [vmem:[#allocation3 + $0x3c8] sm:$0xff]  ;;  %v1560_v0 = vld [vmem:[#allocation3 + $0x3d8] sm:$0xff] }
 0x2bd   :  { %1717 = vmatpush1.bf16.msra.mxu0 %v1497_v24  ;;  %1881 = vmatpush1.bf16.msra.mxu1 %v1499_v22  ;;  %v1557_v24 = vld [vmem:[#allocation3 + $0x3c0] sm:$0xff]  ;;  %v1559_v22 = vld [vmem:[#allocation3 + $0x3d0] sm:$0xff] }
 0x2be   :  { %1727 = vmatprep.subr.bf16.mxu0 %v1502_v25  ;;  %1891 = vmatprep.subr.bf16.mxu1 %v1504_v37  ;;  %v1562_v25 = vld [vmem:[#allocation3 + $0x3e8] sm:$0xff]  ;;  %v1564_v37 = vld [vmem:[#allocation3 + $0x3f8] sm:$0xff] }
 0x2c0   :  { %1719 = vmatmul.mubr.bf16.vlgmr.msra.gmra.mrb[0].mxu0 %v2389_v38  ;;  %1883 = vmatmul.mubr.bf16.vlgmr.msra.gmra.mrb[0].mxu1 %v2389_v38  ;;  %v1561_v38 = vld [vmem:[#allocation3 + $0x3e0] sm:$0xff] }
 0x2c1   :  { %1728 = vmatpush1.bf16.msra.mxu0 %v1501_v40  ;;  %1892 = vmatpush1.bf16.msra.mxu1 %v1503_v41  ;;  %v1563_v40 = vld [vmem:[#allocation3 + $0x3f0] sm:$0xff]  ;;  %v1566_v41 = vld [vmem:[#allocation3 + $0x408] sm:$0xff] }
 0x2c2   :  { %1729 = vmatprep.subr.bf16.mxu0 %v1506_v42  ;;  %1893 = vmatprep.subr.bf16.mxu1 %v1508_v43  ;;  %v1568_v42 = vld [vmem:[#allocation3 + $0x418] sm:$0xff]  ;;  %v2391_v43 = vcombine.low %v3429_v39, %v3429_v39  ;;  %v1569_v39 = vld [vmem:[#allocation3 + $0x420] sm:$0xff] }
 0x2c3   :  { %1759 = vmatprep.mubr.bf16.mxu0 %v2392_v44  ;;  %1923 = vmatprep.mubr.bf16.mxu1 %v2392_v44  ;;  %v3435_v44 = vld [vmem:[#allocation2 + $0x48] sm:$0xff] }
 0x2c5   :  { %1730 = vmatpush1.bf16.msra.mxu0 %v1505_v45  ;;  %1894 = vmatpush1.bf16.msra.mxu1 %v1507_v46  ;;  %v1565_v45 = vld [vmem:[#allocation3 + $0x400] sm:$0xff]  ;;  %v1567_v46 = vld [vmem:[#allocation3 + $0x410] sm:$0xff] }
 0x2c6   :  { %1731 = vmatprep.subr.bf16.mxu0 %v1510_v47  ;;  %1895 = vmatprep.subr.bf16.mxu1 %v1512_v48  ;;  %v1570_v47 = vld [vmem:[#allocation3 + $0x428] sm:$0xff]  ;;  %v1572_v48 = vld [vmem:[#allocation3 + $0x438] sm:$0xff] }
 0x2c9   :  { %1732 = vmatpush1.bf16.msra.mxu0 %v1509_v49  ;;  %1896 = vmatpush1.bf16.msra.mxu1 %v1511_v50  ;;  %v2394_v49 = vcombine.high %v3435_v44, %v3435_v44  ;;  %v1571_v50 = vld [vmem:[#allocation3 + $0x430] sm:$0xff] }
 0x2ca   :  { %1733 = vmatprep.subr.bf16.mxu0 %v1514_v51  ;;  %1897 = vmatprep.subr.bf16.mxu1 %v1516_v52  ;;  %v1574_v51 = vld [vmem:[#allocation3 + $0x448] sm:$0xff]  ;;  %v1576_v52 = vld [vmem:[#allocation3 + $0x458] sm:$0xff] }
 0x2cd   :  { %1734 = vmatpush1.bf16.msra.mxu0 %v1513_v53  ;;  %1898 = vmatpush1.bf16.msra.mxu1 %v1515_v54  ;;  %v1573_v53 = vld [vmem:[#allocation3 + $0x440] sm:$0xff]  ;;  %v1575_v54 = vld [vmem:[#allocation3 + $0x450] sm:$0xff] }
 0x2ce   :  { %1735 = vmatprep.subr.bf16.mxu0 %v1518_v55  ;;  %1899 = vmatprep.subr.bf16.mxu1 %v1520_v57  ;;  %v1578_v55 = vld [vmem:[#allocation3 + $0x468] sm:$0xff]  ;;  %v1580_v57 = vld [vmem:[#allocation3 + $0x478] sm:$0xff] }
 0x2d1   :  { %1736 = vmatpush1.bf16.msra.mxu0 %v1517_v58  ;;  %1900 = vmatpush1.bf16.msra.mxu1 %v1519_v59  ;;  %v1577_v58 = vld [vmem:[#allocation3 + $0x460] sm:$0xff]  ;;  %v1579_v59 = vld [vmem:[#allocation3 + $0x470] sm:$0xff] }
 0x2d2   :  { %1737 = vmatprep.subr.bf16.mxu0 %v1522_v60  ;;  %1901 = vmatprep.subr.bf16.mxu1 %v1524_v61  ;;  %v1582_v60 = vld [vmem:[#allocation3 + $0x488] sm:$0xff]  ;;  %v1584_v61 = vld [vmem:[#allocation3 + $0x498] sm:$0xff] }
 0x2d5   :  { %1738 = vmatpush1.bf16.msra.mxu0 %v1521_v62  ;;  %1902 = vmatpush1.bf16.msra.mxu1 %v1523_v63  ;;  %v1581_v62 = vld [vmem:[#allocation3 + $0x480] sm:$0xff]  ;;  %v1583_v63 = vld [vmem:[#allocation3 + $0x490] sm:$0xff] }
 0x2d6   :  { %1739 = vmatprep.subr.bf16.mxu0 %v1526_v1  ;;  %1903 = vmatprep.subr.bf16.mxu1 %v1528_v56  ;;  %v1586_v1 = vld [vmem:[#allocation3 + $0x4a8] sm:$0xff]  ;;  %v1588_v56 = vld [vmem:[#allocation3 + $0x4b8] sm:$0xff] }
 0x2d9   :  { %1740 = vmatpush1.bf16.msra.mxu0 %v1525_v2  ;;  %1904 = vmatpush1.bf16.msra.mxu1 %v1527_v3  ;;  %v1585_v2 = vld [vmem:[#allocation3 + $0x4a0] sm:$0xff]  ;;  %v1587_v3 = vld [vmem:[#allocation3 + $0x4b0] sm:$0xff] }
 0x2da   :  { %1741 = vmatprep.subr.bf16.mxu0 %v1530_v4  ;;  %1905 = vmatprep.subr.bf16.mxu1 %v1532_v33  ;;  %v1590_v4 = vld [vmem:[#allocation3 + $0x4c8] sm:$0xff]  ;;  %v1592_v33 = vld [vmem:[#allocation3 + $0x4d8] sm:$0xff] }
 0x2dd   :  { %1742 = vmatpush1.bf16.msra.mxu0 %v1529_v5  ;;  %1906 = vmatpush1.bf16.msra.mxu1 %v1531_v6  ;;  %v1589_v5 = vld [vmem:[#allocation3 + $0x4c0] sm:$0xff]  ;;  %v1591_v6 = vld [vmem:[#allocation3 + $0x4d0] sm:$0xff] }
 0x2de   :  { %1743 = vmatprep.subr.bf16.mxu0 %v1534_v7  ;;  %1907 = vmatprep.subr.bf16.mxu1 %v1536_v8  ;;  %v1594_v7 = vld [vmem:[#allocation3 + $0x4e8] sm:$0xff]  ;;  %v1596_v8 = vld [vmem:[#allocation3 + $0x4f8] sm:$0xff] }
 0x2e1   :  { %1744 = vmatpush1.bf16.msra.mxu0 %v1533_v9  ;;  %1908 = vmatpush1.bf16.msra.mxu1 %v1535_v10  ;;  %v1593_v9 = vld [vmem:[#allocation3 + $0x4e0] sm:$0xff]  ;;  %v1595_v10 = vld [vmem:[#allocation3 + $0x4f0] sm:$0xff] }
 0x2e2   :  { %1745 = vmatprep.subr.bf16.mxu0 %v1538_v11  ;;  %1909 = vmatprep.subr.bf16.mxu1 %v1540_v12  ;;  %v1598_v11 = vld [vmem:[#allocation3 + $0x508] sm:$0xff]  ;;  %v1600_v12 = vld [vmem:[#allocation3 + $0x518] sm:$0xff] }
 0x2e5   :  { %1746 = vmatpush1.bf16.msra.mxu0 %v1537_v13  ;;  %1910 = vmatpush1.bf16.msra.mxu1 %v1539_v14  ;;  %v1597_v13 = vld [vmem:[#allocation3 + $0x500] sm:$0xff]  ;;  %v1599_v14 = vld [vmem:[#allocation3 + $0x510] sm:$0xff] }
 0x2e6   :  { %1747 = vmatprep.subr.bf16.mxu0 %v1542_v15  ;;  %1911 = vmatprep.subr.bf16.mxu1 %v1544_v16  ;;  %v1602_v15 = vld [vmem:[#allocation3 + $0x528] sm:$0xff]  ;;  %v1604_v16 = vld [vmem:[#allocation3 + $0x538] sm:$0xff] }
 0x2e9   :  { %1748 = vmatpush1.bf16.msra.mxu0 %v1541_v17  ;;  %1912 = vmatpush1.bf16.msra.mxu1 %v1543_v18  ;;  %v1601_v17 = vld [vmem:[#allocation3 + $0x520] sm:$0xff]  ;;  %v1603_v18 = vld [vmem:[#allocation3 + $0x530] sm:$0xff] }
 0x2ea   :  { %1749 = vmatprep.subr.bf16.mxu0 %v1546_v19  ;;  %1913 = vmatprep.subr.bf16.mxu1 %v1548_v20  ;;  %v1606_v19 = vld [vmem:[#allocation3 + $0x548] sm:$0xff]  ;;  %v1608_v20 = vld [vmem:[#allocation3 + $0x558] sm:$0xff] }
 0x2ed   :  { %1750 = vmatpush1.bf16.msra.mxu0 %v1545_v21  ;;  %1914 = vmatpush1.bf16.msra.mxu1 %v1547_v29  ;;  %v1605_v21 = vld [vmem:[#allocation3 + $0x540] sm:$0xff]  ;;  %v1607_v29 = vld [vmem:[#allocation3 + $0x550] sm:$0xff] }
 0x2ee   :  { %1751 = vmatprep.subr.bf16.mxu0 %v1550_v30  ;;  %1915 = vmatprep.subr.bf16.mxu1 %v1552_v27  ;;  %v1610_v30 = vld [vmem:[#allocation3 + $0x568] sm:$0xff]  ;;  %v1612_v27 = vld [vmem:[#allocation3 + $0x578] sm:$0xff] }
 0x2f1   :  { %1752 = vmatpush1.bf16.msra.mxu0 %v1549_v34  ;;  %1916 = vmatpush1.bf16.msra.mxu1 %v1551_v32  ;;  %v1609_v34 = vld [vmem:[#allocation3 + $0x560] sm:$0xff]  ;;  %v1611_v32 = vld [vmem:[#allocation3 + $0x570] sm:$0xff] }
 0x2f2   :  { %1753 = vmatprep.subr.bf16.mxu0 %v1554_v23  ;;  %1917 = vmatprep.subr.bf16.mxu1 %v1556_v26  ;;  %v1614_v23 = vld [vmem:[#allocation3 + $0x588] sm:$0xff]  ;;  %v1616_v26 = vld [vmem:[#allocation3 + $0x598] sm:$0xff] }
 0x2f5   :  { %1754 = vmatpush1.bf16.msra.mxu0 %v1553_v36  ;;  %1918 = vmatpush1.bf16.msra.mxu1 %v1555_v35  ;;  %v1613_v36 = vld [vmem:[#allocation3 + $0x580] sm:$0xff]  ;;  %v1615_v35 = vld [vmem:[#allocation3 + $0x590] sm:$0xff] }
 0x2f6   :  { %1755 = vmatprep.subr.bf16.mxu0 %v1558_v31  ;;  %1919 = vmatprep.subr.bf16.mxu1 %v1560_v0  ;;  %v1618_v31 = vld [vmem:[#allocation3 + $0x5a8] sm:$0xff]  ;;  %v1620_v0 = vld [vmem:[#allocation3 + $0x5b8] sm:$0xff] }
 0x2f9   :  { %1756 = vmatpush1.bf16.msra.mxu0 %v1557_v24  ;;  %1920 = vmatpush1.bf16.msra.mxu1 %v1559_v22  ;;  %v1617_v24 = vld [vmem:[#allocation3 + $0x5a0] sm:$0xff]  ;;  %v1619_v22 = vld [vmem:[#allocation3 + $0x5b0] sm:$0xff] }
 0x2fa   :  { %1757 = vmatprep.subr.bf16.mxu0 %v1562_v25  ;;  %1921 = vmatprep.subr.bf16.mxu1 %v1564_v37  ;;  %v1622_v25 = vld [vmem:[#allocation3 + $0x5c8] sm:$0xff]  ;;  %v1624_v37 = vld [vmem:[#allocation3 + $0x5d8] sm:$0xff] }
 0x2fd   :  { %1758 = vmatpush1.bf16.msra.mxu0 %v1561_v38  ;;  %1922 = vmatpush1.bf16.msra.mxu1 %v1563_v40  ;;  %v1621_v38 = vld [vmem:[#allocation3 + $0x5c0] sm:$0xff]  ;;  %v1623_v40 = vld [vmem:[#allocation3 + $0x5d0] sm:$0xff] }
 0x2fe   :  { %1768 = vmatprep.subr.bf16.mxu0 %v1566_v41  ;;  %1932 = vmatprep.subr.bf16.mxu1 %v1568_v42  ;;  %v1626_v41 = vld [vmem:[#allocation3 + $0x5e8] sm:$0xff]  ;;  %v1628_v42 = vld [vmem:[#allocation3 + $0x5f8] sm:$0xff] }
 0x300   :  { %1760 = vmatmul.mubr.bf16.vlgmr.msra.gmra.mrb[0].mxu0 %v2391_v43  ;;  %1924 = vmatmul.mubr.bf16.vlgmr.msra.gmra.mrb[0].mxu1 %v2391_v43  ;;  %v1625_v43 = vld [vmem:[#allocation3 + $0x5e0] sm:$0xff] }
 0x301   :  { %1769 = vmatpush1.bf16.msra.mxu0 %v1565_v45  ;;  %1933 = vmatpush1.bf16.msra.mxu1 %v1567_v46  ;;  %v1627_v45 = vld [vmem:[#allocation3 + $0x5f0] sm:$0xff]  ;;  %v1630_v46 = vld [vmem:[#allocation3 + $0x608] sm:$0xff] }
 0x302   :  { %1770 = vmatprep.subr.bf16.mxu0 %v1570_v47  ;;  %1934 = vmatprep.subr.bf16.mxu1 %v1572_v48  ;;  %v1632_v47 = vld [vmem:[#allocation3 + $0x618] sm:$0xff]  ;;  %v2393_v48 = vcombine.low %v3435_v44, %v3435_v44  ;;  %v1637_v44 = vld [vmem:[#allocation3 + $0x640] sm:$0xff] }
 0x303   :  { %1800 = vmatprep.mubr.bf16.mxu0 %v2394_v49  ;;  %1964 = vmatprep.mubr.bf16.mxu1 %v2394_v49  ;;  %v1629_v49 = vld [vmem:[#allocation3 + $0x600] sm:$0xff] }
 0x305   :  { %1771 = vmatpush1.bf16.msra.mxu0 %v1569_v39  ;;  %1935 = vmatpush1.bf16.msra.mxu1 %v1571_v50  ;;  %v1631_v39 = vld [vmem:[#allocation3 + $0x610] sm:$0xff]  ;;  %v1634_v50 = vld [vmem:[#allocation3 + $0x628] sm:$0xff] }
 0x306   :  { %1772 = vmatprep.subr.bf16.mxu0 %v1574_v51  ;;  %1936 = vmatprep.subr.bf16.mxu1 %v1576_v52  ;;  %v1636_v51 = vld [vmem:[#allocation3 + $0x638] sm:$0xff]  ;;  %v1633_v52 = vld [vmem:[#allocation3 + $0x620] sm:$0xff] }
 0x309   :  { %1773 = vmatpush1.bf16.msra.mxu0 %v1573_v53  ;;  %1937 = vmatpush1.bf16.msra.mxu1 %v1575_v54  ;;  %v1635_v53 = vld [vmem:[#allocation3 + $0x630] sm:$0xff]  ;;  %v1638_v54 = vld [vmem:[#allocation3 + $0x648] sm:$0xff] }
 0x30a   :  { %1774 = vmatprep.subr.bf16.mxu0 %v1578_v55  ;;  %1938 = vmatprep.subr.bf16.mxu1 %v1580_v57  ;;  %v1640_v55 = vld [vmem:[#allocation3 + $0x658] sm:$0xff]  ;;  %v1639_v57 = vld [vmem:[#allocation3 + $0x650] sm:$0xff] }
 0x30d   :  { %1775 = vmatpush1.bf16.msra.mxu0 %v1577_v58  ;;  %1939 = vmatpush1.bf16.msra.mxu1 %v1579_v59  ;;  %v1642_v58 = vld [vmem:[#allocation3 + $0x668] sm:$0xff]  ;;  %v1644_v59 = vld [vmem:[#allocation3 + $0x678] sm:$0xff] }
 0x30e   :  { %1776 = vmatprep.subr.bf16.mxu0 %v1582_v60  ;;  %1940 = vmatprep.subr.bf16.mxu1 %v1584_v61  ;;  %v1641_v60 = vld [vmem:[#allocation3 + $0x660] sm:$0xff]  ;;  %v1643_v61 = vld [vmem:[#allocation3 + $0x670] sm:$0xff] }
 0x311   :  { %1777 = vmatpush1.bf16.msra.mxu0 %v1581_v62  ;;  %1941 = vmatpush1.bf16.msra.mxu1 %v1583_v63  ;;  %v1646_v62 = vld [vmem:[#allocation3 + $0x688] sm:$0xff]  ;;  %v1648_v63 = vld [vmem:[#allocation3 + $0x698] sm:$0xff] }
 0x312   :  { %1778 = vmatprep.subr.bf16.mxu0 %v1586_v1  ;;  %1942 = vmatprep.subr.bf16.mxu1 %v1588_v56  ;;  %v1647_v1 = vld [vmem:[#allocation3 + $0x690] sm:$0xff]  ;;  %v1650_v56 = vld [vmem:[#allocation3 + $0x6a8] sm:$0xff] }
 0x315   :  { %1779 = vmatpush1.bf16.msra.mxu0 %v1585_v2  ;;  %1943 = vmatpush1.bf16.msra.mxu1 %v1587_v3  ;;  %v1652_v2 = vld [vmem:[#allocation3 + $0x6b8] sm:$0xff]  ;;  %v1649_v3 = vld [vmem:[#allocation3 + $0x6a0] sm:$0xff] }
 0x316   :  { %1780 = vmatprep.subr.bf16.mxu0 %v1590_v4  ;;  %1944 = vmatprep.subr.bf16.mxu1 %v1592_v33  ;;  %v1651_v4 = vld [vmem:[#allocation3 + $0x6b0] sm:$0xff]  ;;  %v1654_v33 = vld [vmem:[#allocation3 + $0x6c8] sm:$0xff] }
 0x319   :  { %1781 = vmatpush1.bf16.msra.mxu0 %v1589_v5  ;;  %1945 = vmatpush1.bf16.msra.mxu1 %v1591_v6  ;;  %v1656_v5 = vld [vmem:[#allocation3 + $0x6d8] sm:$0xff]  ;;  %v1653_v6 = vld [vmem:[#allocation3 + $0x6c0] sm:$0xff] }
 0x31a   :  { %1782 = vmatprep.subr.bf16.mxu0 %v1594_v7  ;;  %1946 = vmatprep.subr.bf16.mxu1 %v1596_v8  ;;  %v1655_v7 = vld [vmem:[#allocation3 + $0x6d0] sm:$0xff]  ;;  %v1658_v8 = vld [vmem:[#allocation3 + $0x6e8] sm:$0xff] }
 0x31d   :  { %1783 = vmatpush1.bf16.msra.mxu0 %v1593_v9  ;;  %1947 = vmatpush1.bf16.msra.mxu1 %v1595_v10  ;;  %v1660_v9 = vld [vmem:[#allocation3 + $0x6f8] sm:$0xff]  ;;  %v1657_v10 = vld [vmem:[#allocation3 + $0x6e0] sm:$0xff] }
 0x31e   :  { %1784 = vmatprep.subr.bf16.mxu0 %v1598_v11  ;;  %1948 = vmatprep.subr.bf16.mxu1 %v1600_v12  ;;  %v1659_v11 = vld [vmem:[#allocation3 + $0x6f0] sm:$0xff]  ;;  %v2527_v12 = vld [vmem:[#allocation2 + $0x50] ss:$0 sps:$4 sm:$0xff]  }
 0x321   :  { %1785 = vmatpush1.bf16.msra.mxu0 %v1597_v13  ;;  %1949 = vmatpush1.bf16.msra.mxu1 %v1599_v14  ;;  %v3443_v13 = vld [vmem:[#allocation7] sm:$0xff]  ;;  %v3445_v14 = vld [vmem:[#allocation7 + $0x10] sm:$0xff] }
 0x322   :  { %1786 = vmatprep.subr.bf16.mxu0 %v1602_v15  ;;  %1950 = vmatprep.subr.bf16.mxu1 %v1604_v16  ;;  %v3447_v15 = vld [vmem:[#allocation7 + $0x8] sm:$0xff]  ;;  %v3449_v16 = vld [vmem:[#allocation7 + $0x18] sm:$0xff] }
 0x325   :  { %1787 = vmatpush1.bf16.msra.mxu0 %v1601_v17  ;;  %1951 = vmatpush1.bf16.msra.mxu1 %v1603_v18  ;;  %v2148_v17 = vrot.slane %v3447_v15, 4  ;;  %v2150_v18 = vrot.slane %v3449_v16, 4 }
 0x326   :  { %1788 = vmatprep.subr.bf16.mxu0 %v1606_v19  ;;  %1952 = vmatprep.subr.bf16.mxu1 %v1608_v20  ;;  %v2147_v19 = vrot.slane %v3443_v13, 4  ;;  %v2149_v20 = vrot.slane %v3445_v14, 4 }
 0x329   :  { %1789 = vmatpush1.bf16.msra.mxu0 %v1605_v21  ;;  %1953 = vmatpush1.bf16.msra.mxu1 %v1607_v29 }
 0x32a   :  { %1790 = vmatprep.subr.bf16.mxu0 %v1610_v30  ;;  %1954 = vmatprep.subr.bf16.mxu1 %v1612_v27 }
 0x32d   :  { %1791 = vmatpush1.bf16.msra.mxu0 %v1609_v34  ;;  %1955 = vmatpush1.bf16.msra.mxu1 %v1611_v32 }
 0x32e   :  { %1792 = vmatprep.subr.bf16.mxu0 %v1614_v23  ;;  %1956 = vmatprep.subr.bf16.mxu1 %v1616_v26 }
 0x331   :  { %1793 = vmatpush1.bf16.msra.mxu0 %v1613_v36  ;;  %1957 = vmatpush1.bf16.msra.mxu1 %v1615_v35 }
 0x332   :  { %1794 = vmatprep.subr.bf16.mxu0 %v1618_v31  ;;  %1958 = vmatprep.subr.bf16.mxu1 %v1620_v0 }
 0x335   :  { %1795 = vmatpush1.bf16.msra.mxu0 %v1617_v24  ;;  %1959 = vmatpush1.bf16.msra.mxu1 %v1619_v22 }
 0x336   :  { %1796 = vmatprep.subr.bf16.mxu0 %v1622_v25  ;;  %1960 = vmatprep.subr.bf16.mxu1 %v1624_v37 }
 0x339   :  { %1797 = vmatpush1.bf16.msra.mxu0 %v1621_v38  ;;  %1961 = vmatpush1.bf16.msra.mxu1 %v1623_v40 }
 0x33a   :  { %1798 = vmatprep.subr.bf16.mxu0 %v1626_v41  ;;  %1962 = vmatprep.subr.bf16.mxu1 %v1628_v42 }
 0x33d   :  { %1799 = vmatpush1.bf16.msra.mxu0 %v1625_v43  ;;  %1963 = vmatpush1.bf16.msra.mxu1 %v1627_v45 }
 0x33e   :  { %1809 = vmatprep.subr.bf16.mxu0 %v1630_v46  ;;  %1973 = vmatprep.subr.bf16.mxu1 %v1632_v47 }
 0x340   :  { %1801 = vmatmul.mubr.bf16.vlgmr.msra.gmra.mrb[0].mxu0 %v2393_v48  ;;  %1965 = vmatmul.mubr.bf16.vlgmr.msra.gmra.mrb[0].mxu1 %v2393_v48 }
 0x341   :  { %1810 = vmatpush1.bf16.msra.mxu0 %v1629_v49  ;;  %1974 = vmatpush1.bf16.msra.mxu1 %v1631_v39 }
 0x342   :  { %1811 = vmatprep.subr.bf16.mxu0 %v1634_v50  ;;  %1975 = vmatprep.subr.bf16.mxu1 %v1636_v51 }
 0x343   :  { %1841 = vmatprep.mubr.bf16.mxu0 %v3676_v28  ;;  %2005 = vmatprep.mubr.bf16.mxu1 %v3676_v28  ;;  %v1645_v28 = vld [vmem:[#allocation3 + $0x680] sm:$0xff] }
 0x345   :  { %1812 = vmatpush1.bf16.msra.mxu0 %v1633_v52  ;;  %1976 = vmatpush1.bf16.msra.mxu1 %v1635_v53 }
 0x346   :  { %1813 = vmatprep.subr.bf16.mxu0 %v1638_v54  ;;  %1977 = vmatprep.subr.bf16.mxu1 %v1640_v55 }
 0x349   :  { %1814 = vmatpush1.bf16.msra.mxu0 %v1637_v44  ;;  %1978 = vmatpush1.bf16.msra.mxu1 %v1639_v57 }
 0x34a   :  { %1815 = vmatprep.subr.bf16.mxu0 %v1642_v58  ;;  %1979 = vmatprep.subr.bf16.mxu1 %v1644_v59 }
 0x34d   :  { %1816 = vmatpush1.bf16.msra.mxu0 %v1641_v60  ;;  %1980 = vmatpush1.bf16.msra.mxu1 %v1643_v61 }
 0x34e   :  { %1817 = vmatprep.subr.bf16.mxu0 %v1646_v62  ;;  %1981 = vmatprep.subr.bf16.mxu1 %v1648_v63 }
 0x351   :  { %1818 = vmatpush1.bf16.msra.mxu0 %v1645_v28  ;;  %1982 = vmatpush1.bf16.msra.mxu1 %v1647_v1 }
 0x352   :  { %1819 = vmatprep.subr.bf16.mxu0 %v1650_v56  ;;  %1983 = vmatprep.subr.bf16.mxu1 %v1652_v2 }
 0x355   :  { %1820 = vmatpush1.bf16.msra.mxu0 %v1649_v3  ;;  %1984 = vmatpush1.bf16.msra.mxu1 %v1651_v4 }
 0x356   :  { %1821 = vmatprep.subr.bf16.mxu0 %v1654_v33  ;;  %1985 = vmatprep.subr.bf16.mxu1 %v1656_v5 }
 0x359   :  { %1822 = vmatpush1.bf16.msra.mxu0 %v1653_v6  ;;  %1986 = vmatpush1.bf16.msra.mxu1 %v1655_v7 }
 0x35a   :  { %1823 = vmatprep.subr.bf16.mxu0 %v1658_v8  ;;  %1987 = vmatprep.subr.bf16.mxu1 %v1660_v9 }
 0x35d   :  { %1824 = vmatpush1.bf16.msra.mxu0 %v1657_v10  ;;  %1988 = vmatpush1.bf16.msra.mxu1 %v1659_v11 }
 0x35e   :  { %2155 = vmatprep.subr.mxu1 %v2148_v17  ;;  %2225 = vmatprep.subr.mxu0 %v2150_v18 }
 0x360   :  { %1842 = vmatmul.mubr.bf16.vlgmr.msra.gmra.mrb[0].mxu0 %v2527_v12  ;;  %2006 = vmatmul.mubr.bf16.vlgmr.msra.gmra.mrb[0].mxu1 %v2527_v12 }
 0x366   :  { %2156 = vmatpush1.xpose.msra.mxu1 %v2147_v19  ;;  %2226 = vmatpush1.xpose.msra.mxu0 %v2149_v20 }
 0x433   :  { %v1843_v21 = vpop.f32.mrb[0].mxu0  ;;  %v2007_v29 = vpop.f32.mrb[0].mxu1 }
 0x434   :  { %v2022_v30 = vrot.slane %v1843_v21, 4  ;;  %v2034_v27 = vrot.slane %v2007_v29, 4  ;;  %v1845_v34 = vpop.f32.mrb[1].mxu0  ;;  %v2009_v32 = vpop.f32.mrb[1].mxu1 }
 0x435   :  { %v2028_v23 = vrot.slane %v1845_v34, 4  ;;  %v2040_v26 = vrot.slane %v2009_v32, 4  ;;  %v1847_v36 = vpop.f32.mrb[2].mxu0  ;;  %v2011_v35 = vpop.f32.mrb[2].mxu1 }
 0x436   :  { %v2023_v31 = vadd.f32 %v2022_v30, %v1843_v21  ;;  %v2035_v0 = vadd.f32 %v2034_v27, %v2007_v29  ;;  %v1848_v24 = vpop.f32.mrb[3].mxu0  ;;  %v2012_v22 = vpop.f32.mrb[3].mxu1 }
 0x437   :  { %v2029_v25 = vadd.f32 %v2028_v23, %v1845_v34  ;;  %v2041_v37 = vadd.f32 %v2040_v26, %v2009_v32 }
 0x438   :  { %v2024_v38 = vrot.slane %v2023_v31, 2  ;;  %v2036_v40 = vrot.slane %v2035_v0, 2 }
 0x439   :  { %v2030_v41 = vrot.slane %v2029_v25, 2  ;;  %v2042_v42 = vrot.slane %v2041_v37, 2 }
 0x43a   :  { %v2025_v43 = vadd.f32 %v2024_v38, %v2023_v31  ;;  %v2037_v45 = vadd.f32 %v2036_v40, %v2035_v0  ;;  %v2099_v38 = vlaneseq }
 0x43b   :  { %v2031_v46 = vadd.f32 %v2030_v41, %v2029_v25  ;;  %v2043_v47 = vadd.f32 %v2042_v42, %v2041_v37 }
 0x43c   :  { %v2026_v48 = vrot.slane %v2025_v43, 1  ;;  %v2038_v49 = vrot.slane %v2037_v45, 1  ;;  %v3463_v40 = vshrl.u32 %v2099_v38, 7 }
 0x43d   :  { %v2032_v39 = vrot.slane %v2031_v46, 1  ;;  %v2044_v50 = vrot.slane %v2043_v47, 1 }
 0x43e   :  { %v2027_v51 = vadd.f32 %v2026_v48, %v2025_v43  ;;  %v2039_v52 = vadd.f32 %v2038_v49, %v2037_v45  ;;  %v2101_v41 = vsub.s32 0, %v3463_v40  ;;  %v2121_v43 = vsub.s32 1, %v3463_v40 }
 0x43f   :  { %v2033_v53 = vadd.f32 %v2032_v39, %v2031_v46  ;;  %v2045_v54 = vadd.f32 %v2044_v50, %v2043_v47 }
 0x440   :  { %v2047_v55 = vmul.f32 0.125, %v2027_v51  ;;  %v2049_v44 = vmul.f32 0.125, %v2039_v52  ;;  %v2122_v51 = vrot.slane %v3443_v13, %v2121_v43 }
 0x441   :  { %v2048_v57 = vmul.f32 0.125, %v2033_v53  ;;  %v2050_v58 = vmul.f32 0.125, %v2045_v54 }
 0x442   :  { %v2051_v59 = vsub.f32 %v1843_v21, %v2047_v55  ;;  %v2053_v60 = vsub.f32 %v2007_v29, %v2049_v44  ;;  %v2130_v55 = vrot.slane %v3445_v14, %v2121_v43 }
 0x443   :  { %v3455_v61 = vsub.f32 %v1845_v34, %v2048_v57  ;;  %v3457_v62 = vsub.f32 %v2009_v32, %v2050_v58  ;;  %v2126_v57 = vrot.slane %v3447_v15, %v2121_v43 }
 0x444   :  { %v2055_v63 = vmul.f32 %v2051_v59, %v2051_v59  ;;  %v2057_v28 = vmul.f32 %v2053_v60, %v2053_v60 }
 0x445   :  { %v2056_v1 = vmul.f32 %v3455_v61, %v3455_v61  ;;  %v2058_v56 = vmul.f32 %v3457_v62, %v3457_v62 }
 0x446   :  { %v2059_v2 = vrot.slane %v2055_v63, 4  ;;  %v2071_v3 = vrot.slane %v2057_v28, 4 }
 0x447   :  { %v2065_v4 = vrot.slane %v2056_v1, 4  ;;  %v2077_v33 = vrot.slane %v2058_v56, 4 }
 0x448   :  { %v2060_v5 = vadd.f32 %v2059_v2, %v2055_v63  ;;  %v2072_v6 = vadd.f32 %v2071_v3, %v2057_v28  ;;  %v2134_v28 = vrot.slane %v3449_v16, %v2121_v43 }
 0x449   :  { %v2066_v7 = vadd.f32 %v2065_v4, %v2056_v1  ;;  %v2078_v8 = vadd.f32 %v2077_v33, %v2058_v56 }
 0x44a   :  { %v2061_v9 = vrot.slane %v2060_v5, 2  ;;  %v2073_v10 = vrot.slane %v2072_v6, 2 }
 0x44b   :  { %v2067_v11 = vrot.slane %v2066_v7, 2  ;;  %v2079_v12 = vrot.slane %v2078_v8, 2 }
 0x44c   :  { %v2062_v17 = vadd.f32 %v2061_v9, %v2060_v5  ;;  %v2074_v18 = vadd.f32 %v2073_v10, %v2072_v6 }
 0x44d   :  { %v2068_v19 = vadd.f32 %v2067_v11, %v2066_v7  ;;  %v2080_v20 = vadd.f32 %v2079_v12, %v2078_v8 }
 0x44e   :  { %v2063_v21 = vrot.slane %v2062_v17, 1  ;;  %v2075_v29 = vrot.slane %v2074_v18, 1 }
 0x44f   :  { %v2069_v30 = vrot.slane %v2068_v19, 1  ;;  %v2081_v27 = vrot.slane %v2080_v20, 1 }
 0x450   :  { %v2064_v34 = vadd.f32 %v2063_v21, %v2062_v17  ;;  %v2076_v32 = vadd.f32 %v2075_v29, %v2074_v18 }
 0x451   :  { %v2070_v23 = vadd.f32 %v2069_v30, %v2068_v19  ;;  %v2082_v26 = vadd.f32 %v2081_v27, %v2080_v20 }
 0x452   :  { %v2083_v36 = vmul.f32 0.125, %v2064_v34  ;;  %v2085_v35 = vmul.f32 0.125, %v2076_v32 }
 0x453   :  { %v2084_v31 = vmul.f32 0.125, %v2070_v23  ;;  %v2086_v0 = vmul.f32 0.125, %v2082_v26 }
 0x454   :  { %v2087_v24 = vadd.f32 1e-05, %v2083_v36  ;;  %v2089_v22 = vadd.f32 1e-05, %v2085_v35  ;;  %v2319_v35 = vsub.s32 2, %v3463_v40 }
 0x455   :  { %v2088_v25 = vadd.f32 1e-05, %v2084_v31  ;;  %v2090_v37 = vadd.f32 1e-05, %v2086_v0  ;;  %v2324_v31 = vsub.s32 3, %v3463_v40 }
 0x456   :  { %2528 = vrsqrt.f32 %v2087_v24 }
 0x457   :  { %2530 = vrsqrt.f32 %v2089_v22 }
 0x458   :  { %2532 = vrsqrt.f32 %v2088_v25  ;;  %v2325_v25 = vrot.slane %v3443_v13, %v2324_v31 }
 0x459   :  { %2534 = vrsqrt.f32 %v2090_v37 }
 0x460   :  { %v2529_v42 = vpop.eup %2528 }
 0x461   :  { %v2531_v45 = vpop.eup %2530  ;;  %v2095_v46 = vmul.f32 %v2529_v42, %v3443_v13 }
 0x462   :  { %v2533_v47 = vpop.eup %2532  ;;  %v2097_v48 = vmul.f32 %v2531_v45, %v3445_v14 }
 0x463   :  { %v2535_v49 = vpop.eup %2534  ;;  %v2102_v39 = vrot.slane %v2095_v46, %v2101_v41  ;;  %v2096_v50 = vmul.f32 %v2533_v47, %v3447_v15 }
 0x464   :  { %v2110_v52 = vrot.slane %v2097_v48, %v2101_v41  ;;  %v2098_v53 = vmul.f32 %v2535_v49, %v3449_v16 }
 0x465   :  { %v2115_v54 = vmul.f32 %v2102_v39, %v2051_v59  ;;  %v2106_v44 = vrot.slane %v2096_v50, %v2101_v41 }
 0x466   :  { %v2117_v58 = vmul.f32 %v2110_v52, %v2053_v60  ;;  %v2114_v63 = vrot.slane %v2098_v53, %v2101_v41 }
 0x467   :  { %v2116_v1 = vmul.f32 %v2106_v44, %v3455_v61  ;;  %v2135_v56 = vadd.f32 %v2122_v51, %v2115_v54 }
 0x468   :  { %v2118_v2 = vmul.f32 %v2114_v63, %v3457_v62  ;;  %v2137_v3 = vadd.f32 %v2130_v55, %v2117_v58 }
 0x469   :  { %v2136_v4 = vadd.f32 %v2126_v57, %v2116_v1  ;;  %v2139_v59 = vmax.f32 %v2135_v56, 0.0 }
 0x46a   :  { %v2138_v33 = vadd.f32 %v2134_v28, %v2118_v2  ;;  %v2141_v14 = vmax.f32 %v2137_v3, 0.0 }
 0x46b   :  { %v2140_v5 = vmax.f32 %v2136_v4, 0.0 }
 0x46c   :  { %v2142_v6 = vmax.f32 %v2138_v33, 0.0 }
 0x46d   :  { %2219 = vmatprep.mubr.f32.mxu1 %v2140_v5 }
 0x46e   :  { %2289 = vmatprep.mubr.f32.mxu0 %v2142_v6  ;;  %2220 = vmatmul.mubr.f32.vlgmr.msra.gmra.mrb[4].mxu1 %v2139_v59 }
 0x46f   :  { %2290 = vmatmul.mubr.f32.vlgmr.msra.gmra.mrb[4].mxu0 %v2141_v14 }
 0x541   :  { %v2221_v15 = vpop.f32.mrb[4].mxu1 }
 0x542   :  { %v2291_v60 = vpop.f32.mrb[4].mxu0  ;;  %v2223_v16 = vpop.f32.mrb[5].mxu1 }
 0x543   :  { %v2292_v7 = vadd.f32 %v2291_v60, %v2221_v15  ;;  %v2293_v61 = vpop.f32.mrb[5].mxu0 }
 0x545   :  { %v2296_v8 = vsel %vm2295_vm1, %v2292_v7, 0.0 }
 0x546   :  { %v2297_v62 = vrot.slane %v2296_v8, 4 }
 0x548   :  { %v2298_v9 = vadd.f32 %v2297_v62, %v2296_v8 }
 0x54a   :  { %v2299_v10 = vrot.slane %v2298_v9, 2 }
 0x54c   :  { %v2300_v11 = vadd.f32 %v2299_v10, %v2298_v9 }
 0x54e   :  { %v2301_v12 = vrot.slane %v2300_v11, 1 }
 0x550   :  { %v2302_v17 = vadd.f32 %v2301_v12, %v2300_v11 }
 0x552   :  { %v2303_v18 = vmul.f32 0.125, %v2302_v17 }
 0x554   :  { %v2304_v19 = vsub.f32 %v2292_v7, %v2303_v18 }
 0x556   :  { %v2305_v20 = vmul.f32 %v2304_v19, %v2304_v19 }
 0x558   :  { %v2306_v21 = vsel %vm2295_vm1, %v2305_v20, 0.0 }
 0x559   :  { %v2307_v29 = vrot.slane %v2306_v21, 4 }
 0x55b   :  { %v2308_v30 = vadd.f32 %v2307_v29, %v2306_v21 }
 0x55d   :  { %v2309_v27 = vrot.slane %v2308_v30, 2 }
 0x55f   :  { %v2310_v34 = vadd.f32 %v2309_v27, %v2308_v30 }
 0x561   :  { %v2311_v32 = vrot.slane %v2310_v34, 1 }
 0x563   :  { %v2312_v23 = vadd.f32 %v2311_v32, %v2310_v34 }
 0x565   :  { %v2313_v26 = vmul.f32 0.125, %v2312_v23 }
 0x567   :  { %v2314_v36 = vadd.f32 1e-05, %v2313_v26 }
 0x569   :  { %2536 = vrsqrt.f32 %v2314_v36 }
 0x573   :  { %v2537_v0 = vpop.eup %2536 }
 0x574   :  { %v2316_v24 = vmul.f32 %v2537_v0, %v3443_v13 }
 0x576   :  { %v2320_v22 = vrot.slane %v2316_v24, %v2319_v35 }
 0x578   :  { %v2321_v37 = vmul.f32 %v2320_v22, %v2304_v19 }
 0x57a   :  { %v2326_v38 = vadd.f32 %v2325_v25, %v2321_v37 }
 0x57c   :  { %v2327_v41 = vsel %vm2295_vm1, %v2326_v38, -inf }
 0x57d   :  { %2328 = vmax.xlane.f32.xlu0 %v2327_v41 }
 0x60a   :  { %v2329_v42 = vpop.xlane.xlu0 %2328 }
 0x60b   :  { %v2330_v43 = vsub.f32 %v2326_v38, %v2329_v42 }
 0x60d   :  { %v2331_v45 = vmul.f32 1.442695, %v2330_v43 }
 0x60f   :  { %2538 = vpow2.f32 %v2331_v45 }
 0x619   :  { %v2539_v46 = vpop.eup %2538 }
 0x61a   :  { %v2333_v47 = vsel %vm2295_vm1, %v2539_v46, 0.0 }
 0x61b   :  { %2334 = vadd.xlane.f32.xlu0 %v2333_v47 }
 0x6a8   :  { %v2335_v40 = vpop.xlane.xlu0 %2334 }
 0x6a9   :  { %2540 = vrcp.f32 %v2335_v40 }
 0x6b3   :  { %v2541_v48 = vpop.eup %2540 }
 0x6b4   :  { %v2337_v49 = vmul.f32 %v2541_v48, %v2539_v46 }
 0x6b6   :  { %2338 = vst.msk [vmem:[%s3492_s3] sm:$0xff] %vm2295_vm1, %v2337_v49 }
 0x6b7   :  { %2343 = vsyncpa [#allocation6], 1 }
 0x6b8   :  { %2344 = vsyncpa [#allocation8], 1 }
 0x6b9   :  { %2345 = vsyncmov [#allocation4] }
 0x6bc   :  { %s2346_s0 = vpop.sfrf %2345 }
 0x6bd   :  { %p2396_p2 = scmp.ne.s32.totalorder %s2346_s0, 0 }
 0x6bf   :  { %2350 = shalt.err (%p2396_p2)  }
 0x6c0   :  { %2352 = vsyncmov [#allocation4 + $0x1] }
 0x6c3   :  { %s2353_s7 = vpop.sfrf %2352 }
 0x6c4   :  { %p2397_p3 = scmp.ne.s32.totalorder %s2353_s7, 0 }
 0x6c6   :  { %2357 = shalt.err (%p2397_p3)  }

</bundles_post_ra>
